<compile_context>
chip_gen: v7x
topology: tpu7x:2x2x1
jax: 0.10.0
libtpu: 0.0.40
codegen_flags: <defaults>
</compile_context>

<pallas_src>
import numpy as np

import jax
import jax.numpy as jnp
from jax import lax
from jax.experimental import pallas as pl
from jax.experimental.pallas import tpu as pltpu


# ------------------------------ Pallas kernel ------------------------------

def _cnn_fused_kernel(x_ref, m1_ref, b1_ref, m2_ref, b2_ref, wfc_ref, bfc_ref,
                      o_ref):
    f32 = jnp.float32
    tb, H, W = x_ref.shape                        # (tb, 28, 28)
    N1 = m1_ref.shape[2]                          # 224  (lane f1 = C1*w + c)
    L1, N2 = m2_ref.shape[1], m2_ref.shape[2]     # 216, 224 (lane f2 = C2*w2+co)
    C1 = N1 // W                                  # 8
    H2 = H // 2                                   # 14
    C2 = N2 // H2                                 # 16
    L2 = N2 - C2                                  # 208
    R2 = 2 * H2 - 2                               # 26 uncompacted pool2 rows

    # ---- conv1: pad H 28->32 rows (W-padding lives in the band matrices),
    #      then 3 MXU GEMMs (one per kernel row) + shifted row adds.
    x = x_ref[...].astype(f32)
    xp = jnp.concatenate(
        [jnp.zeros((tb, 1, W), f32), x, jnp.zeros((tb, 3, W), f32)], axis=1)
    xp2 = xp.reshape(tb * (H + 4), W)             # 32 rows/img -> layout-free
    g0 = jnp.dot(xp2, m1_ref[0], preferred_element_type=f32).reshape(tb, H + 4, N1)
    g1 = jnp.dot(xp2, m1_ref[1], preferred_element_type=f32).reshape(tb, H + 4, N1)
    g2 = jnp.dot(xp2, m1_ref[2], preferred_element_type=f32).reshape(tb, H + 4, N1)
    y1 = jnp.maximum(
        g0[:, 0:H, :] + g1[:, 1:H + 1, :] + g2[:, 2:H + 2, :] + b1_ref[...],
        0.0)                                      # (tb, 28, 224)

    # ---- pool1 (uncompacted): valid rows r = 2*h2, valid lanes 2*C1*w2 + c.
    t1 = jnp.maximum(y1[:, 0:H - 1, :], y1[:, 1:H, :])       # (tb, 27, 224)
    p1 = jnp.maximum(t1[:, :, 0:L1], t1[:, :, C1:C1 + L1])   # (tb, 27, 216)

    # ---- conv2: H-pad only (row -1 / +1 of the pooled map), 3 band GEMMs.
    h1p = jnp.concatenate(
        [jnp.zeros((tb, 2, L1), f32), p1, jnp.zeros((tb, 3, L1), f32)], axis=1)
    h1p2 = h1p.reshape(tb * 32, L1)               # 32 rows/img -> layout-free
    q0 = jnp.dot(h1p2, m2_ref[0], preferred_element_type=f32).reshape(tb, 32, N2)
    q1 = jnp.dot(h1p2, m2_ref[1], preferred_element_type=f32).reshape(tb, 32, N2)
    q2 = jnp.dot(h1p2, m2_ref[2], preferred_element_type=f32).reshape(tb, 32, N2)
    y2 = jnp.maximum(
        q0[:, 0:2 * H2, :] + q1[:, 2:2 * H2 + 2, :] + q2[:, 4:2 * H2 + 4, :]
        + b2_ref[...], 0.0)                       # (tb, 28, 224), valid rows 2*h2

    # ---- pool2 (uncompacted): valid rows 4*h3, valid lanes 2*C2*w3 + co.
    t2 = jnp.maximum(y2[:, 0:R2, :], y2[:, 2:R2 + 2, :])     # (tb, 26, 224)
    p2 = jnp.maximum(t2[:, :, 0:L2], t2[:, :, C2:C2 + L2])   # (tb, 26, 208)

    # ---- fc: zero rows in the packed weight ignore every non-valid position.
    feat = p2.reshape(tb, R2 * L2)                            # (tb, 5408)
    logits = jnp.dot(feat, wfc_ref[...], preferred_element_type=f32) + bfc_ref[...]
    o_ref[...] = logits.astype(o_ref.dtype)


# ------------------------- parameter packing (once) -------------------------

def pack_params(params):
    """One-time host-side repack of PyTorch-layout weights into band matrices."""
    w1 = np.asarray(params["w1"], np.float32)    # (8, 1, 3, 3)
    b1 = np.asarray(params["b1"], np.float32)    # (8,)
    w2 = np.asarray(params["w2"], np.float32)    # (16, 8, 3, 3)
    b2 = np.asarray(params["b2"], np.float32)    # (16,)
    wfc = np.asarray(params["wfc"], np.float32)  # (10, 784)
    bfc = np.asarray(params["bfc"], np.float32)  # (10,)

    C1, C2, NC = w1.shape[0], w2.shape[0], wfc.shape[0]
    W, W2, W3 = 28, 14, 7

    # conv1: input lane s = source column, output lane f1 = C1*w + c.
    # W-zero-padding is realised by simply not having out-of-range rows.
    m1 = np.zeros((3, W, C1 * W), np.float32)
    for kh in range(3):
        for w in range(W):
            for kw in range(3):
                s = w + kw - 1
                if 0 <= s < W:
                    m1[kh, s, C1 * w:C1 * w + C1] = w1[:, 0, kh, kw]

    # conv2: input lane g = 2*C1*wp + ci (uncompacted width-pooled map),
    # output lane f2 = C2*w2 + co.  Odd-pair "ghost" lanes get zero rows.
    L1 = 2 * C1 * (W2 - 1) + C1                  # 216
    m2 = np.zeros((3, L1, C2 * W2), np.float32)
    for kh in range(3):
        for w in range(W2):
            for kw in range(3):
                wp = w + kw - 1
                if 0 <= wp < W2:
                    for ci in range(C1):
                        m2[kh, 2 * C1 * wp + ci, C2 * w:C2 * w + C2] = \
                            w2[:, ci, kh, kw]

    # fc: kernel feature vector is the uncompacted pool2 map (26 rows x 208
    # lanes); only rows r2 = 4*h3, lanes 2*C2*w3 + co carry real data.
    L2 = 2 * C2 * (W3 - 1) + C2                  # 208
    R2 = 2 * W2 - 2                              # 26
    wfc4 = wfc.reshape(NC, C2, W3, W3)           # PyTorch flatten: co, h3, w3
    wfc_fold = np.zeros((R2 * L2, NC), np.float32)
    for h3 in range(W3):
        for w3 in range(W3):
            for co in range(C2):
                wfc_fold[4 * h3 * L2 + 2 * C2 * w3 + co, :] = wfc4[:, co, h3, w3]

    return {
        "m1": jnp.asarray(m1),                        # (3, 28, 224)
        "b1": jnp.asarray(np.tile(b1, W)[None, :]),   # (1, 224)
        "m2": jnp.asarray(m2),                        # (3, 216, 224)
        "b2": jnp.asarray(np.tile(b2, W2)[None, :]),  # (1, 224)
        "wfc": jnp.asarray(wfc_fold),                 # (5408, 10)
        "bfc": jnp.asarray(bfc[None, :]),             # (1, 10)
    }


# --------------------------------- forward ----------------------------------

def cnn_forward_packed(x_nchw, pk):
    b, cin, h, w = x_nchw.shape
    assert cin == 1 and h == 28 and w == 28, "CNN(KMNIST) expects (B, 1, 28, 28)"
    ncls = pk["bfc"].shape[1]

    x = x_nchw.reshape(b, h, w).astype(jnp.float32)

    # Batch tile: a single step for tiny batches; otherwise pick a tile so the
    # grid has >= 2 steps (v7x megacore sharding), capped at 32 images/step.
    TB_MAX = 32
    rup = lambda v, m: ((v + m - 1) // m) * m
    if b <= 8:
        tb = b
    elif b <= 2 * TB_MAX:
        tb = rup((b + 1) // 2, 8)
    else:
        tb = TB_MAX
    bp = rup(b, tb)
    if bp != b:
        x = jnp.concatenate([x, jnp.zeros((bp - b, h, w), x.dtype)], axis=0)

    const2 = lambda i: (0, 0)
    const3 = lambda i: (0, 0, 0)
    out = pl.pallas_call(
        _cnn_fused_kernel,
        out_shape=jax.ShapeDtypeStruct((bp, ncls), jnp.float32),
        grid=(bp // tb,),
        in_specs=[
            pl.BlockSpec((tb, h, w), lambda i: (i, 0, 0)),
            pl.BlockSpec(pk["m1"].shape, const3),
            pl.BlockSpec(pk["b1"].shape, const2),
            pl.BlockSpec(pk["m2"].shape, const3),
            pl.BlockSpec(pk["b2"].shape, const2),
            pl.BlockSpec(pk["wfc"].shape, const2),
            pl.BlockSpec(pk["bfc"].shape, const2),
        ],
        out_specs=pl.BlockSpec((tb, ncls), lambda i: (i, 0)),
        compiler_params=pltpu.CompilerParams(
            dimension_semantics=("parallel",),
            vmem_limit_bytes=48 * 1024 * 1024,
        ),
    )(x, pk["m1"], pk["b1"], pk["m2"], pk["b2"], pk["wfc"], pk["bfc"])
    return out[:b]


def cnn_forward(x_nchw, params):
    return cnn_forward_packed(x_nchw, pack_params(params))


# --------------------------- pure-JAX reference -----------------------------

def reference_forward(x, params):
    dn = ("NCHW", "OIHW", "NCHW")
    y = lax.conv_general_dilated(x, params["w1"], (1, 1), ((1, 1), (1, 1)),
                                 dimension_numbers=dn)
    y = jnp.maximum(y + params["b1"][None, :, None, None], 0.0)
    y = lax.reduce_window(y, -jnp.inf, lax.max, (1, 1, 2, 2), (1, 1, 2, 2),
                          "VALID")
    y = lax.conv_general_dilated(y, params["w2"], (1, 1), ((1, 1), (1, 1)),
                                 dimension_numbers=dn)
    y = jnp.maximum(y + params["b2"][None, :, None, None], 0.0)
    y = lax.reduce_window(y, -jnp.inf, lax.max, (1, 1, 2, 2), (1, 1, 2, 2),
                          "VALID")
    y = y.reshape(y.shape[0], -1)
    return y @ params["wfc"].T + params["bfc"]


# ---------------------------------- main ------------------------------------

def init_params(key):
    k1, k2, k3, k4, k5, k6 = jax.random.split(key, 6)
    return {
        "w1": 0.1 * jax.random.normal(k1, (8, 1, 3, 3), jnp.float32),
        "b1": 0.1 * jax.random.normal(k2, (8,), jnp.float32),
        "w2": 0.1 * jax.random.normal(k3, (16, 8, 3, 3), jnp.float32),
        "b2": 0.1 * jax.random.normal(k4, (16,), jnp.float32),
        "wfc": 0.05 * jax.random.normal(k5, (10, 16 * 7 * 7), jnp.float32),
        "bfc": 0.05 * jax.random.normal(k6, (10,), jnp.float32),
    }


if __name__ == "__main__":
    key = jax.random.PRNGKey(0)
    kx, kp = jax.random.split(key)
    # fc1 expects 16*7*7 features, so spatial must be 28x28 (KMNIST size).
    x = jax.random.normal(kx, (2, 1, 28, 28), jnp.float32)
    params = init_params(kp)

    packed = pack_params(params)            # one-time repack, outside jit
    fwd = jax.jit(cnn_forward_packed)
    out = jax.block_until_ready(fwd(x, packed))

    ref = jax.block_until_ready(reference_forward(x, params))
    assert out.shape == (2, 10) and out.dtype == jnp.float32
    assert jnp.allclose(out, ref, rtol=2e-2, atol=2e-2), (
        "mismatch vs reference", out, ref)

    print("KERNEL_OK")
</pallas_src>

<mosaic_0001>
module attributes {stable_mosaic.version = 11 : i64} {
  func.func @_cnn_fused_kernel(%arg0: i32, %arg1: memref<2x28x28xf32, #tpu.memory_space<vmem>>, %arg2: memref<3x28x224xf32, #tpu.memory_space<vmem>>, %arg3: memref<1x224xf32, #tpu.memory_space<vmem>>, %arg4: memref<3x216x224xf32, #tpu.memory_space<vmem>>, %arg5: memref<1x224xf32, #tpu.memory_space<vmem>>, %arg6: memref<5408x10xf32, #tpu.memory_space<vmem>>, %arg7: memref<1x10xf32, #tpu.memory_space<vmem>>, %arg8: memref<2x10xf32, #tpu.memory_space<vmem>>) attributes {dimension_semantics = [#tpu.dimension_semantics<parallel>], iteration_bounds = array<i64: 1>, scalar_prefetch = 0 : i64, scratch_operands = 0 : i64, tpu.core_type = #tpu.core_type<tc>, window_params = [{transform_indices = @transform_0, window_bounds = array<i64: 2, 28, 28>}, {pipeline_mode = #tpu.pipeline_mode<synchronous>, transform_indices = @transform_1, window_bounds = array<i64: 3, 28, 224>}, {pipeline_mode = #tpu.pipeline_mode<synchronous>, transform_indices = @transform_2, window_bounds = array<i64: 1, 224>}, {pipeline_mode = #tpu.pipeline_mode<synchronous>, transform_indices = @transform_3, window_bounds = array<i64: 3, 216, 224>}, {pipeline_mode = #tpu.pipeline_mode<synchronous>, transform_indices = @transform_4, window_bounds = array<i64: 1, 224>}, {pipeline_mode = #tpu.pipeline_mode<synchronous>, transform_indices = @transform_5, window_bounds = array<i64: 5408, 10>}, {pipeline_mode = #tpu.pipeline_mode<synchronous>, transform_indices = @transform_6, window_bounds = array<i64: 1, 10>}, {transform_indices = @transform_7, window_bounds = array<i64: 2, 10>}]} {
    %c0 = arith.constant 0 : index
    %c0_0 = arith.constant 0 : index
    %c0_1 = arith.constant 0 : index
    %0 = vector.load %arg1[%c0, %c0_0, %c0_1] : memref<2x28x28xf32, #tpu.memory_space<vmem>>, vector<2x28x28xf32>
    %cst = arith.constant 0.000000e+00 : f32
    %1 = vector.broadcast %cst : f32 to vector<2x1x28xf32>
    %cst_2 = arith.constant 0.000000e+00 : f32
    %2 = vector.broadcast %cst_2 : f32 to vector<2x3x28xf32>
    %3 = tpu.concatenate %1, %0, %2 in 1 : vector<2x1x28xf32>, vector<2x28x28xf32>, vector<2x3x28xf32> -> vector<2x32x28xf32>
    %4 = vector.shape_cast %3 : vector<2x32x28xf32> to vector<64x28xf32>
    %c0_3 = arith.constant 0 : index
    %c0_4 = arith.constant 0 : index
    %c0_5 = arith.constant 0 : index
    %5 = vector.load %arg2[%c0_3, %c0_4, %c0_5] : memref<3x28x224xf32, #tpu.memory_space<vmem>>, vector<1x28x224xf32>
    %6 = vector.shape_cast %5 : vector<1x28x224xf32> to vector<28x224xf32>
    %cst_6 = arith.constant dense<0.000000e+00> : vector<64x224xf32>
    %7 = tpu.matmul %4, %6, %cst_6 {dimension_numbers = #tpu.dot_dimension_numbers<[1], [0], [0], [1], [0, 0, 1, 1], [], []>} : vector<64x28xf32>, vector<28x224xf32>, vector<64x224xf32> -> vector<64x224xf32>
    %8 = vector.shape_cast %7 : vector<64x224xf32> to vector<2x32x224xf32>
    %c1 = arith.constant 1 : index
    %c0_7 = arith.constant 0 : index
    %c0_8 = arith.constant 0 : index
    %9 = vector.load %arg2[%c1, %c0_7, %c0_8] : memref<3x28x224xf32, #tpu.memory_space<vmem>>, vector<1x28x224xf32>
    %10 = vector.shape_cast %9 : vector<1x28x224xf32> to vector<28x224xf32>
    %cst_9 = arith.constant dense<0.000000e+00> : vector<64x224xf32>
    %11 = tpu.matmul %4, %10, %cst_9 {dimension_numbers = #tpu.dot_dimension_numbers<[1], [0], [0], [1], [0, 0, 1, 1], [], []>} : vector<64x28xf32>, vector<28x224xf32>, vector<64x224xf32> -> vector<64x224xf32>
    %12 = vector.shape_cast %11 : vector<64x224xf32> to vector<2x32x224xf32>
    %c2 = arith.constant 2 : index
    %c0_10 = arith.constant 0 : index
    %c0_11 = arith.constant 0 : index
    %13 = vector.load %arg2[%c2, %c0_10, %c0_11] : memref<3x28x224xf32, #tpu.memory_space<vmem>>, vector<1x28x224xf32>
    %14 = vector.shape_cast %13 : vector<1x28x224xf32> to vector<28x224xf32>
    %cst_12 = arith.constant dense<0.000000e+00> : vector<64x224xf32>
    %15 = tpu.matmul %4, %14, %cst_12 {dimension_numbers = #tpu.dot_dimension_numbers<[1], [0], [0], [1], [0, 0, 1, 1], [], []>} : vector<64x28xf32>, vector<28x224xf32>, vector<64x224xf32> -> vector<64x224xf32>
    %16 = vector.shape_cast %15 : vector<64x224xf32> to vector<2x32x224xf32>
    %17 = vector.extract_strided_slice %8 {offsets = [0, 0, 0], sizes = [2, 28, 224], strides = [1, 1, 1]} : vector<2x32x224xf32> to vector<2x28x224xf32>
    %18 = vector.extract_strided_slice %12 {offsets = [0, 1, 0], sizes = [2, 28, 224], strides = [1, 1, 1]} : vector<2x32x224xf32> to vector<2x28x224xf32>
    %19 = arith.addf %17, %18 : vector<2x28x224xf32>
    %20 = vector.extract_strided_slice %16 {offsets = [0, 2, 0], sizes = [2, 28, 224], strides = [1, 1, 1]} : vector<2x32x224xf32> to vector<2x28x224xf32>
    %21 = arith.addf %19, %20 : vector<2x28x224xf32>
    %c0_13 = arith.constant 0 : index
    %c0_14 = arith.constant 0 : index
    %22 = vector.load %arg3[%c0_13, %c0_14] : memref<1x224xf32, #tpu.memory_space<vmem>>, vector<1x224xf32>
    %23 = vector.shape_cast %22 : vector<1x224xf32> to vector<1x1x224xf32>
    %24 = vector.broadcast %23 : vector<1x1x224xf32> to vector<2x28x224xf32>
    %25 = arith.addf %21, %24 : vector<2x28x224xf32>
    %cst_15 = arith.constant 0.000000e+00 : f32
    %26 = vector.broadcast %cst_15 : f32 to vector<2x28x224xf32>
    %27 = arith.maximumf %25, %26 : vector<2x28x224xf32>
    %28 = vector.extract_strided_slice %27 {offsets = [0, 0, 0], sizes = [2, 27, 224], strides = [1, 1, 1]} : vector<2x28x224xf32> to vector<2x27x224xf32>
    %29 = vector.extract_strided_slice %27 {offsets = [0, 1, 0], sizes = [2, 27, 224], strides = [1, 1, 1]} : vector<2x28x224xf32> to vector<2x27x224xf32>
    %30 = arith.maximumf %28, %29 : vector<2x27x224xf32>
    %31 = vector.extract_strided_slice %30 {offsets = [0, 0, 0], sizes = [2, 27, 216], strides = [1, 1, 1]} : vector<2x27x224xf32> to vector<2x27x216xf32>
    %32 = vector.extract_strided_slice %30 {offsets = [0, 0, 8], sizes = [2, 27, 216], strides = [1, 1, 1]} : vector<2x27x224xf32> to vector<2x27x216xf32>
    %33 = arith.maximumf %31, %32 : vector<2x27x216xf32>
    %cst_16 = arith.constant 0.000000e+00 : f32
    %34 = vector.broadcast %cst_16 : f32 to vector<2x2x216xf32>
    %cst_17 = arith.constant 0.000000e+00 : f32
    %35 = vector.broadcast %cst_17 : f32 to vector<2x3x216xf32>
    %36 = tpu.concatenate %34, %33, %35 in 1 : vector<2x2x216xf32>, vector<2x27x216xf32>, vector<2x3x216xf32> -> vector<2x32x216xf32>
    %37 = vector.shape_cast %36 : vector<2x32x216xf32> to vector<64x216xf32>
    %c0_18 = arith.constant 0 : index
    %c0_19 = arith.constant 0 : index
    %c0_20 = arith.constant 0 : index
    %38 = vector.load %arg4[%c0_18, %c0_19, %c0_20] : memref<3x216x224xf32, #tpu.memory_space<vmem>>, vector<1x216x224xf32>
    %39 = vector.shape_cast %38 : vector<1x216x224xf32> to vector<216x224xf32>
    %cst_21 = arith.constant dense<0.000000e+00> : vector<64x224xf32>
    %40 = tpu.matmul %37, %39, %cst_21 {dimension_numbers = #tpu.dot_dimension_numbers<[1], [0], [0], [1], [0, 0, 1, 1], [], []>} : vector<64x216xf32>, vector<216x224xf32>, vector<64x224xf32> -> vector<64x224xf32>
    %41 = vector.shape_cast %40 : vector<64x224xf32> to vector<2x32x224xf32>
    %c1_22 = arith.constant 1 : index
    %c0_23 = arith.constant 0 : index
    %c0_24 = arith.constant 0 : index
    %42 = vector.load %arg4[%c1_22, %c0_23, %c0_24] : memref<3x216x224xf32, #tpu.memory_space<vmem>>, vector<1x216x224xf32>
    %43 = vector.shape_cast %42 : vector<1x216x224xf32> to vector<216x224xf32>
    %cst_25 = arith.constant dense<0.000000e+00> : vector<64x224xf32>
    %44 = tpu.matmul %37, %43, %cst_25 {dimension_numbers = #tpu.dot_dimension_numbers<[1], [0], [0], [1], [0, 0, 1, 1], [], []>} : vector<64x216xf32>, vector<216x224xf32>, vector<64x224xf32> -> vector<64x224xf32>
    %45 = vector.shape_cast %44 : vector<64x224xf32> to vector<2x32x224xf32>
    %c2_26 = arith.constant 2 : index
    %c0_27 = arith.constant 0 : index
    %c0_28 = arith.constant 0 : index
    %46 = vector.load %arg4[%c2_26, %c0_27, %c0_28] : memref<3x216x224xf32, #tpu.memory_space<vmem>>, vector<1x216x224xf32>
    %47 = vector.shape_cast %46 : vector<1x216x224xf32> to vector<216x224xf32>
    %cst_29 = arith.constant dense<0.000000e+00> : vector<64x224xf32>
    %48 = tpu.matmul %37, %47, %cst_29 {dimension_numbers = #tpu.dot_dimension_numbers<[1], [0], [0], [1], [0, 0, 1, 1], [], []>} : vector<64x216xf32>, vector<216x224xf32>, vector<64x224xf32> -> vector<64x224xf32>
    %49 = vector.shape_cast %48 : vector<64x224xf32> to vector<2x32x224xf32>
    %50 = vector.extract_strided_slice %41 {offsets = [0, 0, 0], sizes = [2, 28, 224], strides = [1, 1, 1]} : vector<2x32x224xf32> to vector<2x28x224xf32>
    %51 = vector.extract_strided_slice %45 {offsets = [0, 2, 0], sizes = [2, 28, 224], strides = [1, 1, 1]} : vector<2x32x224xf32> to vector<2x28x224xf32>
    %52 = arith.addf %50, %51 : vector<2x28x224xf32>
    %53 = vector.extract_strided_slice %49 {offsets = [0, 4, 0], sizes = [2, 28, 224], strides = [1, 1, 1]} : vector<2x32x224xf32> to vector<2x28x224xf32>
    %54 = arith.addf %52, %53 : vector<2x28x224xf32>
    %c0_30 = arith.constant 0 : index
    %c0_31 = arith.constant 0 : index
    %55 = vector.load %arg5[%c0_30, %c0_31] : memref<1x224xf32, #tpu.memory_space<vmem>>, vector<1x224xf32>
    %56 = vector.shape_cast %55 : vector<1x224xf32> to vector<1x1x224xf32>
    %57 = vector.broadcast %56 : vector<1x1x224xf32> to vector<2x28x224xf32>
    %58 = arith.addf %54, %57 : vector<2x28x224xf32>
    %cst_32 = arith.constant 0.000000e+00 : f32
    %59 = vector.broadcast %cst_32 : f32 to vector<2x28x224xf32>
    %60 = arith.maximumf %58, %59 : vector<2x28x224xf32>
    %61 = vector.extract_strided_slice %60 {offsets = [0, 0, 0], sizes = [2, 26, 224], strides = [1, 1, 1]} : vector<2x28x224xf32> to vector<2x26x224xf32>
    %62 = vector.extract_strided_slice %60 {offsets = [0, 2, 0], sizes = [2, 26, 224], strides = [1, 1, 1]} : vector<2x28x224xf32> to vector<2x26x224xf32>
    %63 = arith.maximumf %61, %62 : vector<2x26x224xf32>
    %64 = vector.extract_strided_slice %63 {offsets = [0, 0, 0], sizes = [2, 26, 208], strides = [1, 1, 1]} : vector<2x26x224xf32> to vector<2x26x208xf32>
    %65 = vector.extract_strided_slice %63 {offsets = [0, 0, 16], sizes = [2, 26, 208], strides = [1, 1, 1]} : vector<2x26x224xf32> to vector<2x26x208xf32>
    %66 = arith.maximumf %64, %65 : vector<2x26x208xf32>
    %67 = vector.shape_cast %66 : vector<2x26x208xf32> to vector<2x5408xf32>
    %c0_33 = arith.constant 0 : index
    %c0_34 = arith.constant 0 : index
    %68 = vector.load %arg6[%c0_33, %c0_34] : memref<5408x10xf32, #tpu.memory_space<vmem>>, vector<5408x10xf32>
    %cst_35 = arith.constant dense<0.000000e+00> : vector<2x10xf32>
    %69 = tpu.matmul %67, %68, %cst_35 {dimension_numbers = #tpu.dot_dimension_numbers<[1], [0], [0], [1], [0, 0, 1, 1], [], []>} : vector<2x5408xf32>, vector<5408x10xf32>, vector<2x10xf32> -> vector<2x10xf32>
    %c0_36 = arith.constant 0 : index
    %c0_37 = arith.constant 0 : index
    %70 = vector.load %arg7[%c0_36, %c0_37] : memref<1x10xf32, #tpu.memory_space<vmem>>, vector<1x10xf32>
    %71 = vector.broadcast %70 : vector<1x10xf32> to vector<2x10xf32>
    %72 = arith.addf %69, %71 : vector<2x10xf32>
    %c0_38 = arith.constant 0 : index
    %c0_39 = arith.constant 0 : index
    %73 = vector.load %arg8[%c0_38, %c0_39] : memref<2x10xf32, #tpu.memory_space<vmem>>, vector<2x10xf32>
    tpu.vector_store %arg8[%c0_38, %c0_39], %72 {strides = array<i32>} : memref<2x10xf32, #tpu.memory_space<vmem>>, vector<2x10xf32>,
    return
  }
  func.func @transform_0(%arg0: i32) -> (i32, i32, i32) {
    %c0_i32 = arith.constant 0 : i32
    %c0_i32_0 = arith.constant 0 : i32
    %c0_i32_1 = arith.constant 0 : i32
    return %arg0, %c0_i32, %c0_i32_0 : i32, i32, i32
  }
  func.func @transform_1(%arg0: i32) -> (i32, i32, i32) {
    %c0_i32 = arith.constant 0 : i32
    %c0_i32_0 = arith.constant 0 : i32
    %c0_i32_1 = arith.constant 0 : i32
    %c0_i32_2 = arith.constant 0 : i32
    return %c0_i32, %c0_i32_0, %c0_i32_1 : i32, i32, i32
  }
  func.func @transform_2(%arg0: i32) -> (i32, i32) {
    %c0_i32 = arith.constant 0 : i32
    %c0_i32_0 = arith.constant 0 : i32
    %c0_i32_1 = arith.constant 0 : i32
    return %c0_i32, %c0_i32_0 : i32, i32
  }
  func.func @transform_3(%arg0: i32) -> (i32, i32, i32) {
    %c0_i32 = arith.constant 0 : i32
    %c0_i32_0 = arith.constant 0 : i32
    %c0_i32_1 = arith.constant 0 : i32
    %c0_i32_2 = arith.constant 0 : i32
    return %c0_i32, %c0_i32_0, %c0_i32_1 : i32, i32, i32
  }
  func.func @transform_4(%arg0: i32) -> (i32, i32) {
    %c0_i32 = arith.constant 0 : i32
    %c0_i32_0 = arith.constant 0 : i32
    %c0_i32_1 = arith.constant 0 : i32
    return %c0_i32, %c0_i32_0 : i32, i32
  }
  func.func @transform_5(%arg0: i32) -> (i32, i32) {
    %c0_i32 = arith.constant 0 : i32
    %c0_i32_0 = arith.constant 0 : i32
    %c0_i32_1 = arith.constant 0 : i32
    return %c0_i32, %c0_i32_0 : i32, i32
  }
  func.func @transform_6(%arg0: i32) -> (i32, i32) {
    %c0_i32 = arith.constant 0 : i32
    %c0_i32_0 = arith.constant 0 : i32
    %c0_i32_1 = arith.constant 0 : i32
    return %c0_i32, %c0_i32_0 : i32, i32
  }
  func.func @transform_7(%arg0: i32) -> (i32, i32) {
    %c0_i32 = arith.constant 0 : i32
    %c0_i32_0 = arith.constant 0 : i32
    return %arg0, %c0_i32 : i32, i32
  }
}

</mosaic_0001>

<bundles_post_ra>
// kernel: cnn_forward_packed.1
= control target key start
LH: loop header
LB: loop body
LE: loop exit
PB: predicated region body
PF: predicated region fallthrough
CT: control target
= control target key end

     0   :  { %vm96_vm0 = vcmask 1043456   ;;  %v6600_v7 = vmov 0.0   ;;  %vm6601_vm1 = vmmov 1   ;;  %vm43_vm3 = vcmask 1040384   ;;  %s10350_s0 = inlined_call_operand.vmem [shape: f32[2,28,28], index: 0, kind: input, shape index: {}]   ;;  %s10351_s1 = inlined_call_operand.vmem [shape: f32[3,28,224], index: 1, kind: input, shape index: {}]   ;;  %s10352_s2 = inlined_call_operand.vmem [shape: f32[1,224], index: 2, kind: input, shape index: {}]   ;;  %s10353_s3 = inlined_call_operand.vmem [shape: f32[3,216,224], index: 3, kind: input, shape index: {}]   ;;  %s10354_s4 = inlined_call_operand.vmem [shape: f32[1,224], index: 4, kind: input, shape index: {}]   ;;  %s10355_s5 = inlined_call_operand.vmem [shape: f32[5408,10], index: 5, kind: input, shape index: {}]   ;;  %s10356_s6 = inlined_call_operand.vmem [shape: f32[1,10], index: 6, kind: input, shape index: {}]   ;;  %s10357_s7 = inlined_call_operand.hbm [shape: f32[2,10], index: 7, kind: output, shape index: {}]  }
   0x1   :  { %v68_v0 = vld [vmem:[%s10351_s1 + $0x8] sm:$0xff]  ;;  %v70_v1 = vld [vmem:[%s10351_s1 + $0x18] sm:$0xff]  ;;  %v67_v5 = vld [vmem:[%s10351_s1] sm:$0xff]  ;;  %167 = vmatprep.mubr.f32.mxu0 %v6600_v7  ;;  %295 = vmatprep.mubr.f32.mxu1 %v6600_v7  ;;  %vm75_vm4 = vcmask 228352  }
   0x2   :  { %v4689_v2 = vld [vmem:[%s10351_s1 + $0x48] sm:$0xff]  ;;  %v5627_v3 = vpack.c.bf16 %v70_v1, %v68_v0  ;;  %v4691_v4 = vld [vmem:[%s10351_s1 + $0x58] sm:$0xff]  ;;  %v69_v6 = vld [vmem:[%s10351_s1 + $0x10] sm:$0xff] }
   0x3   :  { %v5637_v8 = vpack.c.bf16 %v4691_v4, %v4689_v2  ;;  %v5629_v9 = vpack.c.bf16 %v69_v6, %v67_v5  ;;  %v4688_v10 = vld [vmem:[%s10351_s1 + $0x40] sm:$0xff]  ;;  %v4690_v11 = vld [vmem:[%s10351_s1 + $0x50] sm:$0xff]  ;;  %v72_v12 = vld [vmem:[%s10351_s1 + $0x28] sm:$0xff] }
   0x4   :  { %5628 = vmatprep.subr.bf16.mxu0 %v5627_v3  ;;  %v5639_v13 = vpack.c.bf16 %v4690_v11, %v4688_v10  ;;  %v74_v14 = vld [vmem:[%s10351_s1 + $0x38] sm:$0xf]  ;;  %vm6688_vm2 = vmpackc.low %vm96_vm0, %vm6601_vm1  ;;  %v4693_v16 = vld [vmem:[%s10351_s1 + $0x68] sm:$0xff] }
   0x5   :  { %5638 = vmatprep.subr.bf16.mxu1 %v5637_v8  ;;  %5630 = vmatpush1.bf16.msra.mxu0 %v5629_v9  ;;  %v5631_v17 = vpack.c.bf16 %v74_v14, %v72_v12  ;;  %v4695_v18 = vld [vmem:[%s10351_s1 + $0x78] sm:$0xf]  ;;  %v71_v19 = vld [vmem:[%s10351_s1 + $0x20] sm:$0xff]  ;;  %v73_v20 = vld [vmem:[%s10351_s1 + $0x30] sm:$0xf] }
   0x6   :  { %5640 = vmatpush1.bf16.msra.mxu1 %v5639_v13  ;;  %v5641_v21 = vpack.c.bf16 %v4695_v18, %v4693_v16  ;;  %v5634_v22 = vpack.c.bf16 %v73_v20, %v71_v19  ;;  %v4692_v23 = vld [vmem:[%s10351_s1 + $0x60] sm:$0xff]  ;;  %v4694_v24 = vld [vmem:[%s10351_s1 + $0x70] sm:$0xf]  ;;  %v4707_v28 = vld [vmem:[%s10351_s1 + $0x88] sm:$0xff] }
   0x7   :  { %v27_v25 = vld [vmem:[%s10350_s0] sm:$0xff]  ;;  %5633 = vmatprep.subr.msk.bf16.mxu0 %vm6688_vm2, %v5631_v17  ;;  %v5644_v26 = vpack.c.bf16 %v4694_v24, %v4692_v23  ;;  %v4709_v29 = vld [vmem:[%s10351_s1 + $0x98] sm:$0xff]  ;;  %v4708_v32 = vld [vmem:[%s10351_s1 + $0x90] sm:$0xff] }
   0x8   :  { %v44_v27 = vrot.slane %v27_v25, 7  ;;  %v4706_v30 = vld [vmem:[%s10351_s1 + $0x80] sm:$0xff]  ;;  %5643 = vmatprep.subr.msk.bf16.mxu1 %vm6688_vm2, %v5641_v21  ;;  %v5647_v31 = vpack.c.bf16 %v4709_v29, %v4707_v28  ;;  %v28_v33 = vld [vmem:[%s10350_s0 + $0x8] sm:$0xff]  ;;  %v29_v37 = vld [vmem:[%s10350_s0 + $0x10] sm:$0xff] }
   0x9   :  { %5636 = vmatpush1.bf16.msk.msra.mxu0 %vm6688_vm2, %v5634_v22  ;;  %v5649_v35 = vpack.c.bf16 %v4708_v32, %v4706_v30  ;;  %v45_v36 = vrot.slane %v28_v33, 7  ;;  %v4711_v38 = vld [vmem:[%s10351_s1 + $0xa8] sm:$0xff]  ;;  %v4713_v39 = vld [vmem:[%s10351_s1 + $0xb8] sm:$0xf]  ;;  %v4710_v42 = vld [vmem:[%s10351_s1 + $0xa0] sm:$0xff] }
   0xa   :  { %v6735_v34 = vsel %vm43_vm3, 0.0, %v44_v27  ;;  %5646 = vmatpush1.bf16.msk.msra.mxu1 %vm6688_vm2, %v5644_v26  ;;  %5648 = vmatprep.subr.bf16.mxu0 %v5647_v31  ;;  %v30_v40 = vld [vmem:[%s10350_s0 + $0x18] sm:$0xf]  ;;  %v5651_v41 = vpack.c.bf16 %v4713_v39, %v4711_v38  ;;  %v4712_v43 = vld [vmem:[%s10351_s1 + $0xb0] sm:$0xf] }
   0xc   :  { %4680 = vmatmul.mubr.msk.f32.vlgmr.msra.gmra.mrb[0].mxu0 %vm75_vm4, %v6735_v34 }
   0xd   :  { %12 = vsyncpa [#allocation3], 0  ;;  %4698 = vmatmul.mubr.msk.f32.vlgmr.msra.gmra.mrb[0].mxu1 %vm75_vm4, %v6735_v34  ;;  %5650 = vmatpush1.bf16.msra.mxu0 %v5649_v35  ;;  %v46_v44 = vsel %vm43_vm3, %v44_v27, %v45_v36  ;;  %v47_v45 = vrot.slane %v29_v37, 7  ;;  %v49_v46 = vrot.slane %v30_v40, 7  ;;  %v5654_v47 = vpack.c.bf16 %v4712_v43, %v4710_v42  ;;  %v31_v50 = vld [vmem:[%s10350_s0 + $0x20] sm:$0xff]  ;;  %v32_v53 = vld [vmem:[%s10350_s0 + $0x28] sm:$0xff] }
   0xe   :  { %173 = vmatprep.mubr.f32.mxu0 %v6600_v7  ;;  %301 = vmatprep.mubr.f32.mxu1 %v6600_v7  ;;  %vm64_vm5 = vcmask 1044480   ;;  %v51_v52 = vrot.slane %v31_v50, 7  ;;  %v52_v55 = vrot.slane %v32_v53, 7  ;;  %v33_v56 = vld [vmem:[%s10350_s0 + $0x30] sm:$0xff]  ;;  %v34_v57 = vld [vmem:[%s10350_s0 + $0x38] sm:$0xf] }
   0xf   :  { %5653 = vmatprep.subr.msk.bf16.mxu0 %vm6688_vm2, %v5651_v41  ;;  %v48_v48 = vsel %vm43_vm3, %v45_v36, %v47_v45  ;;  %v50_v49 = vsel %vm43_vm3, %v47_v45, %v49_v46  ;;  %v54_v59 = vrot.slane %v33_v56, 7  ;;  %v56_v60 = vrot.slane %v34_v57, 7  ;;  %v901_v0 = vld [vmem:[%s10353_s3 + $0x8] sm:$0xff]  ;;  %v903_v1 = vld [vmem:[%s10353_s3 + $0x18] sm:$0xff]  ;;  %v900_v2 = vld [vmem:[%s10353_s3] sm:$0xff]  ;;  %s6602_s26 = smov 120  }
  0x10   :  { %4681 = vmatmul.mubr.msk.f32.gmra.mrb[2].mxu0 %vm75_vm4, %v46_v44  ;;  %v65_v51 = vsel %vm64_vm5, %v50_v49, 0.0  ;;  %v63_v54 = vsel %vm43_vm3, 0.0, %v51_v52  ;;  %v53_v58 = vsel %vm43_vm3, %v51_v52, %v52_v55  ;;  %v5657_v3 = vpack.c.bf16 %v903_v1, %v901_v0  ;;  %v902_v4 = vld [vmem:[%s10353_s3 + $0x10] sm:$0xff]  ;;  %v4739_v5 = vld [vmem:[%s10353_s3 + $0x1b8] sm:$0xff]  ;;  %v4741_v6 = vld [vmem:[%s10353_s3 + $0x1c8] sm:$0xff]  ;;  %s6606_s16 = smov 80  }
  0x11   :  { %4699 = vmatmul.mubr.msk.f32.gmra.mrb[2].mxu1 %vm75_vm4, %v46_v44  ;;  %179 = vmatprep.mubr.f32.mxu0 %v6600_v7  ;;  %v55_v61 = vsel %vm43_vm3, %v52_v55, %v54_v59  ;;  %v57_v62 = vsel %vm43_vm3, %v54_v59, %v56_v60  ;;  %v5659_v8 = vpack.c.bf16 %v902_v4, %v900_v2  ;;  %v4738_v10 = vld [vmem:[%s10353_s3 + $0x1b0] sm:$0xff]  ;;  %v4740_v11 = vld [vmem:[%s10353_s3 + $0x1c0] sm:$0xff]  ;;  %v905_v12 = vld [vmem:[%s10353_s3 + $0x28] sm:$0xff]  ;;  %vm488_vm6 = vcmask 1046528   ;;  %s6607_s17 = smov 32   ;;  %s6608_s0 = smov 16  }
  0x12   :  { %307 = vmatprep.mubr.f32.mxu1 %v6600_v7  ;;  %5656 = vmatpush1.bf16.msk.msra.mxu0 %vm6688_vm2, %v5654_v47  ;;  %v66_v63 = vsel %vm64_vm5, %v57_v62, 0.0  ;;  %v5709_v9 = vpack.c.bf16 %v4741_v6, %v4739_v5  ;;  %v5711_v13 = vpack.c.bf16 %v4740_v11, %v4738_v10  ;;  %v907_v14 = vld [vmem:[%s10353_s3 + $0x38] sm:$0xff]  ;;  %v904_v15 = vld [vmem:[%s10353_s3 + $0x20] sm:$0xff]  ;;  %v906_v16 = vld [vmem:[%s10353_s3 + $0x30] sm:$0xff]  ;;  %vm565_vm7 = vcmask 1045504   ;;  %s6609_s18 = smov 64  }
  0x13   :  { %5658 = vmatprep.subr.bf16.mxu1 %v5657_v3  ;;  %v5661_v17 = vpack.c.bf16 %v907_v14, %v905_v12  ;;  %v5663_v18 = vpack.c.bf16 %v906_v16, %v904_v15  ;;  %v4743_v19 = vld [vmem:[%s10353_s3 + $0x1d8] sm:$0xff]  ;;  %v4745_v20 = vld [vmem:[%s10353_s3 + $0x1e8] sm:$0xff]  ;;  %v4742_v21 = vld [vmem:[%s10353_s3 + $0x1d0] sm:$0xff]  ;;  %vm794_vm8 = vcmask 982016   ;;  %vm851_vm9 = vcmask 1041408   ;;  %s6610_s19 = smov 96  }
  0x14   :  { %4682 = vmatmul.mubr.msk.f32.gmra.mrb[4].mxu0 %vm75_vm4, %v48_v48  ;;  %5660 = vmatpush1.bf16.msra.mxu1 %v5659_v8  ;;  %v5713_v22 = vpack.c.bf16 %v4745_v20, %v4743_v19  ;;  %v4744_v23 = vld [vmem:[%s10353_s3 + $0x1e0] sm:$0xff]  ;;  %v909_v24 = vld [vmem:[%s10353_s3 + $0x48] sm:$0xff]  ;;  %v911_v25 = vld [vmem:[%s10353_s3 + $0x58] sm:$0xff]  ;;  %vm954_vm10 = vcmask 719872   ;;  %vm1744_vm12 = vcmask 916480   ;;  %s6611_s20 = smov 48  }
  0x15   :  { %4700 = vmatmul.mubr.msk.f32.gmra.mrb[4].mxu1 %vm75_vm4, %v48_v48  ;;  %185 = vmatprep.mubr.f32.mxu0 %v6600_v7  ;;  %v5715_v26 = vpack.c.bf16 %v4744_v23, %v4742_v21  ;;  %v5665_v27 = vpack.c.bf16 %v911_v25, %v909_v24  ;;  %v908_v28 = vld [vmem:[%s10353_s3 + $0x40] sm:$0xff]  ;;  %v910_v29 = vld [vmem:[%s10353_s3 + $0x50] sm:$0xff]  ;;  %v4747_v30 = vld [vmem:[%s10353_s3 + $0x1f8] sm:$0xff]  ;;  %vm2205_vm13 = vcmask 654336   ;;  %vm2216_vm14 = vcmask 261120  }
  0x16   :  { %313 = vmatprep.mubr.f32.mxu1 %v6600_v7  ;;  %5710 = vmatprep.subr.bf16.mxu0 %v5709_v9  ;;  %v4749_v31 = vld [vmem:[%s10353_s3 + $0x208] sm:$0xff]  ;;  %v4746_v32 = vld [vmem:[%s10353_s3 + $0x1f0] sm:$0xff]  ;;  %v4748_v33 = vld [vmem:[%s10353_s3 + $0x200] sm:$0xff]  ;;  %vm2236_vm15 = vcmask 523264   ;;  %vm2257_vm1 = vcmask 785408   ;;  %vm2268_vm2 = vcmask 392192  }
  0x17   :  { %5662 = vmatprep.subr.bf16.mxu1 %v5661_v17  ;;  %v5717_v35 = vpack.c.bf16 %v4749_v31, %v4747_v30  ;;  %v913_v36 = vld [vmem:[%s10353_s3 + $0x68] sm:$0xff]  ;;  %v915_v37 = vld [vmem:[%s10353_s3 + $0x78] sm:$0xff]  ;;  %v912_v38 = vld [vmem:[%s10353_s3 + $0x60] sm:$0xff]  ;;  %v5719_v39 = vpack.c.bf16 %v4748_v33, %v4746_v32  ;;  %vm6613_vm3 = vmmov 0  }
  0x18   :  { %4683 = vmatmul.mubr.msk.f32.gmra.mrb[6].mxu0 %vm75_vm4, %v65_v51  ;;  %5664 = vmatpush1.bf16.msra.mxu1 %v5663_v18  ;;  %v5669_v40 = vpack.c.bf16 %v915_v37, %v913_v36  ;;  %v914_v41 = vld [vmem:[%s10353_s3 + $0x70] sm:$0xff]  ;;  %v4751_v42 = vld [vmem:[%s10353_s3 + $0x218] sm:$0xff]  ;;  %v4753_v43 = vld [vmem:[%s10353_s3 + $0x228] sm:$0xff] }
  0x19   :  { %4701 = vmatmul.mubr.msk.f32.gmra.mrb[6].mxu1 %vm75_vm4, %v65_v51  ;;  %191 = vmatprep.mubr.f32.mxu0 %v6600_v7  ;;  %v4750_v45 = vld [vmem:[%s10353_s3 + $0x210] sm:$0xff]  ;;  %v4752_v46 = vld [vmem:[%s10353_s3 + $0x220] sm:$0xff]  ;;  %v917_v47 = vld [vmem:[%s10353_s3 + $0x88] sm:$0xff]  ;;  %v5671_v49 = vpack.c.bf16 %v914_v41, %v912_v38 }
  0x1a   :  { %319 = vmatprep.mubr.f32.mxu1 %v6600_v7  ;;  %5666 = vmatprep.subr.bf16.mxu1 %v5665_v27  ;;  %v4755_v50 = vld [vmem:[%s10353_s3 + $0x238] sm:$0xff]  ;;  %v5723_v52 = vpack.c.bf16 %v4752_v46, %v4750_v45  ;;  %v918_v55 = vld [vmem:[%s10353_s3 + $0x90] sm:$0xff]  ;;  %v921_v59 = vld [vmem:[%s10353_s3 + $0xa8] sm:$0xff] }
  0x1b   :  { %v4754_v56 = vld [vmem:[%s10353_s3 + $0x230] sm:$0xff]  ;;  %v923_v60 = vld [vmem:[%s10353_s3 + $0xb8] sm:$0xff]  ;;  %v4761_v62 = vld [vmem:[%s10353_s3 + $0x268] sm:$0xff] }
  0x1c   :  { %4684 = vmatmul.mubr.msk.f32.gmra.mrb[8].mxu0 %vm75_vm4, %v63_v54  ;;  %v5677_v1 = vpack.c.bf16 %v923_v60, %v921_v59  ;;  %v920_v2 = vld [vmem:[%s10353_s3 + $0xa0] sm:$0xff]  ;;  %v922_v3 = vld [vmem:[%s10353_s3 + $0xb0] sm:$0xff]  ;;  %v925_v8 = vld [vmem:[%s10353_s3 + $0xc8] sm:$0xff] }
  0x1d   :  { %4702 = vmatmul.mubr.msk.f32.gmra.mrb[8].mxu1 %vm75_vm4, %v63_v54  ;;  %197 = vmatprep.mubr.f32.mxu0 %v6600_v7  ;;  %v4758_v4 = vld [vmem:[%s10353_s3 + $0x250] sm:$0xff]  ;;  %v4760_v6 = vld [vmem:[%s10353_s3 + $0x260] sm:$0xff]  ;;  %v927_v9 = vld [vmem:[%s10353_s3 + $0xd8] sm:$0xff]  ;;  %v5679_v12 = vpack.c.bf16 %v922_v3, %v920_v2 }
  0x1e   :  { %325 = vmatprep.mubr.f32.mxu1 %v6600_v7  ;;  %v4763_v10 = vld [vmem:[%s10353_s3 + $0x278] sm:$0xff]  ;;  %v4765_v11 = vld [vmem:[%s10353_s3 + $0x288] sm:$0xff]  ;;  %v5681_v14 = vpack.c.bf16 %v927_v9, %v925_v8  ;;  %v924_v15 = vld [vmem:[%s10353_s3 + $0xc0] sm:$0xff] }
  0x1f   :  { %v926_v16 = vld [vmem:[%s10353_s3 + $0xd0] sm:$0xff]  ;;  %v5733_v18 = vpack.c.bf16 %v4765_v11, %v4763_v10  ;;  %v4764_v19 = vld [vmem:[%s10353_s3 + $0x280] sm:$0xff]  ;;  %v929_v20 = vld [vmem:[%s10353_s3 + $0xe8] sm:$0xff] }
  0x20   :  { %4685 = vmatmul.mubr.msk.f32.gmra.mrb[10].mxu0 %vm75_vm4, %v53_v58  ;;  %v4762_v17 = vld [vmem:[%s10353_s3 + $0x270] sm:$0xff]  ;;  %v931_v21 = vld [vmem:[%s10353_s3 + $0xf8] sm:$0xff]  ;;  %v4769_v23 = vld [vmem:[%s10353_s3 + $0x2a8] sm:$0xff]  ;;  %v5683_v24 = vpack.c.bf16 %v926_v16, %v924_v15 }
  0x21   :  { %4703 = vmatmul.mubr.msk.f32.gmra.mrb[10].mxu1 %vm75_vm4, %v53_v58  ;;  %203 = vmatprep.mubr.f32.mxu0 %v6600_v7  ;;  %v5735_v25 = vpack.c.bf16 %v4764_v19, %v4762_v17  ;;  %v928_v27 = vld [vmem:[%s10353_s3 + $0xe0] sm:$0xff]  ;;  %v933_v32 = vld [vmem:[%s10353_s3 + $0x108] sm:$0xff]  ;;  %v935_v33 = vld [vmem:[%s10353_s3 + $0x118] sm:$0xff] }
  0x22   :  { %331 = vmatprep.mubr.f32.mxu1 %v6600_v7  ;;  %v4768_v31 = vld [vmem:[%s10353_s3 + $0x2a0] sm:$0xff]  ;;  %v5689_v38 = vpack.c.bf16 %v935_v33, %v933_v32  ;;  %v4770_v41 = vld [vmem:[%s10353_s3 + $0x2b0] sm:$0xff]  ;;  %v939_v45 = vld [vmem:[%s10353_s3 + $0x138] sm:$0xff] }
  0x23   :  { %v4775_v46 = vld [vmem:[%s10353_s3 + $0x2d8] sm:$0xff]  ;;  %v4781_v59 = vld [vmem:[%s10353_s3 + $0x308] sm:$0xff]  ;;  %v4780_v3 = vld [vmem:[%s10353_s3 + $0x300] sm:$0xff] }
  0x24   :  { %4686 = vmatmul.mubr.msk.f32.gmra.mrb[12].mxu0 %vm75_vm4, %v55_v61  ;;  %v4785_v8 = vld [vmem:[%s10353_s3 + $0x328] sm:$0xff]  ;;  %vm7386_vm11 = vmneg %vm851_vm9 }
  0x25   :  { %4704 = vmatmul.mubr.msk.f32.gmra.mrb[12].mxu1 %vm75_vm4, %v55_v61  ;;  %209 = vmatprep.mubr.f32.mxu0 %v6600_v7 }
  0x26   :  { %337 = vmatprep.mubr.f32.mxu1 %v6600_v7 }
  0x28   :  { %4687 = vmatmul.mubr.msk.f32.gmra.mrb[14].mxu0 %vm75_vm4, %v66_v63 }
  0x29   :  { %4705 = vmatmul.mubr.msk.f32.gmra.mrb[14].mxu1 %vm75_vm4, %v66_v63  ;;  %423 = vmatprep.mubr.f32.mxu0 %v6600_v7 }
  0x2c   :  { %4716 = vmatmul.mubr.msk.f32.vlgmr.msra.gmra.mrb[16].mxu0 %vm75_vm4, %v6735_v34  ;;  %v5667_v34 = vpack.c.bf16 %v910_v29, %v908_v28  ;;  %v930_v28 = vld [vmem:[%s10353_s3 + $0xf0] sm:$0xff] }
  0x2d   :  { %429 = vmatprep.mubr.f32.mxu0 %v6600_v7  ;;  %5712 = vmatpush1.bf16.msra.mxu0 %v5711_v13  ;;  %v5731_v13 = vpack.c.bf16 %v4760_v6, %v4758_v4  ;;  %v4766_v29 = vld [vmem:[%s10353_s3 + $0x290] sm:$0xff]  ;;  %v5687_v36 = vpack.c.bf16 %v930_v28, %v928_v27  ;;  %v945_v4 = vld [vmem:[%s10353_s3 + $0x168] sm:$0xff]  ;;  %v4783_v6 = vld [vmem:[%s10353_s3 + $0x318] sm:$0xff] }
  0x2e   :  { %5714 = vmatprep.subr.bf16.mxu0 %v5713_v22  ;;  %5668 = vmatpush1.bf16.msra.mxu1 %v5667_v34  ;;  %v4767_v22 = vld [vmem:[%s10353_s3 + $0x298] sm:$0xff]  ;;  %v5739_v37 = vpack.c.bf16 %v4768_v31, %v4766_v29  ;;  %v5753_v17 = vpack.c.bf16 %v4785_v8, %v4783_v6 }
  0x2f   :  { %5670 = vmatprep.subr.bf16.mxu1 %v5669_v40  ;;  %v5737_v30 = vpack.c.bf16 %v4769_v23, %v4767_v22  ;;  %v4771_v34 = vld [vmem:[%s10353_s3 + $0x2b8] sm:$0xff]  ;;  %v934_v40 = vld [vmem:[%s10353_s3 + $0x110] sm:$0xff] }
  0x30   :  { %4717 = vmatmul.mubr.msk.f32.gmra.mrb[18].mxu0 %vm75_vm4, %v46_v44  ;;  %v5721_v44 = vpack.c.bf16 %v4753_v43, %v4751_v42  ;;  %v4772_v43 = vld [vmem:[%s10353_s3 + $0x2c0] sm:$0xff] }
  0x31   :  { %435 = vmatprep.mubr.f32.mxu0 %v6600_v7  ;;  %5716 = vmatpush1.bf16.msra.mxu0 %v5715_v26  ;;  %v5685_v26 = vpack.c.bf16 %v931_v21, %v929_v20 }
  0x32   :  { %5718 = vmatprep.subr.bf16.mxu0 %v5717_v35  ;;  %5672 = vmatpush1.bf16.msra.mxu1 %v5671_v49  ;;  %v4773_v35 = vld [vmem:[%s10353_s3 + $0x2c8] sm:$0xff]  ;;  %v5743_v49 = vpack.c.bf16 %v4772_v43, %v4770_v41 }
  0x33   :  { %v5741_v42 = vpack.c.bf16 %v4773_v35, %v4771_v34 }
  0x34   :  { %4718 = vmatmul.mubr.msk.f32.gmra.mrb[20].mxu0 %vm75_vm4, %v48_v48  ;;  %v919_v48 = vld [vmem:[%s10353_s3 + $0x98] sm:$0xff] }
  0x35   :  { %441 = vmatprep.mubr.f32.mxu0 %v6600_v7  ;;  %5720 = vmatpush1.bf16.msra.mxu0 %v5719_v39  ;;  %v5673_v53 = vpack.c.bf16 %v919_v48, %v917_v47  ;;  %v932_v39 = vld [vmem:[%s10353_s3 + $0x100] sm:$0xff]  ;;  %v4777_v47 = vld [vmem:[%s10353_s3 + $0x2e8] sm:$0xff] }
  0x36   :  { %5722 = vmatprep.subr.bf16.mxu0 %v5721_v44  ;;  %v937_v44 = vld [vmem:[%s10353_s3 + $0x128] sm:$0xff]  ;;  %v5691_v48 = vpack.c.bf16 %v934_v40, %v932_v39 }
  0x37   :  { %5674 = vmatprep.subr.bf16.mxu1 %v5673_v53  ;;  %v4774_v53 = vld [vmem:[%s10353_s3 + $0x2d0] sm:$0xff] }
  0x38   :  { %4719 = vmatmul.mubr.msk.f32.gmra.mrb[22].mxu0 %vm75_vm4, %v65_v51  ;;  %v4757_v51 = vld [vmem:[%s10353_s3 + $0x248] sm:$0xff] }
  0x39   :  { %447 = vmatprep.mubr.f32.mxu0 %v6600_v7  ;;  %v5725_v57 = vpack.c.bf16 %v4757_v51, %v4755_v50  ;;  %5724 = vmatpush1.bf16.msra.mxu0 %v5723_v52  ;;  %v5693_v50 = vpack.c.bf16 %v939_v45, %v937_v44  ;;  %v936_v51 = vld [vmem:[%s10353_s3 + $0x120] sm:$0xff]  ;;  %v938_v52 = vld [vmem:[%s10353_s3 + $0x130] sm:$0xff] }
  0x3a   :  { %v5695_v60 = vpack.c.bf16 %v938_v52, %v936_v51 }
  0x3b   :  { %5726 = vmatprep.subr.bf16.mxu0 %v5725_v57  ;;  %v943_v57 = vld [vmem:[%s10353_s3 + $0x158] sm:$0xff] }
  0x3c   :  { %4720 = vmatmul.mubr.msk.f32.gmra.mrb[24].mxu0 %vm75_vm4, %v63_v54  ;;  %v916_v54 = vld [vmem:[%s10353_s3 + $0x80] sm:$0xff] }
  0x3d   :  { %453 = vmatprep.mubr.f32.mxu0 %v6600_v7 }
  0x40   :  { %4721 = vmatmul.mubr.msk.f32.gmra.mrb[26].mxu0 %vm75_vm4, %v53_v58  ;;  %v4756_v58 = vld [vmem:[%s10353_s3 + $0x240] sm:$0xff] }
  0x41   :  { %459 = vmatprep.mubr.f32.mxu0 %v6600_v7  ;;  %v5727_v0 = vpack.c.bf16 %v4756_v58, %v4754_v56  ;;  %v941_v56 = vld [vmem:[%s10353_s3 + $0x148] sm:$0xff]  ;;  %v4779_v58 = vld [vmem:[%s10353_s3 + $0x2f8] sm:$0xff] }
  0x42   :  { %v5749_v2 = vpack.c.bf16 %v4781_v59, %v4779_v58 }
  0x43   :  { %5728 = vmatpush1.bf16.msra.mxu0 %v5727_v0  ;;  %v942_v0 = vld [vmem:[%s10353_s3 + $0x150] sm:$0xff] }
  0x44   :  { %4722 = vmatmul.mubr.msk.f32.gmra.mrb[28].mxu0 %vm75_vm4, %v55_v61  ;;  %v4759_v61 = vld [vmem:[%s10353_s3 + $0x258] sm:$0xff] }
  0x45   :  { %465 = vmatprep.mubr.f32.mxu0 %v6600_v7  ;;  %v5729_v5 = vpack.c.bf16 %v4761_v62, %v4759_v61  ;;  %v5697_v62 = vpack.c.bf16 %v943_v57, %v941_v56 }
  0x47   :  { %5730 = vmatprep.subr.bf16.mxu0 %v5729_v5  ;;  %v947_v5 = vld [vmem:[%s10353_s3 + $0x178] sm:$0xff] }
  0x48   :  { %4723 = vmatmul.mubr.msk.f32.gmra.mrb[30].mxu0 %vm75_vm4, %v66_v63  ;;  %v5675_v63 = vpack.c.bf16 %v918_v55, %v916_v54  ;;  %v5745_v54 = vpack.c.bf16 %v4777_v47, %v4775_v46  ;;  %v4776_v55 = vld [vmem:[%s10353_s3 + $0x2e0] sm:$0xff]  ;;  %vm4662_vm4 = vcmask 74752  }
  0x49   :  { %5732 = vmatpush1.bf16.msra.mxu0 %v5731_v13  ;;  %v5747_v61 = vpack.c.bf16 %v4776_v55, %v4774_v53  ;;  %v944_v13 = vld [vmem:[%s10353_s3 + $0x160] sm:$0xff] }
  0x4a   :  { %5676 = vmatpush1.bf16.msra.mxu1 %v5675_v63  ;;  %5734 = vmatprep.subr.bf16.mxu0 %v5733_v18  ;;  %v940_v63 = vld [vmem:[%s10353_s3 + $0x140] sm:$0xff] }
  0x4b   :  { %5678 = vmatprep.subr.bf16.mxu1 %v5677_v1  ;;  %v4778_v1 = vld [vmem:[%s10353_s3 + $0x2f0] sm:$0xff]  ;;  %v5699_v9 = vpack.c.bf16 %v942_v0, %v940_v63 }
  0x4c   :  { %v5751_v11 = vpack.c.bf16 %v4780_v3, %v4778_v1 }
  0x4d   :  { %5736 = vmatpush1.bf16.msra.mxu0 %v5735_v25 }
  0x4e   :  { %5680 = vmatpush1.bf16.msra.mxu1 %v5679_v12  ;;  %5738 = vmatprep.subr.bf16.mxu0 %v5737_v30  ;;  %v5701_v12 = vpack.c.bf16 %v947_v5, %v945_v4 }
  0x4f   :  { %5682 = vmatprep.subr.bf16.mxu1 %v5681_v14  ;;  %v946_v14 = vld [vmem:[%s10353_s3 + $0x170] sm:$0xff] }
  0x50   :  { %v5703_v19 = vpack.c.bf16 %v946_v14, %v944_v13 }
  0x51   :  { %5740 = vmatpush1.bf16.msra.mxu0 %v5739_v37 }
  0x52   :  { %5684 = vmatpush1.bf16.msra.mxu1 %v5683_v24  ;;  %5742 = vmatprep.subr.bf16.mxu0 %v5741_v42 }
  0x53   :  { %5686 = vmatprep.subr.bf16.mxu1 %v5685_v26 }
  0x55   :  { %5744 = vmatpush1.bf16.msra.mxu0 %v5743_v49 }
  0x56   :  { %5688 = vmatpush1.bf16.msra.mxu1 %v5687_v36  ;;  %5746 = vmatprep.subr.bf16.mxu0 %v5745_v54 }
  0x57   :  { %5690 = vmatprep.subr.bf16.mxu1 %v5689_v38 }
  0x59   :  { %5748 = vmatpush1.bf16.msra.mxu0 %v5747_v61 }
  0x5a   :  { %5692 = vmatpush1.bf16.msra.mxu1 %v5691_v48  ;;  %5750 = vmatprep.subr.bf16.mxu0 %v5749_v2 }
  0x5b   :  { %5694 = vmatprep.subr.bf16.mxu1 %v5693_v50 }
  0x5d   :  { %5752 = vmatpush1.bf16.msra.mxu0 %v5751_v11 }
  0x5e   :  { %5696 = vmatpush1.bf16.msra.mxu1 %v5695_v60  ;;  %5754 = vmatprep.subr.bf16.mxu0 %v5753_v17 }
  0x5f   :  { %5698 = vmatprep.subr.bf16.mxu1 %v5697_v62 }
  0x62   :  { %5700 = vmatpush1.bf16.msra.mxu1 %v5699_v9 }
  0x63   :  { %5702 = vmatprep.subr.bf16.mxu1 %v5701_v12  ;;  %v628_v12 = vlaneseq }
  0x66   :  { %5704 = vmatpush1.bf16.msra.mxu1 %v5703_v19 }
  0xdf   :  { %v169_v10 = vpop.f32.mrb[0].mxu0 }
  0xe0   :  { %v171_v15 = vpop.f32.mrb[1].mxu0  ;;  %v297_v16 = vpop.f32.mrb[0].mxu1 }
  0xe1   :  { %v299_v18 = vpop.f32.mrb[1].mxu1  ;;  %v489_v20 = vrot.slane %v297_v16, 1 }
  0xe2   :  { %v492_v22 = vrot.slane %v299_v18, 1 }
  0xe3   :  { %v175_v21 = vpop.f32.mrb[2].mxu0 }
  0xe4   :  { %v303_v23 = vpop.f32.mrb[2].mxu1  ;;  %v177_v24 = vpop.f32.mrb[3].mxu0 }
  0xe5   :  { %v490_v25 = vrot.slane %v303_v23, 1  ;;  %v305_v26 = vpop.f32.mrb[3].mxu1  ;;  %v7147_v23 = vshrl.u32 %v628_v12, 7  ;;  %v951_v12 = vld [vmem:[%s10353_s3 + $0x198] sm:$0xff] }
  0xe6   :  { %v493_v27 = vrot.slane %v305_v26, 1 }
  0xe7   :  { %v491_v28 = vsel %vm488_vm6, %v489_v20, %v490_v25  ;;  %v181_v29 = vpop.f32.mrb[4].mxu0 }
  0xe8   :  { %v7114_v30 = vadd.f32 %v491_v28, %v169_v10  ;;  %v494_v31 = vsel %vm488_vm6, %v492_v22, %v493_v27  ;;  %v309_v32 = vpop.f32.mrb[4].mxu1  ;;  %v183_v33 = vpop.f32.mrb[5].mxu0 }
  0xe9   :  { %v7117_v34 = vadd.f32 %v494_v31, %v171_v15  ;;  %v495_v35 = vrot.slane %v309_v32, 1  ;;  %v311_v36 = vpop.f32.mrb[5].mxu1 }
  0xea   :  { %v497_v37 = vrot.slane %v311_v36, 1  ;;  %v626_v36 = vld [vmem:[%s10352_s2] sm:$0x3] }
  0xeb   :  { %v496_v38 = vsel %vm488_vm6, %v490_v25, %v495_v35  ;;  %v187_v39 = vpop.f32.mrb[6].mxu0 }
  0xec   :  { %v7120_v40 = vadd.f32 %v496_v38, %v175_v21  ;;  %v498_v41 = vsel %vm488_vm6, %v493_v27, %v497_v37  ;;  %v315_v42 = vpop.f32.mrb[6].mxu1  ;;  %v189_v43 = vpop.f32.mrb[7].mxu0 }
  0xed   :  { %v7123_v44 = vadd.f32 %v498_v41, %v177_v24  ;;  %v499_v45 = vrot.slane %v315_v42, 1  ;;  %v317_v46 = vpop.f32.mrb[7].mxu1 }
  0xee   :  { %v501_v47 = vrot.slane %v317_v46, 1 }
  0xef   :  { %v500_v48 = vsel %vm488_vm6, %v495_v35, %v499_v45  ;;  %v7126_v49 = vadd.f32 %v499_v45, %v187_v39  ;;  %v193_v50 = vpop.f32.mrb[8].mxu0  ;;  %v630_v35 = vsub.s32 0, %v7147_v23 }
  0xf0   :  { %v7128_v51 = vadd.f32 %v500_v48, %v181_v29  ;;  %v502_v52 = vsel %vm488_vm6, %v497_v37, %v501_v47  ;;  %v7131_v53 = vadd.f32 %v501_v47, %v189_v43  ;;  %v195_v54 = vpop.f32.mrb[9].mxu0  ;;  %v321_v55 = vpop.f32.mrb[8].mxu1  ;;  %v634_v37 = vsub.s32 1, %v7147_v23 }
  0xf1   :  { %v7133_v56 = vadd.f32 %v502_v52, %v183_v33  ;;  %v323_v57 = vpop.f32.mrb[9].mxu1  ;;  %v503_v58 = vrot.slane %v321_v55, 1  ;;  %v7166_v46 = vrot.slane %v626_v36, %v630_v35 }
  0xf2   :  { %v506_v60 = vrot.slane %v323_v57, 1  ;;  %v7171_v48 = vrot.slane %v626_v36, %v634_v37 }
  0xf3   :  { %v199_v59 = vpop.f32.mrb[10].mxu0 }
  0xf4   :  { %v327_v61 = vpop.f32.mrb[10].mxu1  ;;  %v201_v62 = vpop.f32.mrb[11].mxu0 }
  0xf5   :  { %v504_v63 = vrot.slane %v327_v61, 1  ;;  %v329_v0 = vpop.f32.mrb[11].mxu1 }
  0xf6   :  { %v507_v1 = vrot.slane %v329_v0, 1 }
  0xf7   :  { %v505_v2 = vsel %vm488_vm6, %v503_v58, %v504_v63  ;;  %v205_v3 = vpop.f32.mrb[12].mxu0 }
  0xf8   :  { %v7136_v4 = vadd.f32 %v505_v2, %v193_v50  ;;  %v508_v5 = vsel %vm488_vm6, %v506_v60, %v507_v1  ;;  %v333_v6 = vpop.f32.mrb[12].mxu1  ;;  %v207_v8 = vpop.f32.mrb[13].mxu0 }
  0xf9   :  { %v7139_v9 = vadd.f32 %v508_v5, %v195_v54  ;;  %v509_v10 = vrot.slane %v333_v6, 1  ;;  %v335_v11 = vpop.f32.mrb[13].mxu1 }
  0xfa   :  { %v511_v13 = vrot.slane %v335_v11, 1  ;;  %v949_v11 = vld [vmem:[%s10353_s3 + $0x188] sm:$0xff] }
  0xfb   :  { %v510_v14 = vsel %vm488_vm6, %v504_v63, %v509_v10  ;;  %v211_v15 = vpop.f32.mrb[14].mxu0  ;;  %v4782_v63 = vld [vmem:[%s10353_s3 + $0x310] sm:$0xff] }
  0xfc   :  { %v7142_v16 = vadd.f32 %v510_v14, %v199_v59  ;;  %v512_v17 = vsel %vm488_vm6, %v507_v1, %v511_v13  ;;  %v339_v18 = vpop.f32.mrb[14].mxu1  ;;  %v213_v19 = vpop.f32.mrb[15].mxu0 }
  0xfd   :  { %v7145_v20 = vadd.f32 %v512_v17, %v201_v62  ;;  %v513_v21 = vrot.slane %v339_v18, 1  ;;  %v341_v22 = vpop.f32.mrb[15].mxu1 }
  0xfe   :  { %v515_v24 = vrot.slane %v341_v22, 1 }
  0xff   :  { %v514_v25 = vsel %vm488_vm6, %v509_v10, %v513_v21  ;;  %v7150_v26 = vadd.f32 %v513_v21, %v211_v15  ;;  %v425_v27 = vpop.f32.mrb[16].mxu0  ;;  %v5705_v15 = vpack.c.bf16 %v951_v12, %v949_v11 }
 0x100   :  { %v7152_v28 = vadd.f32 %v514_v25, %v205_v3  ;;  %v516_v29 = vsel %vm488_vm6, %v511_v13, %v515_v24  ;;  %v7155_v31 = vadd.f32 %v515_v24, %v213_v19  ;;  %v427_v32 = vpop.f32.mrb[17].mxu0  ;;  %v566_v39 = vrot.slane %v425_v27, 2 }
 0x101   :  { %v7157_v33 = vadd.f32 %v516_v29, %v207_v8  ;;  %v569_v43 = vrot.slane %v427_v32, 2  ;;  %5706 = vmatprep.subr.bf16.mxu1 %v5705_v15  ;;  %v948_v29 = vld [vmem:[%s10353_s3 + $0x180] sm:$0xff]  ;;  %v950_v32 = vld [vmem:[%s10353_s3 + $0x190] sm:$0xff] }
 0x103   :  { %v431_v38 = vpop.f32.mrb[18].mxu0 }
 0x104   :  { %v567_v41 = vrot.slane %v431_v38, 2  ;;  %v433_v42 = vpop.f32.mrb[19].mxu0 }
 0x105   :  { %v570_v45 = vrot.slane %v433_v42, 2 }
 0x106   :  { %v568_v47 = vsel %vm565_vm7, %v566_v39, %v567_v41  ;;  %v4787_v39 = vld [vmem:[%s10353_s3 + $0x338] sm:$0xff] }
 0x107   :  { %v610_v50 = vadd.f32 %v568_v47, %v7114_v30  ;;  %v571_v52 = vsel %vm565_vm7, %v569_v43, %v570_v45  ;;  %v437_v54 = vpop.f32.mrb[20].mxu0  ;;  %v4784_v30 = vld [vmem:[%s10353_s3 + $0x320] sm:$0xff] }
 0x108   :  { %v572_v55 = vrot.slane %v437_v54, 2  ;;  %v439_v57 = vpop.f32.mrb[21].mxu0  ;;  %v611_v58 = vadd.f32 %v571_v52, %v7117_v34  ;;  %v5755_v3 = vpack.c.bf16 %v4784_v30, %v4782_v63  ;;  %v5707_v54 = vpack.c.bf16 %v950_v32, %v948_v29  ;;  %v4786_v29 = vld [vmem:[%s10353_s3 + $0x330] sm:$0xff] }
 0x109   :  { %v574_v59 = vrot.slane %v439_v57, 2  ;;  %v7177_v60 = vadd.f32 %v7166_v46, %v610_v50 }
 0x10a   :  { %v573_v61 = vsel %vm565_vm7, %v567_v41, %v572_v55  ;;  %v639_v62 = vadd.f32 %v7171_v48, %v611_v58  ;;  %5756 = vmatpush1.bf16.msra.mxu0 %v5755_v3  ;;  %v4789_v41 = vld [vmem:[%s10353_s3 + $0x348] sm:$0xff]  ;;  %5708 = vmatpush1.bf16.msra.mxu1 %v5707_v54 }
 0x10b   :  { %v575_v0 = vsel %vm565_vm7, %v570_v45, %v574_v59  ;;  %v443_v1 = vpop.f32.mrb[22].mxu0  ;;  %v612_v34 = vadd.f32 %v573_v61, %v7120_v40  ;;  %v654_v2 = vmax.f32 %v7177_v60, 0.0  ;;  %v5757_v61 = vpack.c.bf16 %v4789_v41, %v4787_v39 }
 0x10c   :  { %v613_v5 = vadd.f32 %v575_v0, %v7123_v44  ;;  %v576_v6 = vrot.slane %v443_v1, 2  ;;  %v445_v8 = vpop.f32.mrb[23].mxu0  ;;  %v655_v10 = vmax.f32 %v639_v62, 0.0 }
 0x10d   :  { %v578_v13 = vrot.slane %v445_v8, 2  ;;  %v7198_v14 = vadd.f32 %v7166_v46, %v612_v34  ;;  %v686_v40 = vrot.slane %v654_v2, 1  ;;  %5758 = vmatprep.subr.bf16.mxu0 %v5757_v61  ;;  %v952_v8 = vld [vmem:[%s10353_s3 + $0x1a0] sm:$0xff] }
 0x10e   :  { %v7201_v44 = vadd.f32 %v7171_v48, %v613_v5  ;;  %v577_v17 = vsel %vm565_vm7, %v572_v55, %v576_v6  ;;  %v616_v18 = vadd.f32 %v576_v6, %v7126_v49  ;;  %v689_v19 = vrot.slane %v655_v10, 1  ;;  %v953_v55 = vld [vmem:[%s10353_s3 + $0x1a8] sm:$0xff] }
 0x10f   :  { %v614_v21 = vadd.f32 %v577_v17, %v7128_v51  ;;  %v579_v22 = vsel %vm565_vm7, %v574_v59, %v578_v13  ;;  %v617_v24 = vadd.f32 %v578_v13, %v7131_v53  ;;  %v449_v25 = vpop.f32.mrb[24].mxu0  ;;  %v656_v27 = vmax.f32 %v7198_v14, 0.0  ;;  %1027 = vmatprep.subr.mxu1 %v953_v55 }
 0x110   :  { %v657_v49 = vmax.f32 %v7201_v44, 0.0  ;;  %v7217_v51 = vadd.f32 %v7166_v46, %v616_v18  ;;  %v615_v36 = vadd.f32 %v579_v22, %v7133_v56  ;;  %v580_v53 = vrot.slane %v449_v25, 2  ;;  %v451_v38 = vpop.f32.mrb[25].mxu0  ;;  %1028 = vmatpush1.msra.mxu1 %v952_v8 }
 0x111   :  { %v642_v42 = vadd.f32 %v7166_v46, %v614_v21  ;;  %v7228_v43 = vadd.f32 %v7171_v48, %v617_v24  ;;  %v583_v45 = vrot.slane %v451_v38, 2  ;;  %v687_v47 = vrot.slane %v656_v27, 1 }
 0x112   :  { %v660_v50 = vmax.f32 %v7217_v51, 0.0  ;;  %v643_v56 = vadd.f32 %v7171_v48, %v615_v36  ;;  %v690_v52 = vrot.slane %v657_v49, 1 }
 0x113   :  { %v658_v57 = vmax.f32 %v642_v42, 0.0  ;;  %v661_v58 = vmax.f32 %v7228_v43, 0.0  ;;  %v455_v59 = vpop.f32.mrb[26].mxu0  ;;  %v688_v60 = vsel %vm488_vm6, %v686_v40, %v687_v47 }
 0x114   :  { %v7239_v62 = vrot.slane %v660_v50, 1  ;;  %v659_v63 = vmax.f32 %v643_v56, 0.0  ;;  %v581_v30 = vrot.slane %v455_v59, 2  ;;  %v457_v0 = vpop.f32.mrb[27].mxu0  ;;  %v691_v1 = vsel %vm488_vm6, %v689_v19, %v690_v52  ;;  %v4791_v56 = vld [vmem:[%s10353_s3 + $0x358] sm:$0xff] }
 0x115   :  { %v698_v34 = vrot.slane %v661_v58, 1  ;;  %v584_v3 = vrot.slane %v457_v0, 2  ;;  %v7242_v5 = vmax.f32 %v655_v10, %v691_v1  ;;  %v692_v6 = vrot.slane %v658_v57, 1 }
 0x116   :  { %v582_v11 = vsel %vm565_vm7, %v580_v53, %v581_v30  ;;  %v7248_v12 = vmax.f32 %v654_v2, %v688_v60  ;;  %v694_v13 = vrot.slane %v659_v63, 1 }
 0x117   :  { %v618_v14 = vadd.f32 %v582_v11, %v7136_v4  ;;  %v585_v40 = vsel %vm565_vm7, %v583_v45, %v584_v3  ;;  %764 = vrot.lane.b32.xlu0 %v7242_v5, %s6602_s26  ;;  %v461_v10 = vpop.f32.mrb[28].mxu0  ;;  %v693_v15 = vsel %vm488_vm6, %v687_v47, %v692_v6  ;;  %v697_v44 = vsel %vm488_vm6, %v692_v6, %v7239_v62 }
 0x118   :  { %v619_v17 = vadd.f32 %v585_v40, %v7139_v9  ;;  %v586_v18 = vrot.slane %v461_v10, 2  ;;  %v463_v2 = vpop.f32.mrb[29].mxu0  ;;  %v7258_v19 = vmax.f32 %v656_v27, %v693_v15  ;;  %v695_v4 = vsel %vm488_vm6, %v690_v52, %v694_v13  ;;  %v4788_v9 = vld [vmem:[%s10353_s3 + $0x340] sm:$0xff] }
 0x119   :  { %v588_v21 = vrot.slane %v463_v2, 2  ;;  %v7261_v22 = vmax.f32 %v657_v49, %v695_v4  ;;  %v7263_v24 = vmax.f32 %v658_v57, %v697_v44  ;;  %v699_v25 = vsel %vm488_vm6, %v694_v13, %v698_v34 }
 0x11a   :  { %v587_v27 = vsel %vm565_vm7, %v581_v30, %v586_v18  ;;  %766 = vrot.lane.b32.xlu1 %v7258_v19, %s6602_s26  ;;  %v7275_v32 = vmax.f32 %v659_v63, %v699_v25  ;;  %v647_v49 = vadd.f32 %v7171_v48, %v619_v17  ;;  %v646_v39 = vadd.f32 %v7166_v46, %v618_v14 }
 0x11b   :  { %v620_v36 = vadd.f32 %v587_v27, %v7142_v16  ;;  %v589_v53 = vsel %vm565_vm7, %v584_v3, %v588_v21  ;;  %762 = vrot.lane.b32.xlu0 %v7248_v12, %s6602_s26  ;;  %v467_v38 = vpop.f32.mrb[30].mxu0  ;;  %v5759_v47 = vpack.c.bf16 %v4788_v9, %v4786_v29  ;;  %v7288_v54 = vmax.f32 %v661_v58, %v698_v34  ;;  %v4790_v58 = vld [vmem:[%s10353_s3 + $0x350] sm:$0xff] }
 0x11c   :  { %v621_v41 = vadd.f32 %v589_v53, %v7145_v20  ;;  %v590_v42 = vrot.slane %v467_v38, 2  ;;  %v469_v43 = vpop.f32.mrb[31].mxu0  ;;  %v663_v45 = vmax.f32 %v647_v49, 0.0  ;;  %v662_v55 = vmax.f32 %v646_v39, 0.0 }
 0x11d   :  { %v648_v16 = vadd.f32 %v7166_v46, %v620_v36  ;;  %v592_v52 = vrot.slane %v469_v43, 2  ;;  %5760 = vmatpush1.bf16.msra.mxu0 %v5759_v47 }
 0x11e   :  { %v649_v57 = vadd.f32 %v7171_v48, %v621_v41  ;;  %v591_v59 = vsel %vm565_vm7, %v586_v18, %v590_v42  ;;  %v624_v20 = vadd.f32 %v590_v42, %v7150_v26  ;;  %768 = vrot.lane.b32.xlu1 %v7261_v22, %s6602_s26  ;;  %1195 = vmatprep.subr.mxu0 %v4791_v56  ;;  %v4807_v26 = vld [vmem:[%s10353_s3 + $0x368] sm:$0xff]  ;;  %v703_v34 = vrot.slane %v663_v45, 1  ;;  %v4806_v56 = vld [vmem:[%s10353_s3 + $0x360] sm:$0xff] }
 0x11f   :  { %v664_v60 = vmax.f32 %v648_v16, 0.0  ;;  %v622_v61 = vadd.f32 %v591_v59, %v7152_v28  ;;  %v593_v63 = vsel %vm565_vm7, %v588_v21, %v592_v52  ;;  %v625_v30 = vadd.f32 %v592_v52, %v7155_v31  ;;  %770 = vrot.lane.b32.xlu0 %v7263_v24, %s6602_s26  ;;  %v4809_v28 = vld [vmem:[%s10353_s3 + $0x378] sm:$0xff]  ;;  %v4808_v16 = vld [vmem:[%s10353_s3 + $0x370] sm:$0xff] }
 0x120   :  { %v665_v0 = vmax.f32 %v649_v57, 0.0  ;;  %v652_v1 = vadd.f32 %v7166_v46, %v624_v20  ;;  %v623_v31 = vadd.f32 %v593_v63, %v7157_v33  ;;  %v700_v8 = vrot.slane %v662_v55, 1  ;;  %v4813_v57 = vld [vmem:[%s10353_s3 + $0x398] sm:$0xff] }
 0x121   :  { %v650_v3 = vadd.f32 %v7166_v46, %v622_v61  ;;  %v653_v6 = vadd.f32 %v7171_v48, %v625_v30  ;;  %v701_v11 = vrot.slane %v664_v60, 1  ;;  %1196 = vmatpush1.msra.mxu0 %v4790_v58  ;;  %v5761_v10 = vpack.c.bf16 %v4809_v28, %v4807_v26  ;;  %v4810_v28 = vld [vmem:[%s10353_s3 + $0x380] sm:$0xff] }
 0x122   :  { %v668_v13 = vmax.f32 %v652_v1, 0.0  ;;  %v651_v14 = vadd.f32 %v7171_v48, %v623_v31  ;;  %772 = vrot.lane.b32.xlu1 %v7275_v32, %s6602_s26  ;;  %v704_v40 = vrot.slane %v665_v0, 1  ;;  %v7321_v33 = vmax.f32 %v660_v50, %v7239_v62  ;;  %v4815_v31 = vld [vmem:[%s10353_s3 + $0x3a8] sm:$0xff] }
 0x123   :  { %v666_v15 = vmax.f32 %v650_v3, 0.0  ;;  %v669_v44 = vmax.f32 %v653_v6, 0.0  ;;  %776 = vrot.lane.b32.xlu0 %v7288_v54, %s6602_s26  ;;  %v702_v46 = vsel %vm488_vm6, %v700_v8, %v701_v11  ;;  %5762 = vmatprep.subr.bf16.mxu1 %v5761_v10  ;;  %v5763_v61 = vpack.c.bf16 %v4808_v16, %v4806_v56  ;;  %v4814_v10 = vld [vmem:[%s10353_s3 + $0x3a0] sm:$0xff]  ;;  %v4825_v56 = vld [vmem:[%s10353_s3 + $0x3f8] sm:$0xff] }
 0x124   :  { %v710_v17 = vrot.slane %v668_v13, 1  ;;  %v667_v48 = vmax.f32 %v651_v14, 0.0  ;;  %v705_v18 = vsel %vm488_vm6, %v703_v34, %v704_v40  ;;  %v7325_v2 = vmax.f32 %v662_v55, %v702_v46 }
 0x125   :  { %v712_v4 = vrot.slane %v669_v44, 1  ;;  %v7327_v21 = vmax.f32 %v663_v45, %v705_v18  ;;  %v706_v25 = vrot.slane %v666_v15, 1 }
 0x126   :  { %774 = vrot.lane.b32.xlu1 %v7321_v33, %s6602_s26  ;;  %v708_v29 = vrot.slane %v667_v48, 1  ;;  %v7359_v39 = vmax.f32 %v668_v13, %v710_v17 }
 0x127   :  { %780 = vrot.lane.b32.xlu0 %v7327_v21, %s6602_s26  ;;  %v707_v51 = vsel %vm488_vm6, %v701_v11, %v706_v25  ;;  %v711_v50 = vsel %vm488_vm6, %v706_v25, %v710_v17  ;;  %v7353_v38 = vmax.f32 %v669_v44, %v712_v4  ;;  %v4819_v17 = vld [vmem:[%s10353_s3 + $0x3c8] sm:$0xff] }
 0x128   :  { %v7335_v62 = vmax.f32 %v664_v60, %v707_v51  ;;  %v709_v9 = vsel %vm488_vm6, %v704_v40, %v708_v29  ;;  %v7338_v27 = vmax.f32 %v666_v15, %v711_v50  ;;  %v713_v49 = vsel %vm488_vm6, %v708_v29, %v712_v4  ;;  %v4816_v15 = vld [vmem:[%s10353_s3 + $0x3b0] sm:$0xff] }
 0x129   :  { %v7341_v36 = vmax.f32 %v665_v0, %v709_v9  ;;  %v7343_v53 = vmax.f32 %v667_v48, %v713_v49  ;;  %v4812_v0 = vld [vmem:[%s10353_s3 + $0x390] sm:$0xff]  ;;  %v5771_v25 = vpack.c.bf16 %v4816_v15, %v4814_v10  ;;  %v4818_v49 = vld [vmem:[%s10353_s3 + $0x3c0] sm:$0xff] }
 0x12a   :  { %778 = vrot.lane.b32.xlu1 %v7325_v2, %s6602_s26  ;;  %v5767_v6 = vpack.c.bf16 %v4812_v0, %v4810_v28  ;;  %v4827_v0 = vld [vmem:[%s10353_s3 + $0x408] sm:$0xff] }
 0x12b   :  { %782 = vrot.lane.b32.xlu0 %v7335_v62, %s6602_s26 }
 0x12e   :  { %784 = vrot.lane.b32.xlu1 %v7341_v36, %s6602_s26 }
 0x12f   :  { %786 = vrot.lane.b32.xlu0 %v7338_v27, %s6602_s26 }
 0x132   :  { %788 = vrot.lane.b32.xlu1 %v7343_v53, %s6602_s26 }
 0x133   :  { %792 = vrot.lane.b32.xlu0 %v7353_v38, %s6602_s26 }
 0x136   :  { %790 = vrot.lane.b32.xlu1 %v7359_v39, %s6602_s26 }
 0x189   :  { %v765_v41 = vpop.permute.xlu0 %764 }
 0x18a   :  { %v820_v42 = vmax.f32 %v7242_v5, %v765_v41  ;;  %v4811_v5 = vld [vmem:[%s10353_s3 + $0x388] sm:$0xff] }
 0x18b   :  { %v5765_v26 = vpack.c.bf16 %v4813_v57, %v4811_v5 }
 0x18c   :  { %v853_v43 = vrot.slane %v820_v42, 6  ;;  %v767_v45 = vpop.permute.xlu1 %766 }
 0x18d   :  { %v763_v47 = vpop.permute.xlu0 %762 }
 0x18e   :  { %v795_v52 = vsel %vm794_vm8, %v763_v47, %v765_v41  ;;  %v7372_v55 = vsel %vm851_vm9, 0.0, %v853_v43  ;;  %v4820_v41 = vld [vmem:[%s10353_s3 + $0x3d0] sm:$0xff]  ;;  %v4823_v47 = vld [vmem:[%s10353_s3 + $0x3e8] sm:$0xff] }
 0x18f   :  { %v819_v59 = vmax.f32 %v7248_v12, %v795_v52  ;;  %4724 = vmatprep.mubr.msk.f32.mxu1 %vm954_vm10, %v7372_v55  ;;  %4792 = vmatprep.mubr.msk.f32.mxu0 %vm954_vm10, %v7372_v55  ;;  %v5775_v57 = vpack.c.bf16 %v4820_v41, %v4818_v49 }
 0x190   :  { %v769_v20 = vpop.permute.xlu1 %768 }
 0x191   :  { %v7390_v63 = vrot.slane %v819_v59, 6  ;;  %v796_v30 = vsel %vm794_vm8, %v767_v45, %v769_v20  ;;  %v822_v58 = vmax.f32 %v7261_v22, %v769_v20  ;;  %v771_v12 = vpop.permute.xlu0 %770  ;;  %v4817_v22 = vld [vmem:[%s10353_s3 + $0x3b8] sm:$0xff] }
 0x192   :  { %v821_v1 = vmax.f32 %v7258_v19, %v796_v30  ;;  %v5769_v40 = vpack.c.bf16 %v4817_v22, %v4815_v31  ;;  %v4822_v30 = vld [vmem:[%s10353_s3 + $0x3e0] sm:$0xff] }
 0x193   :  { %v856_v34 = vrot.slane %v822_v58, 6  ;;  %4726 = vmatmul.mubr.msk.f32.vlgmr.msra.gmra.mrb[16].mxu1 %vm7386_vm11, %v7390_v63  ;;  %4794 = vmatmul.mubr.msk.f32.vlgmr.msra.gmra.mrb[32].mxu0 %vm7386_vm11, %v7390_v63  ;;  %v4824_v58 = vld [vmem:[%s10353_s3 + $0x3f0] sm:$0xff] }
 0x194   :  { %v854_v3 = vrot.slane %v821_v1, 6  ;;  %5764 = vmatpush1.bf16.msra.mxu1 %v5763_v61  ;;  %v773_v19 = vpop.permute.xlu1 %772  ;;  %v5777_v61 = vpack.c.bf16 %v4825_v56, %v4823_v47  ;;  %v4829_v1 = vld [vmem:[%s10353_s3 + $0x418] sm:$0xff]  ;;  %v5779_v22 = vpack.c.bf16 %v4824_v58, %v4822_v30 }
 0x195   :  { %v797_v8 = vsel %vm794_vm8, %v771_v12, %v773_v19  ;;  %v824_v11 = vmax.f32 %v7275_v32, %v773_v19  ;;  %v777_v13 = vpop.permute.xlu0 %776  ;;  %v7416_v14 = vsel %vm851_vm9, %v853_v43, %v856_v34  ;;  %5766 = vmatprep.subr.bf16.mxu1 %v5765_v26 }
 0x196   :  { %v823_v44 = vmax.f32 %v7263_v24, %v797_v8  ;;  %v826_v46 = vmax.f32 %v7288_v54, %v777_v13  ;;  %4727 = vmatprep.mubr.msk.f32.mxu1 %vm954_vm10, %v7416_v14  ;;  %4795 = vmatprep.mubr.msk.f32.mxu0 %vm954_vm10, %v7416_v14  ;;  %v7432_v32 = vsel %vm851_vm9, %v7390_v63, %v854_v3  ;;  %v4821_v24 = vld [vmem:[%s10353_s3 + $0x3d8] sm:$0xff]  ;;  %v4826_v8 = vld [vmem:[%s10353_s3 + $0x400] sm:$0xff] }
 0x197   :  { %v860_v48 = vrot.slane %v824_v11, 6  ;;  %1046 = vmatmul.mubr.f32.gmra.mrb[18].mxu1 %v7432_v32  ;;  %1214 = vmatmul.mubr.f32.gmra.mrb[34].mxu0 %v7432_v32  ;;  %v5773_v9 = vpack.c.bf16 %v4821_v24, %v4819_v17  ;;  %v4828_v11 = vld [vmem:[%s10353_s3 + $0x410] sm:$0xff] }
 0x198   :  { %v858_v54 = vrot.slane %v823_v44, 6  ;;  %v864_v18 = vrot.slane %v826_v46, 6  ;;  %5768 = vmatpush1.bf16.msra.mxu1 %v5767_v6  ;;  %v775_v4 = vpop.permute.xlu1 %774  ;;  %v5781_v6 = vpack.c.bf16 %v4829_v1, %v4827_v0  ;;  %v5783_v44 = vpack.c.bf16 %v4828_v11, %v4826_v8  ;;  %v4840_v0 = vld [vmem:[%s10353_s3 + $0x470] sm:$0xff]  ;;  %v4847_v8 = vld [vmem:[%s10353_s3 + $0x4a8] sm:$0xff]  ;;  %v4849_v11 = vld [vmem:[%s10353_s3 + $0x4b8] sm:$0xff] }
 0x199   :  { %v798_v29 = vsel %vm794_vm8, %v775_v4, %v777_v13  ;;  %v781_v51 = vpop.permute.xlu0 %780  ;;  %v7444_v50 = vsel %vm851_vm9, %v856_v34, %v860_v48  ;;  %5770 = vmatprep.subr.bf16.mxu1 %v5769_v40  ;;  %v4831_v40 = vld [vmem:[%s10353_s3 + $0x428] sm:$0xff]  ;;  %v4832_v4 = vld [vmem:[%s10353_s3 + $0x430] sm:$0xff] }
 0x19a   :  { %v825_v42 = vmax.f32 %v7321_v33, %v798_v29  ;;  %v828_v43 = vmax.f32 %v7327_v21, %v781_v51  ;;  %4728 = vmatprep.mubr.msk.f32.mxu1 %vm954_vm10, %v7444_v50  ;;  %4796 = vmatprep.mubr.msk.f32.mxu0 %vm954_vm10, %v7444_v50  ;;  %v7459_v45 = vsel %vm851_vm9, %v854_v3, %v858_v54 }
 0x19b   :  { %1052 = vmatmul.mubr.f32.gmra.mrb[20].mxu1 %v7459_v45  ;;  %1220 = vmatmul.mubr.f32.gmra.mrb[36].mxu0 %v7459_v45  ;;  %v865_v33 = vsel %vm851_vm9, %v860_v48, %v864_v18  ;;  %v4830_v18 = vld [vmem:[%s10353_s3 + $0x420] sm:$0xff] }
 0x19c   :  { %v862_v21 = vrot.slane %v825_v42, 6  ;;  %v867_v16 = vrot.slane %v828_v43, 6  ;;  %5772 = vmatpush1.bf16.msra.mxu1 %v5771_v25  ;;  %v7471_v52 = vsel %vm64_vm5, %v865_v33, 0.0  ;;  %v779_v5 = vpop.permute.xlu1 %778  ;;  %v5787_v42 = vpack.c.bf16 %v4832_v4, %v4830_v18  ;;  %v4834_v33 = vld [vmem:[%s10353_s3 + $0x440] sm:$0xff] }
 0x19d   :  { %4729 = vmatprep.mubr.msk.f32.mxu1 %vm954_vm10, %v7471_v52  ;;  %4797 = vmatprep.mubr.msk.f32.mxu0 %vm954_vm10, %v7471_v52  ;;  %v799_v59 = vsel %vm794_vm8, %v779_v5, %v781_v51  ;;  %v783_v20 = vpop.permute.xlu0 %782  ;;  %v4835_v51 = vld [vmem:[%s10353_s3 + $0x448] sm:$0xff] }
 0x19e   :  { %v827_v12 = vmax.f32 %v7325_v2, %v799_v59  ;;  %5774 = vmatprep.subr.bf16.mxu1 %v5773_v9  ;;  %v7486_v26 = vsel %vm851_vm9, %v858_v54, %v862_v21  ;;  %v7489_v28 = vsel %vm851_vm9, 0.0, %v867_v16  ;;  %v4836_v21 = vld [vmem:[%s10353_s3 + $0x450] sm:$0xff]  ;;  %v4839_v59 = vld [vmem:[%s10353_s3 + $0x468] sm:$0xff] }
 0x19f   :  { %4730 = vmatmul.mubr.msk.f32.gmra.mrb[22].mxu1 %vm64_vm5, %v7486_v26  ;;  %4798 = vmatmul.mubr.msk.f32.gmra.mrb[38].mxu0 %vm64_vm5, %v7486_v26  ;;  %v5791_v30 = vpack.c.bf16 %v4836_v21, %v4834_v33 }
 0x1a0   :  { %v7501_v2 = vrot.slane %v827_v12, 6  ;;  %5776 = vmatpush1.bf16.msra.mxu1 %v5775_v57  ;;  %4731 = vmatprep.mubr.msk.f32.mxu1 %vm954_vm10, %v7489_v28  ;;  %v785_v31 = vpop.permute.xlu1 %784  ;;  %v4838_v12 = vld [vmem:[%s10353_s3 + $0x460] sm:$0xff] }
 0x1a1   :  { %4799 = vmatprep.mubr.msk.f32.mxu0 %vm954_vm10, %v7489_v28  ;;  %v800_v34 = vsel %vm794_vm8, %v783_v20, %v785_v31  ;;  %v830_v3 = vmax.f32 %v7341_v36, %v785_v31  ;;  %v787_v19 = vpop.permute.xlu0 %786  ;;  %5778 = vmatprep.subr.bf16.mxu1 %v5777_v61  ;;  %v4833_v36 = vld [vmem:[%s10353_s3 + $0x438] sm:$0xff]  ;;  %v4843_v31 = vld [vmem:[%s10353_s3 + $0x488] sm:$0xff] }
 0x1a2   :  { %v829_v13 = vmax.f32 %v7335_v62, %v800_v34  ;;  %v5785_v54 = vpack.c.bf16 %v4833_v36, %v4831_v40  ;;  %v4841_v20 = vld [vmem:[%s10353_s3 + $0x478] sm:$0xff]  ;;  %v5795_v34 = vpack.c.bf16 %v4840_v0, %v4838_v12  ;;  %v4846_v40 = vld [vmem:[%s10353_s3 + $0x4a0] sm:$0xff]  ;;  %v4848_v36 = vld [vmem:[%s10353_s3 + $0x4b0] sm:$0xff] }
 0x1a3   :  { %v870_v10 = vrot.slane %v830_v3, 6  ;;  %4733 = vmatmul.mubr.msk.f32.gmra.mrb[24].mxu1 %vm7386_vm11, %v7501_v2  ;;  %4801 = vmatmul.mubr.msk.f32.gmra.mrb[40].mxu0 %vm7386_vm11, %v7501_v2  ;;  %v5793_v58 = vpack.c.bf16 %v4841_v20, %v4839_v59 }
 0x1a4   :  { %v868_v15 = vrot.slane %v829_v13, 6  ;;  %5780 = vmatpush1.bf16.msra.mxu1 %v5779_v22  ;;  %v789_v62 = vpop.permute.xlu1 %788  ;;  %v4845_v22 = vld [vmem:[%s10353_s3 + $0x498] sm:$0xff]  ;;  %v5801_v13 = vpack.c.bf16 %v4849_v11, %v4847_v8 }
 0x1a5   :  { %v801_v46 = vsel %vm794_vm8, %v787_v19, %v789_v62  ;;  %v832_v17 = vmax.f32 %v7343_v53, %v789_v62  ;;  %v793_v24 = vpop.permute.xlu0 %792  ;;  %v7531_v48 = vsel %vm851_vm9, %v867_v16, %v870_v10  ;;  %5782 = vmatprep.subr.bf16.mxu1 %v5781_v6  ;;  %v5797_v3 = vpack.c.bf16 %v4845_v22, %v4843_v31  ;;  %v4842_v19 = vld [vmem:[%s10353_s3 + $0x480] sm:$0xff]  ;;  %v4844_v6 = vld [vmem:[%s10353_s3 + $0x490] sm:$0xff] }
 0x1a6   :  { %v831_v25 = vmax.f32 %v7338_v27, %v801_v46  ;;  %v834_v29 = vmax.f32 %v7353_v38, %v793_v24  ;;  %4734 = vmatprep.mubr.msk.f32.mxu1 %vm954_vm10, %v7531_v48  ;;  %4802 = vmatprep.mubr.msk.f32.mxu0 %vm954_vm10, %v7531_v48  ;;  %v7547_v53 = vsel %vm851_vm9, %v7501_v2, %v868_v15  ;;  %v4837_v27 = vld [vmem:[%s10353_s3 + $0x458] sm:$0xff]  ;;  %v4850_v46 = vld [vmem:[%s10353_s3 + $0x4c0] sm:$0xff] }
 0x1a7   :  { %v874_v9 = vrot.slane %v832_v17, 6  ;;  %1070 = vmatmul.mubr.f32.gmra.mrb[26].mxu1 %v7547_v53  ;;  %1238 = vmatmul.mubr.f32.gmra.mrb[42].mxu0 %v7547_v53  ;;  %v5789_v56 = vpack.c.bf16 %v4837_v27, %v4835_v51  ;;  %v5803_v62 = vpack.c.bf16 %v4848_v36, %v4846_v40  ;;  %v4852_v17 = vld [vmem:[%s10353_s3 + $0x4d0] sm:$0xff]  ;;  %v4859_v27 = vld [vmem:[%s10353_s3 + $0x508] sm:$0xff] }
 0x1a8   :  { %v872_v38 = vrot.slane %v831_v25, 6  ;;  %v878_v49 = vrot.slane %v834_v29, 6  ;;  %5784 = vmatpush1.bf16.msra.mxu1 %v5783_v44  ;;  %v791_v41 = vpop.permute.xlu1 %790  ;;  %v5807_v18 = vpack.c.bf16 %v4852_v17, %v4850_v46  ;;  %v4854_v25 = vld [vmem:[%s10353_s3 + $0x4e0] sm:$0xff]  ;;  %v4856_v29 = vld [vmem:[%s10353_s3 + $0x4f0] sm:$0xff] }
 0x1a9   :  { %v802_v43 = vsel %vm794_vm8, %v791_v41, %v793_v24  ;;  %v7559_v47 = vsel %vm851_vm9, %v870_v10, %v874_v9  ;;  %5786 = vmatprep.subr.bf16.mxu1 %v5785_v54  ;;  %v4851_v10 = vld [vmem:[%s10353_s3 + $0x4c8] sm:$0xff]  ;;  %v4857_v54 = vld [vmem:[%s10353_s3 + $0x4f8] sm:$0xff]  ;;  %v5811_v51 = vpack.c.bf16 %v4856_v29, %v4854_v25 }
 0x1aa   :  { %v833_v16 = vmax.f32 %v7359_v39, %v802_v43  ;;  %4735 = vmatprep.mubr.msk.f32.mxu1 %vm954_vm10, %v7559_v47  ;;  %4803 = vmatprep.mubr.msk.f32.mxu0 %vm954_vm10, %v7559_v47  ;;  %v7573_v5 = vsel %vm851_vm9, %v868_v15, %v872_v38  ;;  %v879_v57 = vsel %vm851_vm9, %v874_v9, %v878_v49  ;;  %v4853_v15 = vld [vmem:[%s10353_s3 + $0x4d8] sm:$0xff]  ;;  %v4855_v24 = vld [vmem:[%s10353_s3 + $0x4e8] sm:$0xff]  ;;  %v4858_v9 = vld [vmem:[%s10353_s3 + $0x500] sm:$0xff] }
 0x1ab   :  { %1076 = vmatmul.mubr.f32.gmra.mrb[28].mxu1 %v7573_v5  ;;  %1244 = vmatmul.mubr.f32.gmra.mrb[44].mxu0 %v7573_v5  ;;  %v7585_v39 = vsel %vm64_vm5, %v879_v57, 0.0  ;;  %v5805_v44 = vpack.c.bf16 %v4853_v15, %v4851_v10  ;;  %v5809_v4 = vpack.c.bf16 %v4857_v54, %v4855_v24 }
 0x1ac   :  { %v876_v61 = vrot.slane %v833_v16, 6  ;;  %5788 = vmatpush1.bf16.msra.mxu1 %v5787_v42  ;;  %4736 = vmatprep.mubr.msk.f32.mxu1 %vm954_vm10, %v7585_v39 }
 0x1ad   :  { %4804 = vmatprep.mubr.msk.f32.mxu0 %vm954_vm10, %v7585_v39  ;;  %5790 = vmatprep.subr.bf16.mxu1 %v5789_v56 }
 0x1ae   :  { %v877_v1 = vsel %vm851_vm9, %v872_v38, %v876_v61 }
 0x1af   :  { %4737 = vmatmul.mubr.msk.f32.gmra.mrb[30].mxu1 %vm64_vm5, %v877_v1  ;;  %4805 = vmatmul.mubr.msk.f32.gmra.mrb[46].mxu0 %vm64_vm5, %v877_v1 }
 0x1b0   :  { %5792 = vmatpush1.bf16.msra.mxu1 %v5791_v30  ;;  %4860 = vmatprep.mubr.msk.f32.mxu1 %vm954_vm10, %v7372_v55  ;;  %v5799_v55 = vpack.c.bf16 %v4844_v6, %v4842_v19 }
 0x1b1   :  { %5794 = vmatprep.subr.bf16.mxu1 %v5793_v58 }
 0x1b4   :  { %5796 = vmatpush1.bf16.msra.mxu1 %v5795_v34 }
 0x1b5   :  { %5798 = vmatprep.subr.bf16.mxu1 %v5797_v3 }
 0x1b8   :  { %5800 = vmatpush1.bf16.msra.mxu1 %v5799_v55 }
 0x1b9   :  { %5802 = vmatprep.subr.bf16.mxu1 %v5801_v13 }
 0x1bc   :  { %5804 = vmatpush1.bf16.msra.mxu1 %v5803_v62 }
 0x1bd   :  { %5806 = vmatprep.subr.bf16.mxu1 %v5805_v44 }
 0x1c0   :  { %5808 = vmatpush1.bf16.msra.mxu1 %v5807_v18 }
 0x1c1   :  { %5810 = vmatprep.subr.bf16.mxu1 %v5809_v4 }
 0x1c4   :  { %5812 = vmatpush1.bf16.msra.mxu1 %v5811_v51 }
 0x1c5   :  { %1363 = vmatprep.subr.mxu1 %v4859_v27 }
 0x1c8   :  { %1364 = vmatpush1.msra.mxu1 %v4858_v9 }
 0x1c9   :  { %4862 = vmatmul.mubr.msk.f32.vlgmr.msra.gmra.mrb[32].mxu1 %vm7386_vm11, %v7390_v63 }
 0x1ca   :  { %4863 = vmatprep.mubr.msk.f32.mxu1 %vm954_vm10, %v7416_v14 }
 0x1cd   :  { %1382 = vmatmul.mubr.f32.gmra.mrb[34].mxu1 %v7432_v32 }
 0x1ce   :  { %4864 = vmatprep.mubr.msk.f32.mxu1 %vm954_vm10, %v7444_v50 }
 0x1d1   :  { %1388 = vmatmul.mubr.f32.gmra.mrb[36].mxu1 %v7459_v45 }
 0x1d2   :  { %4865 = vmatprep.mubr.msk.f32.mxu1 %vm954_vm10, %v7471_v52 }
 0x1d5   :  { %4866 = vmatmul.mubr.msk.f32.gmra.mrb[38].mxu1 %vm64_vm5, %v7486_v26 }
 0x1d6   :  { %4867 = vmatprep.mubr.msk.f32.mxu1 %vm954_vm10, %v7489_v28 }
 0x1d9   :  { %4869 = vmatmul.mubr.msk.f32.gmra.mrb[40].mxu1 %vm7386_vm11, %v7501_v2 }
 0x1da   :  { %4870 = vmatprep.mubr.msk.f32.mxu1 %vm954_vm10, %v7531_v48 }
 0x1dd   :  { %1406 = vmatmul.mubr.f32.gmra.mrb[42].mxu1 %v7547_v53 }
 0x1de   :  { %4871 = vmatprep.mubr.msk.f32.mxu1 %vm954_vm10, %v7559_v47 }
 0x1e1   :  { %1412 = vmatmul.mubr.f32.gmra.mrb[44].mxu1 %v7573_v5 }
 0x1e2   :  { %4872 = vmatprep.mubr.msk.f32.mxu1 %vm954_vm10, %v7585_v39 }
 0x1e5   :  { %4873 = vmatmul.mubr.msk.f32.gmra.mrb[46].mxu1 %vm64_vm5, %v877_v1 }
 0x266   :  { %v1041_v63 = vpop.f32.mrb[16].mxu1  ;;  %v1209_v14 = vpop.f32.mrb[32].mxu0 }
 0x267   :  { %v1043_v32 = vpop.f32.mrb[17].mxu1  ;;  %v1211_v60 = vpop.f32.mrb[33].mxu0  ;;  %v1440_v52 = vrot.slane %v1209_v14, 2 }
 0x268   :  { %v1443_v48 = vrot.slane %v1211_v60, 2 }
 0x26a   :  { %v1047_v50 = vpop.f32.mrb[18].mxu1  ;;  %v1215_v45 = vpop.f32.mrb[34].mxu0 }
 0x26b   :  { %v1441_v26 = vrot.slane %v1215_v45, 2  ;;  %v1049_v28 = vpop.f32.mrb[19].mxu1  ;;  %v1217_v2 = vpop.f32.mrb[35].mxu0 }
 0x26c   :  { %v1444_v53 = vrot.slane %v1217_v2, 2 }
 0x26d   :  { %v1442_v38 = vsel %vm565_vm7, %v1440_v52, %v1441_v26 }
 0x26e   :  { %v7684_v49 = vadd.f32 %v1442_v38, %v1041_v63  ;;  %v1445_v41 = vsel %vm565_vm7, %v1443_v48, %v1444_v53  ;;  %v1053_v42 = vpop.f32.mrb[20].mxu1  ;;  %v1221_v43 = vpop.f32.mrb[36].mxu0 }
 0x26f   :  { %v7687_v47 = vadd.f32 %v1445_v41, %v1043_v32  ;;  %v1446_v56 = vrot.slane %v1221_v43, 2  ;;  %v1055_v33 = vpop.f32.mrb[21].mxu1  ;;  %v1223_v21 = vpop.f32.mrb[37].mxu0 }
 0x270   :  { %v1448_v16 = vrot.slane %v1223_v21, 2  ;;  %v1576_v21 = vld [vmem:[%s10354_s4] sm:$0x3]  ;;  %s6603_s4 = smov 112  }
 0x271   :  { %v1447_v5 = vsel %vm565_vm7, %v1441_v26, %v1446_v56 }
 0x272   :  { %v7690_v57 = vadd.f32 %v1447_v5, %v1047_v50  ;;  %v1449_v59 = vsel %vm565_vm7, %v1444_v53, %v1448_v16  ;;  %v1059_v20 = vpop.f32.mrb[22].mxu1  ;;  %v1227_v39 = vpop.f32.mrb[38].mxu0 }
 0x273   :  { %v7693_v61 = vadd.f32 %v1449_v59, %v1049_v28  ;;  %v1450_v30 = vrot.slane %v1227_v39, 2  ;;  %v1061_v58 = vpop.f32.mrb[23].mxu1  ;;  %v1229_v12 = vpop.f32.mrb[39].mxu0 }
 0x274   :  { %v1452_v0 = vrot.slane %v1229_v12, 2 }
 0x275   :  { %v1451_v1 = vsel %vm565_vm7, %v1446_v56, %v1450_v30  ;;  %v7696_v31 = vadd.f32 %v1450_v30, %v1059_v20 }
 0x276   :  { %v7698_v22 = vadd.f32 %v1451_v1, %v1053_v42  ;;  %v1453_v34 = vsel %vm565_vm7, %v1448_v16, %v1452_v0  ;;  %v7701_v3 = vadd.f32 %v1452_v0, %v1061_v58  ;;  %v1065_v19 = vpop.f32.mrb[24].mxu1  ;;  %v1233_v6 = vpop.f32.mrb[40].mxu0  ;;  %v7732_v58 = vrot.slane %v1576_v21, %v630_v35 }
 0x277   :  { %v7703_v8 = vadd.f32 %v1453_v34, %v1055_v33  ;;  %v1067_v11 = vpop.f32.mrb[25].mxu1  ;;  %v1235_v55 = vpop.f32.mrb[41].mxu0  ;;  %v1454_v36 = vrot.slane %v1233_v6, 2  ;;  %v7737_v0 = vrot.slane %v1576_v21, %v634_v37 }
 0x278   :  { %v1457_v44 = vrot.slane %v1235_v55, 2 }
 0x27a   :  { %v1071_v13 = vpop.f32.mrb[26].mxu1  ;;  %v1239_v40 = vpop.f32.mrb[42].mxu0 }
 0x27b   :  { %v1455_v10 = vrot.slane %v1239_v40, 2  ;;  %v1073_v15 = vpop.f32.mrb[27].mxu1  ;;  %v1241_v62 = vpop.f32.mrb[43].mxu0 }
 0x27c   :  { %v1458_v46 = vrot.slane %v1241_v62, 2 }
 0x27d   :  { %v1456_v17 = vsel %vm565_vm7, %v1454_v36, %v1455_v10 }
 0x27e   :  { %v7706_v24 = vadd.f32 %v1456_v17, %v1065_v19  ;;  %v1459_v54 = vsel %vm565_vm7, %v1457_v44, %v1458_v46  ;;  %v1077_v18 = vpop.f32.mrb[28].mxu1  ;;  %v1245_v4 = vpop.f32.mrb[44].mxu0 }
 0x27f   :  { %v7709_v25 = vadd.f32 %v1459_v54, %v1067_v11  ;;  %v1460_v29 = vrot.slane %v1245_v4, 2  ;;  %v1079_v51 = vpop.f32.mrb[29].mxu1  ;;  %v1247_v27 = vpop.f32.mrb[45].mxu0 }
 0x280   :  { %v1462_v9 = vrot.slane %v1247_v27, 2 }
 0x281   :  { %v1461_v63 = vsel %vm565_vm7, %v1455_v10, %v1460_v29 }
 0x282   :  { %v7712_v14 = vadd.f32 %v1461_v63, %v1071_v13  ;;  %v1463_v32 = vsel %vm565_vm7, %v1458_v46, %v1462_v9  ;;  %v1083_v60 = vpop.f32.mrb[30].mxu1  ;;  %v1251_v50 = vpop.f32.mrb[46].mxu0 }
 0x283   :  { %v7715_v45 = vadd.f32 %v1463_v32, %v1073_v15  ;;  %v1464_v52 = vrot.slane %v1251_v50, 2  ;;  %v1085_v26 = vpop.f32.mrb[31].mxu1  ;;  %v1253_v28 = vpop.f32.mrb[47].mxu0 }
 0x284   :  { %v1466_v2 = vrot.slane %v1253_v28, 2 }
 0x285   :  { %v1465_v48 = vsel %vm565_vm7, %v1460_v29, %v1464_v52  ;;  %v7718_v53 = vadd.f32 %v1464_v52, %v1083_v60 }
 0x286   :  { %v7720_v38 = vadd.f32 %v1465_v48, %v1077_v18  ;;  %v1467_v41 = vsel %vm565_vm7, %v1462_v9, %v1466_v2  ;;  %v7723_v42 = vadd.f32 %v1466_v2, %v1085_v26 }
 0x287   :  { %v7725_v43 = vadd.f32 %v1467_v41, %v1079_v51 }
 0x29c   :  { %v1377_v56 = vpop.f32.mrb[32].mxu1 }
 0x29d   :  { %v1379_v33 = vpop.f32.mrb[33].mxu1  ;;  %v1516_v5 = vrot.slane %v1377_v56, 4 }
 0x29e   :  { %v1519_v39 = vrot.slane %v1379_v33, 4 }
 0x2a0   :  { %v1383_v16 = vpop.f32.mrb[34].mxu1 }
 0x2a1   :  { %v1517_v59 = vrot.slane %v1383_v16, 4  ;;  %v1385_v20 = vpop.f32.mrb[35].mxu1 }
 0x2a2   :  { %v1520_v30 = vrot.slane %v1385_v20, 4 }
 0x2a3   :  { %v1518_v12 = vsel %vm96_vm0, %v1516_v5, %v1517_v59 }
 0x2a4   :  { %v1560_v1 = vadd.f32 %v1518_v12, %v7684_v49  ;;  %v1521_v34 = vsel %vm96_vm0, %v1519_v39, %v1520_v30  ;;  %v1389_v19 = vpop.f32.mrb[36].mxu1 }
 0x2a5   :  { %v1561_v6 = vadd.f32 %v1521_v34, %v7687_v47  ;;  %v1522_v11 = vrot.slane %v1389_v19, 4  ;;  %v1391_v55 = vpop.f32.mrb[37].mxu1 }
 0x2a6   :  { %v1524_v13 = vrot.slane %v1391_v55, 4  ;;  %v1588_v40 = vadd.f32 %v7732_v58, %v1560_v1 }
 0x2a7   :  { %v1523_v35 = vsel %vm96_vm0, %v1517_v59, %v1522_v11  ;;  %v1589_v36 = vadd.f32 %v7737_v0, %v1561_v6 }
 0x2a8   :  { %v1562_v10 = vadd.f32 %v1523_v35, %v7690_v57  ;;  %v1525_v37 = vsel %vm96_vm0, %v1520_v30, %v1524_v13  ;;  %v1395_v15 = vpop.f32.mrb[38].mxu1  ;;  %v1604_v46 = vmax.f32 %v1588_v40, 0.0 }
 0x2a9   :  { %v1563_v49 = vadd.f32 %v1525_v37, %v7693_v61  ;;  %v1526_v62 = vrot.slane %v1395_v15, 4  ;;  %v1397_v44 = vpop.f32.mrb[39].mxu1  ;;  %v1605_v54 = vmax.f32 %v1589_v36, 0.0 }
 0x2aa   :  { %v1590_v47 = vadd.f32 %v7732_v58, %v1562_v10  ;;  %v1528_v17 = vrot.slane %v1397_v44, 4  ;;  %v1636_v52 = vrot.slane %v1604_v46, 2 }
 0x2ab   :  { %v1591_v18 = vadd.f32 %v7737_v0, %v1563_v49  ;;  %v1527_v4 = vsel %vm96_vm0, %v1522_v11, %v1526_v62  ;;  %v1566_v29 = vadd.f32 %v1526_v62, %v7696_v31  ;;  %v1639_v2 = vrot.slane %v1605_v54, 2 }
 0x2ac   :  { %v1606_v51 = vmax.f32 %v1590_v47, 0.0  ;;  %v1564_v57 = vadd.f32 %v1527_v4, %v7698_v22  ;;  %v1529_v27 = vsel %vm96_vm0, %v1524_v13, %v1528_v17  ;;  %v1567_v61 = vadd.f32 %v1528_v17, %v7701_v3  ;;  %v1401_v9 = vpop.f32.mrb[40].mxu1 }
 0x2ad   :  { %v1607_v63 = vmax.f32 %v1591_v18, 0.0  ;;  %v1594_v32 = vadd.f32 %v7732_v58, %v1566_v29  ;;  %v1565_v60 = vadd.f32 %v1529_v27, %v7703_v8  ;;  %v1403_v50 = vpop.f32.mrb[41].mxu1  ;;  %v1530_v41 = vrot.slane %v1401_v9, 4 }
 0x2ae   :  { %v1592_v26 = vadd.f32 %v7732_v58, %v1564_v57  ;;  %v1595_v28 = vadd.f32 %v7737_v0, %v1567_v61  ;;  %v1637_v31 = vrot.slane %v1606_v51, 2  ;;  %v1533_v21 = vrot.slane %v1403_v50, 4 }
 0x2af   :  { %v1610_v48 = vmax.f32 %v1594_v32, 0.0  ;;  %v1593_v22 = vadd.f32 %v7737_v0, %v1565_v60  ;;  %v1640_v56 = vrot.slane %v1607_v63, 2 }
 0x2b0   :  { %v1608_v3 = vmax.f32 %v1592_v26, 0.0  ;;  %v1611_v33 = vmax.f32 %v1595_v28, 0.0  ;;  %v1407_v16 = vpop.f32.mrb[42].mxu1  ;;  %v1638_v5 = vsel %vm565_vm7, %v1636_v52, %v1637_v31 }
 0x2b1   :  { %v1646_v8 = vrot.slane %v1610_v48, 2  ;;  %v1609_v59 = vmax.f32 %v1593_v22, 0.0  ;;  %v1531_v20 = vrot.slane %v1407_v16, 4  ;;  %v1409_v39 = vpop.f32.mrb[43].mxu1  ;;  %v7761_v30 = vmax.f32 %v1604_v46, %v1638_v5 }
 0x2b2   :  { %v1648_v12 = vrot.slane %v1611_v33, 2  ;;  %v1534_v1 = vrot.slane %v1409_v39, 4  ;;  %v1641_v34 = vsel %vm565_vm7, %v1639_v2, %v1640_v56  ;;  %v1642_v19 = vrot.slane %v1608_v3, 2 }
 0x2b3   :  { %v1532_v6 = vsel %vm96_vm0, %v1530_v41, %v1531_v20  ;;  %1712 = vrot.lane.b32.xlu0 %v7761_v30, %s6603_s4  ;;  %v7767_v11 = vmax.f32 %v1605_v54, %v1641_v34  ;;  %v1644_v55 = vrot.slane %v1609_v59, 2  ;;  %v7769_v13 = vmax.f32 %v1610_v48, %v1646_v8 }
 0x2b4   :  { %v1568_v40 = vadd.f32 %v1532_v6, %v7706_v24  ;;  %v1535_v35 = vsel %vm96_vm0, %v1533_v21, %v1534_v1  ;;  %v1413_v36 = vpop.f32.mrb[44].mxu1  ;;  %v1643_v10 = vsel %vm565_vm7, %v1637_v31, %v1642_v19  ;;  %v1647_v37 = vsel %vm565_vm7, %v1642_v19, %v1646_v8 }
 0x2b5   :  { %v1569_v15 = vadd.f32 %v1535_v35, %v7709_v25  ;;  %1714 = vrot.lane.b32.xlu1 %v7767_v11, %s6603_s4  ;;  %v1536_v49 = vrot.slane %v1413_v36, 4  ;;  %v1415_v62 = vpop.f32.mrb[45].mxu1  ;;  %v1645_v44 = vsel %vm565_vm7, %v1640_v56, %v1644_v55  ;;  %v7779_v46 = vmax.f32 %v1606_v51, %v1643_v10 }
 0x2b6   :  { %v1538_v47 = vrot.slane %v1415_v62, 4  ;;  %v1596_v24 = vadd.f32 %v7732_v58, %v1568_v40  ;;  %v7782_v17 = vmax.f32 %v1607_v63, %v1645_v44  ;;  %v7784_v54 = vmax.f32 %v1608_v3, %v1647_v37 }
 0x2b7   :  { %v1537_v18 = vsel %vm96_vm0, %v1531_v20, %v1536_v49  ;;  %v1597_v25 = vadd.f32 %v7737_v0, %v1569_v15  ;;  %v1649_v4 = vsel %vm565_vm7, %v1644_v55, %v1648_v12  ;;  %v7789_v29 = vmax.f32 %v1611_v33, %v1648_v12 }
 0x2b8   :  { %v1570_v57 = vadd.f32 %v1537_v18, %v7712_v14  ;;  %v1539_v51 = vsel %vm96_vm0, %v1534_v1, %v1538_v47  ;;  %v1419_v27 = vpop.f32.mrb[46].mxu1  ;;  %v7793_v61 = vmax.f32 %v1609_v59, %v1649_v4  ;;  %v1612_v52 = vmax.f32 %v1596_v24, 0.0  ;;  %v2454_v24 = vld [vmem:[%s10355_s5 + $0x88] sm:$0xff]  ;;  %v2437_v18 = vld [vmem:[%s10355_s5] sm:$0xff] }
 0x2b9   :  { %v1571_v9 = vadd.f32 %v1539_v51, %v7715_v45  ;;  %v1540_v63 = vrot.slane %v1419_v27, 4  ;;  %v1421_v32 = vpop.f32.mrb[47].mxu1  ;;  %v1613_v14 = vmax.f32 %v1597_v25, 0.0  ;;  %v2438_v4 = vld [vmem:[%s10355_s5 + $0x8] sm:$0xff]  ;;  %v2456_v51 = vld [vmem:[%s10355_s5 + $0x98] sm:$0xff] }
 0x2ba   :  { %v1598_v60 = vadd.f32 %v7732_v58, %v1570_v57  ;;  %v1542_v50 = vrot.slane %v1421_v32, 4  ;;  %v1650_v16 = vrot.slane %v1612_v52, 2  ;;  %v2455_v57 = vld [vmem:[%s10355_s5 + $0x90] sm:$0xff]  ;;  %v5815_v27 = vpack.c.bf16 %v2438_v4, %v2437_v18  ;;  %v2440_v32 = vld [vmem:[%s10355_s5 + $0x18] sm:$0xff] }
 0x2bb   :  { %v1599_v26 = vadd.f32 %v7737_v0, %v1571_v9  ;;  %v1541_v28 = vsel %vm96_vm0, %v1536_v49, %v1540_v63  ;;  %v1574_v31 = vadd.f32 %v1540_v63, %v7718_v53  ;;  %v1653_v59 = vrot.slane %v1613_v14, 2  ;;  %v2439_v63 = vld [vmem:[%s10355_s5 + $0x10] sm:$0xff] }
 0x2bc   :  { %v1614_v2 = vmax.f32 %v1598_v60, 0.0  ;;  %v1572_v48 = vadd.f32 %v1541_v28, %v7720_v38  ;;  %v1543_v22 = vsel %vm96_vm0, %v1538_v47, %v1542_v50  ;;  %v1575_v45 = vadd.f32 %v1542_v50, %v7723_v42  ;;  %v2453_v47 = vld [vmem:[%s10355_s5 + $0x80] sm:$0xff]  ;;  %v2486_v50 = vld [vmem:[%s10355_s5 + $0x188] sm:$0xff]  ;;  %v2475_v18 = vld [vmem:[%s10355_s5 + $0x130] sm:$0xff] }
 0x2bd   :  { %v1615_v41 = vmax.f32 %v1599_v26, 0.0  ;;  %v1602_v56 = vadd.f32 %v7732_v58, %v1574_v31  ;;  %v1573_v3 = vadd.f32 %v1543_v22, %v7725_v43  ;;  %v5813_v25 = vpack.c.bf16 %v2454_v24, %v2453_v47  ;;  %v2485_v60 = vld [vmem:[%s10355_s5 + $0x180] sm:$0xff]  ;;  %v2470_v26 = vld [vmem:[%s10355_s5 + $0x108] sm:$0xff] }
 0x2be   :  { %v1600_v33 = vadd.f32 %v7732_v58, %v1572_v48  ;;  %v1603_v21 = vadd.f32 %v7737_v0, %v1575_v45  ;;  %v1651_v5 = vrot.slane %v1614_v2, 2  ;;  %v5817_v9 = vpack.c.bf16 %v2456_v51, %v2455_v57  ;;  %v2458_v48 = vld [vmem:[%s10355_s5 + $0xa8] sm:$0xff]  ;;  %v2441_v22 = vld [vmem:[%s10355_s5 + $0x20] sm:$0xff] }
 0x2bf   :  { %v1618_v53 = vmax.f32 %v1602_v56, 0.0  ;;  %v1601_v8 = vadd.f32 %v7737_v0, %v1573_v3  ;;  %v1654_v38 = vrot.slane %v1615_v41, 2  ;;  %5814 = vmatprep.subr.bf16.mxu0 %v5813_v25  ;;  %v5819_v28 = vpack.c.bf16 %v2440_v32, %v2439_v63  ;;  %v2487_v56 = vld [vmem:[%s10355_s5 + $0x190] sm:$0xff]  ;;  %v2488_v3 = vld [vmem:[%s10355_s5 + $0x198] sm:$0xff]  ;;  %v2445_v47 = vld [vmem:[%s10355_s5 + $0x40] sm:$0xff] }
 0x2c0   :  { %v1616_v20 = vmax.f32 %v1600_v33, 0.0  ;;  %v1619_v39 = vmax.f32 %v1603_v21, 0.0  ;;  %v1652_v42 = vsel %vm565_vm7, %v1650_v16, %v1651_v5  ;;  %5816 = vmatpush3.bf16.msra.mxu0 %v5815_v27  ;;  %v5845_v31 = vpack.c.bf16 %v2486_v50, %v2485_v60  ;;  %v2471_v21 = vld [vmem:[%s10355_s5 + $0x110] sm:$0xff]  ;;  %v2472_v16 = vld [vmem:[%s10355_s5 + $0x118] sm:$0xff]  ;;  %v2446_v57 = vld [vmem:[%s10355_s5 + $0x48] sm:$0xff] }
 0x2c1   :  { %v1660_v12 = vrot.slane %v1618_v53, 2  ;;  %v1617_v1 = vmax.f32 %v1601_v8, 0.0  ;;  %v7809_v34 = vmax.f32 %v1612_v52, %v1652_v42  ;;  %v1655_v43 = vsel %vm565_vm7, %v1653_v59, %v1654_v38  ;;  %v2469_v52 = vld [vmem:[%s10355_s5 + $0x100] sm:$0xff]  ;;  %5818 = vmatprep.subr.bf16.mxu0 %v5817_v9  ;;  %v2460_v8 = vld [vmem:[%s10355_s5 + $0xb8] sm:$0xff]  ;;  %v2494_v27 = vld [vmem:[%s10355_s5 + $0x1c8] sm:$0xff] }
 0x2c2   :  { %v1662_v58 = vrot.slane %v1619_v39, 2  ;;  %v7812_v19 = vmax.f32 %v1613_v14, %v1655_v43  ;;  %v1656_v6 = vrot.slane %v1616_v20, 2  ;;  %v5847_v14 = vpack.c.bf16 %v2470_v26, %v2469_v52  ;;  %5846 = vmatprep.subr.bf16.mxu1 %v5845_v31  ;;  %v2476_v25 = vld [vmem:[%s10355_s5 + $0x138] sm:$0xff]  ;;  %v2493_v51 = vld [vmem:[%s10355_s5 + $0x1c0] sm:$0xff]  ;;  %v2463_v9 = vld [vmem:[%s10355_s5 + $0xd0] sm:$0xff] }
 0x2c3   :  { %1728 = vrot.lane.b32.xlu0 %v7809_v34, %s6603_s4  ;;  %v1658_v0 = vrot.slane %v1617_v1, 2  ;;  %v7816_v55 = vmax.f32 %v1618_v53, %v1660_v12  ;;  %v5849_v33 = vpack.c.bf16 %v2488_v3, %v2487_v56  ;;  %v5851_v53 = vpack.c.bf16 %v2472_v16, %v2471_v21  ;;  %v2464_v63 = vld [vmem:[%s10355_s5 + $0xd8] sm:$0xff]  ;;  %v2447_v50 = vld [vmem:[%s10355_s5 + $0x50] sm:$0xff]  ;;  %v2477_v26 = vld [vmem:[%s10355_s5 + $0x140] sm:$0xff] }
 0x2c4   :  { %1730 = vrot.lane.b32.xlu1 %v7812_v19, %s6603_s4  ;;  %v1657_v40 = vsel %vm565_vm7, %v1651_v5, %v1656_v6  ;;  %v1661_v35 = vsel %vm565_vm7, %v1656_v6, %v1660_v12  ;;  %v7822_v36 = vmax.f32 %v1619_v39, %v1662_v58  ;;  %v2459_v5 = vld [vmem:[%s10355_s5 + $0xb0] sm:$0xff]  ;;  %5848 = vmatpush3.bf16.msra.mxu1 %v5847_v14  ;;  %v2473_v39 = vld [vmem:[%s10355_s5 + $0x120] sm:$0xff]  ;;  %v2448_v14 = vld [vmem:[%s10355_s5 + $0x58] sm:$0xff]  ;;  %vm2247_vm0 = vcmask 130048  }
 0x2c5   :  { %v1659_v10 = vsel %vm565_vm7, %v1654_v38, %v1658_v0  ;;  %v7825_v37 = vmax.f32 %v1614_v2, %v1657_v40  ;;  %v7827_v15 = vmax.f32 %v1616_v20, %v1661_v35  ;;  %v1663_v49 = vsel %vm565_vm7, %v1658_v0, %v1662_v58  ;;  %v2457_v2 = vld [vmem:[%s10355_s5 + $0xa0] sm:$0xff]  ;;  %5820 = vmatpush3.bf16.msra.mxu0 %v5819_v28  ;;  %v2490_v20 = vld [vmem:[%s10355_s5 + $0x1a8] sm:$0xff]  ;;  %v2443_v12 = vld [vmem:[%s10355_s5 + $0x30] sm:$0xff] }
 0x2c6   :  { %v7830_v62 = vmax.f32 %v1615_v41, %v1659_v10  ;;  %v7832_v44 = vmax.f32 %v1617_v1, %v1663_v49  ;;  %v5821_v45 = vpack.c.bf16 %v2458_v48, %v2457_v2  ;;  %v2442_v41 = vld [vmem:[%s10355_s5 + $0x28] sm:$0xff]  ;;  %5850 = vmatprep.subr.bf16.mxu1 %v5849_v33  ;;  %v2489_v38 = vld [vmem:[%s10355_s5 + $0x1a0] sm:$0xff]  ;;  %v5825_v42 = vpack.c.bf16 %v2460_v8, %v2459_v5  ;;  %v2444_v1 = vld [vmem:[%s10355_s5 + $0x38] sm:$0xff] }
 0x2c7   :  { %v5823_v59 = vpack.c.bf16 %v2442_v41, %v2441_v22  ;;  %v5853_v43 = vpack.c.bf16 %v2490_v20, %v2489_v38  ;;  %v2474_v58 = vld [vmem:[%s10355_s5 + $0x128] sm:$0xff]  ;;  %v2461_v6 = vld [vmem:[%s10355_s5 + $0xc0] sm:$0xff]  ;;  %v2491_v40 = vld [vmem:[%s10355_s5 + $0x1b0] sm:$0xff]  ;;  %v5827_v49 = vpack.c.bf16 %v2444_v1, %v2443_v12  ;;  %v5859_v32 = vpack.c.bf16 %v2476_v25, %v2475_v18 }
 0x2c8   :  { %5822 = vmatprep.subr.bf16.mxu0 %v5821_v45  ;;  %v2462_v0 = vld [vmem:[%s10355_s5 + $0xc8] sm:$0xff]  ;;  %5852 = vmatpush3.bf16.msra.mxu1 %v5851_v53  ;;  %v5855_v35 = vpack.c.bf16 %v2474_v58, %v2473_v39  ;;  %v2492_v10 = vld [vmem:[%s10355_s5 + $0x1b8] sm:$0xff]  ;;  %v5831_v60 = vpack.c.bf16 %v2446_v57, %v2445_v47  ;;  %v5861_v52 = vpack.c.bf16 %v2494_v27, %v2493_v51  ;;  %v2495_v2 = vld [vmem:[%s10355_s5 + $0x1d0] sm:$0xff] }
 0x2c9   :  { %5824 = vmatpush3.bf16.msra.mxu0 %v5823_v59  ;;  %5854 = vmatprep.subr.bf16.mxu1 %v5853_v43  ;;  %v5857_v24 = vpack.c.bf16 %v2492_v10, %v2491_v40  ;;  %v5829_v4 = vpack.c.bf16 %v2462_v0, %v2461_v6  ;;  %v2478_v28 = vld [vmem:[%s10355_s5 + $0x148] sm:$0xff]  ;;  %v5833_v31 = vpack.c.bf16 %v2464_v63, %v2463_v9  ;;  %v2496_v48 = vld [vmem:[%s10355_s5 + $0x1d8] sm:$0xff]  ;;  %v2465_v22 = vld [vmem:[%s10355_s5 + $0xe0] sm:$0xff]  ;;  %v6604_v43 = vmov 1983009808  }
 0x2ca   :  { %5826 = vmatprep.subr.bf16.mxu0 %v5825_v42  ;;  %v2466_v45 = vld [vmem:[%s10355_s5 + $0xe8] sm:$0xff]  ;;  %v5863_v41 = vpack.c.bf16 %v2478_v28, %v2477_v26  ;;  %v5835_v56 = vpack.c.bf16 %v2448_v14, %v2447_v50  ;;  %v5865_v3 = vpack.c.bf16 %v2496_v48, %v2495_v2  ;;  %v2479_v33 = vld [vmem:[%s10355_s5 + $0x150] sm:$0xff]  ;;  %v2480_v21 = vld [vmem:[%s10355_s5 + $0x158] sm:$0xff]  ;;  %v1783_v58 = vunpack.c.l.s4 %v6604_v43 }
 0x2cb   :  { %v5837_v16 = vpack.c.bf16 %v2466_v45, %v2465_v22  ;;  %v2449_v5 = vld [vmem:[%s10355_s5 + $0x60] sm:$0xff]  ;;  %v2450_v53 = vld [vmem:[%s10355_s5 + $0x68] sm:$0xff]  ;;  %v2467_v8 = vld [vmem:[%s10355_s5 + $0xf0] sm:$0xff]  ;;  %v5867_v38 = vpack.c.bf16 %v2480_v21, %v2479_v33 }
 0x2cc   :  { %5856 = vmatpush3.bf16.msra.mxu1 %v5855_v35  ;;  %v2468_v59 = vld [vmem:[%s10355_s5 + $0xf8] sm:$0xff]  ;;  %v5839_v20 = vpack.c.bf16 %v2450_v53, %v2449_v5  ;;  %v2451_v42 = vld [vmem:[%s10355_s5 + $0x70] sm:$0xff]  ;;  %v1784_v40 = vunpack.c.0.s8 %v1783_v58  ;;  %v6605_v35 = vmov 1934713408   ;;  %v2497_v47 = vld [vmem:[%s10355_s5 + $0x1e0] sm:$0xff] }
 0x2cd   :  { %5828 = vmatpush3.bf16.msra.mxu0 %v5827_v49  ;;  %5858 = vmatprep.subr.bf16.mxu1 %v5857_v24  ;;  %v5841_v39 = vpack.c.bf16 %v2468_v59, %v2467_v8  ;;  %v2452_v12 = vld [vmem:[%s10355_s5 + $0x78] sm:$0xff]  ;;  %v1814_v10 = vunpack.c.l.s4 %v6605_v35  ;;  %v2498_v24 = vld [vmem:[%s10355_s5 + $0x1e8] sm:$0xff]  ;;  %v2481_v25 = vld [vmem:[%s10355_s5 + $0x160] sm:$0xff] }
 0x2ce   :  { %5830 = vmatprep.subr.bf16.mxu0 %v5829_v4  ;;  %v5843_v1 = vpack.c.bf16 %v2452_v12, %v2451_v42  ;;  %v5869_v18 = vpack.c.bf16 %v2498_v24, %v2497_v47  ;;  %v2482_v4 = vld [vmem:[%s10355_s5 + $0x168] sm:$0xff]  ;;  %v8016_v57 = vsub.s32 %v1784_v40, %v7147_v23  ;;  %v2500_v14 = vld [vmem:[%s10355_s5 + $0x1f8] sm:$0xff]  ;;  %v2483_v48 = vld [vmem:[%s10355_s5 + $0x170] sm:$0xff] }
 0x2cf   :  { %v1815_v51 = vunpack.c.0.s8 %v1814_v10  ;;  %v5871_v63 = vpack.c.bf16 %v2482_v4, %v2481_v25  ;;  %v2550_v53 = vld [vmem:[%s10355_s5 + $0x388] sm:$0xff] }
 0x2d0   :  { %5860 = vmatpush3.bf16.msra.mxu1 %v5859_v32  ;;  %v2517_v32 = vld [vmem:[%s10355_s5 + $0x280] sm:$0xff] }
 0x2d1   :  { %5832 = vmatpush3.bf16.msra.mxu0 %v5831_v60  ;;  %5862 = vmatprep.subr.bf16.mxu1 %v5861_v52  ;;  %v2518_v60 = vld [vmem:[%s10355_s5 + $0x288] sm:$0xff]  ;;  %v8042_v22 = vsub.s32 %v1815_v51, %v7147_v23  ;;  %v2549_v23 = vld [vmem:[%s10355_s5 + $0x380] sm:$0xff] }
 0x2d2   :  { %5834 = vmatprep.subr.bf16.mxu0 %v5833_v31  ;;  %v5877_v26 = vpack.c.bf16 %v2518_v60, %v2517_v32 }
 0x2d4   :  { %5864 = vmatpush3.bf16.msra.mxu1 %v5863_v41 }
 0x2d5   :  { %5836 = vmatpush3.bf16.msra.mxu0 %v5835_v56  ;;  %5866 = vmatprep.subr.bf16.mxu1 %v5865_v3 }
 0x2d6   :  { %5838 = vmatprep.subr.bf16.mxu0 %v5837_v16 }
 0x2d8   :  { %5868 = vmatpush3.bf16.msra.mxu1 %v5867_v38  ;;  %v5909_v38 = vpack.c.bf16 %v2550_v53, %v2549_v23  ;;  %v2533_v23 = vld [vmem:[%s10355_s5 + $0x300] sm:$0xff]  ;;  %v2534_v53 = vld [vmem:[%s10355_s5 + $0x308] sm:$0xff] }
 0x2d9   :  { %5840 = vmatpush3.bf16.msra.mxu0 %v5839_v20  ;;  %5870 = vmatprep.subr.bf16.mxu1 %v5869_v18 }
 0x2da   :  { %5842 = vmatprep.subr.bf16.mxu0 %v5841_v39 }
 0x2dc   :  { %5872 = vmatpush3.bf16.msra.mxu1 %v5871_v63 }
 0x2dd   :  { %5844 = vmatpush3.bf16.msra.mxu0 %v5843_v1 }
 0x2de   :  { %5878 = vmatprep.subr.bf16.mxu0 %v5877_v26 }
 0x325   :  { %v1713_v6 = vpop.permute.xlu0 %1712 }
 0x327   :  { %v1715_v0 = vpop.permute.xlu1 %1714 }
 0x328   :  { %v1745_v49 = vsel %vm1744_vm12, %v1713_v6, %v1715_v0  ;;  %v1770_v27 = vmax.f32 %v7767_v11, %v1715_v0  ;;  %v2499_v11 = vld [vmem:[%s10355_s5 + $0x1f0] sm:$0xff] }
 0x329   :  { %v1769_v50 = vmax.f32 %v7761_v30, %v1745_v49  ;;  %v5873_v30 = vpack.c.bf16 %v2500_v14, %v2499_v11  ;;  %v2501_v14 = vld [vmem:[%s10355_s5 + $0x200] sm:$0xff] }
 0x32a   :  { %v1997_v45 = vrot.slane %v1770_v27, %v8016_v57  ;;  %v1990_v39 = vcombine.high %v1770_v27, %v6600_v7 }
 0x32b   :  { %5874 = vmatprep.subr.bf16.mxu1 %v5873_v30  ;;  %v1781_v20 = vcombine.high %v1769_v50, %v6600_v7  ;;  %v2519_v30 = vld [vmem:[%s10355_s5 + $0x290] sm:$0xff] }
 0x32c   :  { %v2004_v47 = vrot.slane %v1990_v39, %v8016_v57  ;;  %v2551_v39 = vld [vmem:[%s10355_s5 + $0x390] sm:$0xff] }
 0x32d   :  { %v1795_v49 = vrot.slane %v1781_v20, %v8016_v57 }
 0x335   :  { %v1729_v9 = vpop.permute.xlu0 %1728 }
 0x336   :  { %v1731_v52 = vpop.permute.xlu1 %1730 }
 0x337   :  { %v1749_v28 = vsel %vm1744_vm12, %v1729_v9, %v1731_v52  ;;  %v1776_v31 = vmax.f32 %v7812_v19, %v1731_v52  ;;  %v2484_v19 = vld [vmem:[%s10355_s5 + $0x178] sm:$0xff] }
 0x338   :  { %v1775_v2 = vmax.f32 %v7809_v34, %v1749_v28  ;;  %v5875_v56 = vpack.c.bf16 %v2484_v19, %v2483_v48  ;;  %v1788_v34 = vrot.slane %v1769_v50, %v8016_v57  ;;  %v2520_v48 = vld [vmem:[%s10355_s5 + $0x298] sm:$0xff] }
 0x339   :  { %v2012_v41 = vrot.slane %v1776_v31, %v8016_v57  ;;  %v2005_v21 = vcombine.high %v1776_v31, %v6600_v7 }
 0x33a   :  { %v1803_v3 = vrot.slane %v1775_v2, %v8016_v57  ;;  %v1796_v33 = vcombine.high %v1775_v2, %v6600_v7  ;;  %5876 = vmatpush3.bf16.msra.mxu1 %v5875_v56  ;;  %v2502_v2 = vld [vmem:[%s10355_s5 + $0x208] sm:$0xff] }
 0x33b   :  { %v2020_v16 = vcombine.low %v1997_v45, %v2012_v41  ;;  %v2021_v5 = vcombine.high %v1997_v45, %v2012_v41  ;;  %5910 = vmatprep.subr.bf16.mxu1 %v5909_v38  ;;  %v2019_v6 = vrot.slane %v2005_v21, %v8016_v57  ;;  %v5879_v41 = vpack.c.bf16 %v2502_v2, %v2501_v14  ;;  %v2521_v21 = vld [vmem:[%s10355_s5 + $0x2a0] sm:$0xff]  ;;  %v2538_v2 = vld [vmem:[%s10355_s5 + $0x328] sm:$0xff] }
 0x33c   :  { %v1811_v8 = vcombine.low %v1788_v34, %v1803_v3  ;;  %v1812_v59 = vcombine.high %v1788_v34, %v1803_v3  ;;  %v1810_v58 = vrot.slane %v1796_v33, %v8016_v57  ;;  %v5881_v34 = vpack.c.bf16 %v2520_v48, %v2519_v30  ;;  %v2503_v3 = vld [vmem:[%s10355_s5 + $0x210] sm:$0xff]  ;;  %v2504_v33 = vld [vmem:[%s10355_s5 + $0x218] sm:$0xff] }
 0x33d   :  { %v2035_v42 = vrot.slane %v2021_v5, %v8042_v22  ;;  %v2028_v12 = vrot.slane %v2020_v16, %v8042_v22  ;;  %v2036_v25 = vcombine.low %v2004_v47, %v2019_v6  ;;  %v2037_v60 = vcombine.high %v2004_v47, %v2019_v6  ;;  %v2522_v16 = vld [vmem:[%s10355_s5 + $0x2a8] sm:$0xff] }
 0x33e   :  { %v1819_v1 = vrot.slane %v1811_v8, %v8042_v22  ;;  %v1826_v43 = vrot.slane %v1812_v59, %v8042_v22  ;;  %v1827_v18 = vcombine.low %v1795_v49, %v1810_v58  ;;  %v1828_v52 = vcombine.high %v1795_v49, %v1810_v58  ;;  %v2506_v58 = vld [vmem:[%s10355_s5 + $0x228] sm:$0xff] }
 0x33f   :  { %v2052_v0 = vcombine.high %v2028_v12, %v6600_v7  ;;  %v2053_v40 = vcombine.high %v2035_v42, %v6600_v7  ;;  %v2044_v27 = vrot.slane %v2036_v25, %v8042_v22  ;;  %v2051_v26 = vrot.slane %v2037_v60, %v8042_v22  ;;  %v2508_v60 = vld [vmem:[%s10355_s5 + $0x238] sm:$0xff] }
 0x340   :  { %v1843_v35 = vcombine.high %v1819_v1, %v6600_v7  ;;  %v1844_v10 = vcombine.high %v1826_v43, %v6600_v7  ;;  %v6506_v4 = vpack.i.bf16 %v2035_v42, %v1826_v43  ;;  %v1835_v51 = vrot.slane %v1827_v18, %v8042_v22  ;;  %v2552_v42 = vld [vmem:[%s10355_s5 + $0x398] sm:$0xff]  ;;  %v2505_v43 = vld [vmem:[%s10355_s5 + $0x220] sm:$0xff] }
 0x341   :  { %2203 = vrot.lane.b32.xlu1 %v2052_v0, %s6606_s16  ;;  %v2054_v63 = vcombine.high %v2044_v27, %v6600_v7  ;;  %v1842_v28 = vrot.slane %v1828_v52, %v8042_v22  ;;  %v2055_v31 = vcombine.high %v2051_v26, %v6600_v7  ;;  %v5883_v20 = vpack.c.bf16 %v2504_v33, %v2503_v3  ;;  %v2536_v18 = vld [vmem:[%s10355_s5 + $0x318] sm:$0xff]  ;;  %v2510_v33 = vld [vmem:[%s10355_s5 + $0x248] sm:$0xff] }
 0x342   :  { %2201 = vrot.lane.b32.xlu0 %v1843_v35, %s6606_s16  ;;  %v6511_v24 = vpack.i.bf16 %v2053_v40, %v1844_v10  ;;  %v1845_v9 = vcombine.high %v1835_v51, %v6600_v7  ;;  %v6516_v50 = vpack.i.bf16 %v2044_v27, %v1835_v51  ;;  %v5911_v0 = vpack.c.bf16 %v2534_v53, %v2533_v23  ;;  %v2523_v40 = vld [vmem:[%s10355_s5 + $0x2b0] sm:$0xff]  ;;  %v2524_v35 = vld [vmem:[%s10355_s5 + $0x2b8] sm:$0xff]  ;;  %v2553_v27 = vld [vmem:[%s10355_s5 + $0x3a0] sm:$0xff] }
 0x343   :  { %v1846_v11 = vcombine.high %v1842_v28, %v6600_v7  ;;  %v5913_v47 = vpack.c.bf16 %v2552_v42, %v2551_v39  ;;  %v5887_v51 = vpack.c.bf16 %v2506_v58, %v2505_v43  ;;  %v2539_v39 = vld [vmem:[%s10355_s5 + $0x330] sm:$0xff]  ;;  %v2557_v43 = vld [vmem:[%s10355_s5 + $0x3c0] sm:$0xff] }
 0x344   :  { %v6521_v32 = vpack.i.bf16 %v2054_v63, %v1845_v9  ;;  %v2554_v9 = vld [vmem:[%s10355_s5 + $0x3a8] sm:$0xff]  ;;  %v5889_v63 = vpack.c.bf16 %v2524_v35, %v2523_v40  ;;  %v2511_v35 = vld [vmem:[%s10355_s5 + $0x250] sm:$0xff] }
 0x345   :  { %6512 = vrot.lane.b32.xlu1 %v6511_v24, %s6603_s4  ;;  %v2535_v24 = vld [vmem:[%s10355_s5 + $0x310] sm:$0xff]  ;;  %v5917_v14 = vpack.c.bf16 %v2554_v9, %v2553_v27  ;;  %v2541_v9 = vld [vmem:[%s10355_s5 + $0x340] sm:$0xff] }
 0x346   :  { %6507 = vrot.lane.b32.xlu0 %v6506_v4, %s6607_s17 }
 0x349   :  { %1718 = vrot.lane.b32.xlu1 %v7782_v17, %s6603_s4 }
 0x34a   :  { %1716 = vrot.lane.b32.xlu0 %v7779_v46, %s6603_s4 }
 0x34d   :  { %1734 = vrot.lane.b32.xlu1 %v7830_v62, %s6603_s4 }
 0x34e   :  { %1732 = vrot.lane.b32.xlu0 %v7825_v37, %s6603_s4 }
 0x351   :  { %6522 = vrot.lane.b32.xlu1 %v6521_v32, %s6608_s0  ;;  %v2507_v32 = vld [vmem:[%s10355_s5 + $0x230] sm:$0xff] }
 0x352   :  { %6517 = vrot.lane.b32.xlu0 %v6516_v50, %s6609_s18 }
 0x355   :  { %2255 = vrot.lane.b32.xlu1 %v2051_v26, %s6610_s19  ;;  %v5915_v26 = vpack.c.bf16 %v2536_v18, %v2535_v24  ;;  %v2512_v18 = vld [vmem:[%s10355_s5 + $0x258] sm:$0xff] }
 0x356   :  { %2253 = vrot.lane.b32.xlu0 %v1842_v28, %s6610_s19  ;;  %v2525_v28 = vld [vmem:[%s10355_s5 + $0x2c0] sm:$0xff] }
 0x359   :  { %2266 = vrot.lane.b32.xlu1 %v2055_v31, %s6611_s20  ;;  %v2526_v31 = vld [vmem:[%s10355_s5 + $0x2c8] sm:$0xff] }
 0x35a   :  { %2264 = vrot.lane.b32.xlu0 %v1846_v11, %s6611_s20  ;;  %v5893_v3 = vpack.c.bf16 %v2526_v31, %v2525_v28  ;;  %v2559_v28 = vld [vmem:[%s10355_s5 + $0x3d0] sm:$0xff]  ;;  %v2560_v31 = vld [vmem:[%s10355_s5 + $0x3d8] sm:$0xff] }
 0x3b3   :  { %v2204_v19 = vpop.permute.xlu1 %2203 }
 0x3b4   :  { %v2202_v45 = vpop.permute.xlu0 %2201 }
 0x3b5   :  { %v2415_v56 = vsel %vm2205_vm13, %v2028_v12, %v2202_v45  ;;  %v2206_v25 = vsel %vm2205_vm13, %v2202_v45, %v2204_v19  ;;  %v2509_v45 = vld [vmem:[%s10355_s5 + $0x240] sm:$0xff] }
 0x3b6   :  { %3186 = vmatprep.mubr.f32.mxu0 %v2415_v56  ;;  %v2556_v56 = vld [vmem:[%s10355_s5 + $0x3b8] sm:$0xff] }
 0x3b7   :  { %v8121_v5 = vpop.permute.xlu1 %6512  ;;  %3187 = vmatmul.mubr.f32.vlgmr.msra.gmra.mrb[48].mxu0 %v1819_v1  ;;  %v5885_v1 = vpack.c.bf16 %v2522_v16, %v2521_v21  ;;  %v2527_v21 = vld [vmem:[%s10355_s5 + $0x2d0] sm:$0xff]  ;;  %v2528_v16 = vld [vmem:[%s10355_s5 + $0x2d8] sm:$0xff] }
 0x3b8   :  { %v6515_v8 = vunpack.i.h.bf16 %v8121_v5  ;;  %v6514_v59 = vunpack.i.l.bf16 %v8121_v5  ;;  %5880 = vmatpush3.bf16.msra.mxu0 %v5879_v41  ;;  %v8131_v38 = vpop.permute.xlu0 %6507  ;;  %v2555_v41 = vld [vmem:[%s10355_s5 + $0x3b0] sm:$0xff]  ;;  %v5897_v40 = vpack.c.bf16 %v2528_v16, %v2527_v21 }
 0x3b9   :  { %v6509_v12 = vunpack.i.l.bf16 %v8131_v38  ;;  %5882 = vmatprep.subr.bf16.mxu0 %v5881_v34  ;;  %v5921_v42 = vpack.c.bf16 %v2556_v56, %v2555_v41  ;;  %v2514_v41 = vld [vmem:[%s10355_s5 + $0x268] sm:$0xff] }
 0x3ba   :  { %v2226_v6 = vsel %vm1744_vm12, %v6514_v59, %v6515_v8 }
 0x3bb   :  { %v1719_v10 = vpop.permute.xlu1 %1718  ;;  %3326 = vmatprep.mubr.f32.mxu0 %v2226_v6  ;;  %v2416_v49 = vsel %vm2216_vm14, %v2204_v19, %v6509_v12  ;;  %v5891_v19 = vpack.c.bf16 %v2508_v60, %v2507_v32 }
 0x3bc   :  { %5884 = vmatpush3.bf16.msra.mxu0 %v5883_v20  ;;  %v1717_v4 = vpop.permute.xlu0 %1716  ;;  %3256 = vmatprep.mubr.f32.mxu1 %v2416_v49  ;;  %v8180_v50 = vmax.f32 %v7782_v17, %v1719_v10  ;;  %v2537_v17 = vld [vmem:[%s10355_s5 + $0x320] sm:$0xff] }
 0x3bd   :  { %3257 = vmatmul.mubr.f32.vlgmr.msra.gmra.mrb[48].mxu1 %v2206_v25  ;;  %5886 = vmatprep.subr.bf16.mxu0 %v5885_v1  ;;  %v1746_v52 = vsel %vm1744_vm12, %v1717_v4, %v1719_v10  ;;  %v5919_v20 = vpack.c.bf16 %v2538_v2, %v2537_v17  ;;  %v2540_v1 = vld [vmem:[%s10355_s5 + $0x338] sm:$0xff]  ;;  %v2529_v25 = vld [vmem:[%s10355_s5 + $0x2e0] sm:$0xff]  ;;  %v2530_v4 = vld [vmem:[%s10355_s5 + $0x2e8] sm:$0xff] }
 0x3be   :  { %5912 = vmatpush3.bf16.msra.mxu1 %v5911_v0  ;;  %v8208_v34 = vmax.f32 %v7779_v46, %v1746_v52  ;;  %v2063_v46 = vrot.slane %v8180_v50, %v8016_v57  ;;  %v5895_v0 = vpack.c.bf16 %v2510_v33, %v2509_v45  ;;  %v2513_v45 = vld [vmem:[%s10355_s5 + $0x260] sm:$0xff]  ;;  %v2532_v33 = vld [vmem:[%s10355_s5 + $0x2f8] sm:$0xff] }
 0x3bf   :  { %v1735_v11 = vpop.permute.xlu1 %1734  ;;  %5914 = vmatprep.subr.bf16.mxu1 %v5913_v47 }
 0x3c0   :  { %5888 = vmatpush3.bf16.msra.mxu0 %v5887_v51  ;;  %v8196_v30 = vmax.f32 %v7830_v62, %v1735_v11  ;;  %v1733_v48 = vpop.permute.xlu0 %1732  ;;  %v1854_v10 = vrot.slane %v8208_v34, %v8016_v57  ;;  %v5923_v51 = vpack.c.bf16 %v2540_v1, %v2539_v39  ;;  %v2544_v39 = vld [vmem:[%s10355_s5 + $0x358] sm:$0xff]  ;;  %v2561_v1 = vld [vmem:[%s10355_s5 + $0x3e0] sm:$0xff] }
 0x3c1   :  { %v1750_v62 = vsel %vm1744_vm12, %v1733_v48, %v1735_v11  ;;  %5890 = vmatprep.subr.bf16.mxu0 %v5889_v63  ;;  %v5899_v11 = vpack.c.bf16 %v2512_v18, %v2511_v35  ;;  %v2581_v35 = vld [vmem:[%s10355_s5 + $0x480] sm:$0xff]  ;;  %v6510_v18 = vunpack.i.h.bf16 %v8131_v38 }
 0x3c2   :  { %v2078_v23 = vrot.slane %v8196_v30, %v8016_v57  ;;  %v1777_v53 = vmax.f32 %v7825_v37, %v1750_v62  ;;  %5916 = vmatpush3.bf16.msra.mxu1 %v5915_v26  ;;  %v2558_v37 = vld [vmem:[%s10355_s5 + $0x3c8] sm:$0xff]  ;;  %v5929_v62 = vpack.c.bf16 %v2560_v31, %v2559_v28 }
 0x3c3   :  { %5918 = vmatprep.subr.bf16.mxu1 %v5917_v14  ;;  %v5925_v27 = vpack.c.bf16 %v2558_v37, %v2557_v43  ;;  %v2542_v26 = vld [vmem:[%s10355_s5 + $0x348] sm:$0xff]  ;;  %v5901_v14 = vpack.c.bf16 %v2530_v4, %v2529_v25  ;;  %v1847_v37 = vcombine.high %v8208_v34, %v6600_v7  ;;  %v2071_v34 = vcombine.high %v8196_v30, %v6600_v7 }
 0x3c4   :  { %v2086_v58 = vcombine.low %v2063_v46, %v2078_v23  ;;  %5892 = vmatpush3.bf16.msra.mxu0 %v5891_v19  ;;  %v8237_v6 = vpop.permute.xlu0 %6517  ;;  %v2087_v49 = vcombine.high %v2063_v46, %v2078_v23  ;;  %v1869_v47 = vrot.slane %v1777_v53, %v8016_v57  ;;  %v5927_v56 = vpack.c.bf16 %v2542_v26, %v2541_v9  ;;  %v2562_v43 = vld [vmem:[%s10355_s5 + $0x3e8] sm:$0xff] }
 0x3c5   :  { %v6520_v24 = vunpack.i.h.bf16 %v8237_v6  ;;  %5894 = vmatprep.subr.bf16.mxu0 %v5893_v3  ;;  %v6519_v52 = vunpack.i.l.bf16 %v8237_v6  ;;  %v2531_v3 = vld [vmem:[%s10355_s5 + $0x2f0] sm:$0xff]  ;;  %v1862_v21 = vcombine.high %v1777_v53, %v6600_v7  ;;  %v5933_v4 = vpack.c.bf16 %v2562_v43, %v2561_v1  ;;  %v2546_v30 = vld [vmem:[%s10355_s5 + $0x368] sm:$0xff]  ;;  %v2568_v43 = vld [vmem:[%s10355_s5 + $0x418] sm:$0xff] }
 0x3c6   :  { %5920 = vmatpush3.bf16.msra.mxu1 %v5919_v20  ;;  %v8259_v63 = vrot.slane %v2086_v58, %v8042_v22  ;;  %v1877_v32 = vcombine.low %v1854_v10, %v1869_v47  ;;  %v1878_v60 = vcombine.high %v1854_v10, %v1869_v47  ;;  %v8278_v48 = vrot.slane %v2087_v49, %v8042_v22  ;;  %v2543_v20 = vld [vmem:[%s10355_s5 + $0x350] sm:$0xff]  ;;  %v2582_v10 = vld [vmem:[%s10355_s5 + $0x488] sm:$0xff]  ;;  %v8330_v49 = vpop.permute.xlu1 %6522 }
 0x3c7   :  { %5922 = vmatprep.subr.bf16.mxu1 %v5921_v42  ;;  %v2237_v17 = vsel %vm2236_vm15, %v6519_v52, %v6520_v24  ;;  %v5903_v42 = vpack.c.bf16 %v2514_v41, %v2513_v45  ;;  %v2515_v53 = vld [vmem:[%s10355_s5 + $0x270] sm:$0xff]  ;;  %v5931_v47 = vpack.c.bf16 %v2544_v39, %v2543_v20  ;;  %v8334_v25 = vrot.slane %v1862_v21, %v8016_v57  ;;  %v2566_v26 = vld [vmem:[%s10355_s5 + $0x408] sm:$0xff] }
 0x3c8   :  { %5896 = vmatpush3.bf16.msra.mxu0 %v5895_v0  ;;  %v1892_v2 = vrot.slane %v1878_v60, %v8042_v22  ;;  %v8281_v19 = vrot.slane %v1877_v32, %v8042_v22  ;;  %3396 = vmatprep.mubr.f32.mxu1 %v2237_v17  ;;  %v2118_v23 = vcombine.high %v8259_v63, %v6600_v7  ;;  %v2565_v60 = vld [vmem:[%s10355_s5 + $0x400] sm:$0xff]  ;;  %v6525_v31 = vunpack.i.h.bf16 %v8330_v49  ;;  %v2564_v17 = vld [vmem:[%s10355_s5 + $0x3f8] sm:$0xff]  ;;  %v2547_v45 = vld [vmem:[%s10355_s5 + $0x370] sm:$0xff] }
 0x3c9   :  { %5898 = vmatprep.subr.bf16.mxu0 %v5897_v40  ;;  %v5905_v0 = vpack.c.bf16 %v2532_v33, %v2531_v3  ;;  %v2516_v40 = vld [vmem:[%s10355_s5 + $0x278] sm:$0xff]  ;;  %v5941_v32 = vpack.c.bf16 %v2582_v10, %v2581_v35  ;;  %v8352_v28 = vrot.slane %v1847_v37, %v8016_v57  ;;  %v8369_v41 = vrot.slane %v2071_v34, %v8016_v57  ;;  %v8380_v33 = vpop.permute.xlu0 %2253  ;;  %v2567_v1 = vld [vmem:[%s10355_s5 + $0x410] sm:$0xff]  ;;  %v2597_v35 = vld [vmem:[%s10355_s5 + $0x500] sm:$0xff] }
 0x3ca   :  { %5924 = vmatpush3.bf16.msra.mxu1 %v5923_v51  ;;  %v6526_v16 = vpack.i.bf16 %v8278_v48, %v1892_v2  ;;  %v1909_v46 = vcombine.high %v8281_v19, %v6600_v7  ;;  %v2545_v51 = vld [vmem:[%s10355_s5 + $0x360] sm:$0xff]  ;;  %v5907_v9 = vpack.c.bf16 %v2516_v40, %v2515_v53  ;;  %v2584_v3 = vld [vmem:[%s10355_s5 + $0x498] sm:$0xff]  ;;  %v2217_v21 = vsel %vm2216_vm14, %v6509_v12, %v6510_v18  ;;  %v2586_v18 = vld [vmem:[%s10355_s5 + $0x4a8] sm:$0xff] }
 0x3cb   :  { %5926 = vmatprep.subr.bf16.mxu1 %v5925_v27  ;;  %v2056_v27 = vcombine.high %v8180_v50, %v6600_v7  ;;  %v1910_v50 = vcombine.high %v1892_v2, %v6600_v7  ;;  %v2548_v2 = vld [vmem:[%s10355_s5 + $0x378] sm:$0xff]  ;;  %v5943_v39 = vpack.c.bf16 %v2566_v26, %v2565_v60  ;;  %v2119_v10 = vcombine.high %v8278_v48, %v6600_v7  ;;  %v2662_v6 = vld [vmem:[%s10355_s5 + $0x708] sm:$0xff] }
 0x3cc   :  { %5900 = vmatpush3.bf16.msra.mxu0 %v5899_v11  ;;  %6527 = vrot.lane.b32.xlu1 %v6526_v16, %s6607_s17  ;;  %v6531_v58 = vpack.i.bf16 %v2118_v23, %v1909_v46  ;;  %v6524_v11 = vunpack.i.l.bf16 %v8330_v49  ;;  %v2613_v16 = vld [vmem:[%s10355_s5 + $0x580] sm:$0xff]  ;;  %v2614_v46 = vld [vmem:[%s10355_s5 + $0x588] sm:$0xff]  ;;  %v1893_v23 = vcombine.low %v8352_v28, %v8334_v25  ;;  %v5939_v12 = vpack.c.bf16 %v2548_v2, %v2547_v45  ;;  %v2588_v60 = vld [vmem:[%s10355_s5 + $0x4b8] sm:$0xff] }
 0x3cd   :  { %5902 = vmatprep.subr.bf16.mxu0 %v5901_v14  ;;  %v2563_v14 = vld [vmem:[%s10355_s5 + $0x3f0] sm:$0xff]  ;;  %v8395_v20 = vrot.slane %v2056_v27, %v8016_v57  ;;  %v5973_v40 = vpack.c.bf16 %v2614_v46, %v2613_v16  ;;  %v5947_v48 = vpack.c.bf16 %v2568_v43, %v2567_v1  ;;  %v8455_v26 = vpop.permute.xlu0 %2264  ;;  %v2418_v2 = vsel %vm2236_vm15, %v6515_v8, %v6519_v52  ;;  %v2617_v16 = vld [vmem:[%s10355_s5 + $0x5a0] sm:$0xff]  ;;  %v2618_v46 = vld [vmem:[%s10355_s5 + $0x5a8] sm:$0xff] }
 0x3ce   :  { %5928 = vmatpush3.bf16.msra.mxu1 %v5927_v56  ;;  %6532 = vrot.lane.b32.xlu0 %v6531_v58, %s6606_s16  ;;  %v5935_v56 = vpack.c.bf16 %v2546_v30, %v2545_v51  ;;  %v2248_v38 = vsel %vm2247_vm0, %v6524_v11, %v6525_v31  ;;  %v2417_v58 = vsel %vm1744_vm12, %v2217_v21, %v6514_v59  ;;  %v2598_v59 = vld [vmem:[%s10355_s5 + $0x508] sm:$0xff]  ;;  %v2569_v51 = vld [vmem:[%s10355_s5 + $0x420] sm:$0xff]  ;;  %v2615_v27 = vld [vmem:[%s10355_s5 + $0x590] sm:$0xff] }
 0x3cf   :  { %5930 = vmatprep.subr.bf16.mxu1 %v5929_v62  ;;  %v2583_v62 = vld [vmem:[%s10355_s5 + $0x490] sm:$0xff]  ;;  %v2102_v37 = vcombine.low %v8395_v20, %v8369_v41  ;;  %v1901_v34 = vrot.slane %v1893_v23, %v8042_v22  ;;  %v2570_v30 = vld [vmem:[%s10355_s5 + $0x428] sm:$0xff]  ;;  %v2601_v1 = vld [vmem:[%s10355_s5 + $0x520] sm:$0xff] }
 0x3d0   :  { %5904 = vmatpush3.bf16.msra.mxu0 %v5903_v42  ;;  %1720 = vrot.lane.b32.xlu1 %v7784_v54, %s6603_s4  ;;  %v5937_v42 = vpack.c.bf16 %v2564_v17, %v2563_v14  ;;  %v5945_v53 = vpack.c.bf16 %v2584_v3, %v2583_v62  ;;  %v2599_v45 = vld [vmem:[%s10355_s5 + $0x510] sm:$0xff]  ;;  %v5951_v62 = vpack.c.bf16 %v2570_v30, %v2569_v51  ;;  %v2602_v43 = vld [vmem:[%s10355_s5 + $0x528] sm:$0xff]  ;;  %v2661_v49 = vld [vmem:[%s10355_s5 + $0x700] sm:$0xff] }
 0x3d1   :  { %5906 = vmatprep.subr.bf16.mxu0 %v5905_v0  ;;  %v2420_v0 = vsel %vm2257_vm1, %v2248_v38, %v8380_v33  ;;  %v2110_v14 = vrot.slane %v2102_v37, %v8042_v22  ;;  %v2571_v52 = vld [vmem:[%s10355_s5 + $0x430] sm:$0xff]  ;;  %v2590_v38 = vld [vmem:[%s10355_s5 + $0x4c8] sm:$0xff] }
 0x3d2   :  { %5932 = vmatpush3.bf16.msra.mxu1 %v5931_v47  ;;  %2293 = vrot.lane.b32.xlu0 %v1910_v50, %s6603_s4  ;;  %v2585_v47 = vld [vmem:[%s10355_s5 + $0x4a0] sm:$0xff]  ;;  %v1911_v50 = vcombine.high %v1901_v34, %v6600_v7  ;;  %v2603_v30 = vld [vmem:[%s10355_s5 + $0x530] sm:$0xff] }
 0x3d3   :  { %5934 = vmatprep.subr.bf16.mxu1 %v5933_v4  ;;  %v1894_v4 = vcombine.high %v8352_v28, %v8334_v25  ;;  %v2616_v25 = vld [vmem:[%s10355_s5 + $0x598] sm:$0xff]  ;;  %v5975_v28 = vpack.c.bf16 %v2598_v59, %v2597_v35  ;;  %v5949_v31 = vpack.c.bf16 %v2586_v18, %v2585_v47  ;;  %v6536_v23 = vpack.i.bf16 %v2110_v14, %v1901_v34  ;;  %v2573_v34 = vld [vmem:[%s10355_s5 + $0x440] sm:$0xff]  ;;  %v2574_v59 = vld [vmem:[%s10355_s5 + $0x448] sm:$0xff] }
 0x3d4   :  { %5908 = vmatpush3.bf16.msra.mxu0 %v5907_v9  ;;  %1736 = vrot.lane.b32.xlu1 %v7827_v15, %s6603_s4  ;;  %v2103_v9 = vcombine.high %v8395_v20, %v8369_v41  ;;  %v2600_v41 = vld [vmem:[%s10355_s5 + $0x518] sm:$0xff]  ;;  %v5977_v3 = vpack.c.bf16 %v2616_v25, %v2615_v27  ;;  %v5983_v47 = vpack.c.bf16 %v2602_v43, %v2601_v1  ;;  %v2591_v18 = vld [vmem:[%s10355_s5 + $0x4d0] sm:$0xff]  ;;  %v2621_v25 = vld [vmem:[%s10355_s5 + $0x5c0] sm:$0xff] }
 0x3d5   :  { %5942 = vmatprep.subr.bf16.mxu0 %v5941_v32  ;;  %v2587_v32 = vld [vmem:[%s10355_s5 + $0x4b0] sm:$0xff]  ;;  %v1908_v17 = vrot.slane %v1894_v4, %v8042_v22  ;;  %v2572_v20 = vld [vmem:[%s10355_s5 + $0x438] sm:$0xff]  ;;  %v2626_v1 = vld [vmem:[%s10355_s5 + $0x5e8] sm:$0xff] }
 0x3d6   :  { %5936 = vmatpush3.bf16.msra.mxu1 %v5935_v56  ;;  %1722 = vrot.lane.b32.xlu0 %v7793_v61, %s6603_s4  ;;  %v8468_v56 = vpop.permute.xlu1 %2255  ;;  %v5953_v21 = vpack.c.bf16 %v2588_v60, %v2587_v32  ;;  %v2117_v8 = vrot.slane %v2103_v9, %v8042_v22  ;;  %v5955_v37 = vpack.c.bf16 %v2572_v20, %v2571_v52  ;;  %v2592_v4 = vld [vmem:[%s10355_s5 + $0x4d8] sm:$0xff]  ;;  %v2622_v32 = vld [vmem:[%s10355_s5 + $0x5c8] sm:$0xff]  ;;  %v2595_v52 = vld [vmem:[%s10355_s5 + $0x4f0] sm:$0xff] }
 0x3d7   :  { %3327 = vmatmul.mubr.f32.vlgmr.msra.gmra.mrb[50].mxu0 %v2417_v58  ;;  %5938 = vmatprep.subr.bf16.mxu1 %v5937_v42  ;;  %v2421_v5 = vsel %vm2268_vm2, %v8468_v56, %v8455_v26  ;;  %v2589_v42 = vld [vmem:[%s10355_s5 + $0x4c0] sm:$0xff]  ;;  %v2619_v58 = vld [vmem:[%s10355_s5 + $0x5b0] sm:$0xff]  ;;  %v2604_v27 = vld [vmem:[%s10355_s5 + $0x538] sm:$0xff]  ;;  %v5959_v9 = vpack.c.bf16 %v2574_v59, %v2573_v34 }
 0x3d8   :  { %5944 = vmatpush3.bf16.msra.mxu0 %v5943_v39  ;;  %3466 = vmatprep.mubr.f32.mxu0 %v2420_v0  ;;  %v5979_v39 = vpack.c.bf16 %v2600_v41, %v2599_v45  ;;  %v2620_v0 = vld [vmem:[%s10355_s5 + $0x5b8] sm:$0xff]  ;;  %v5957_v35 = vpack.c.bf16 %v2590_v38, %v2589_v42  ;;  %v2594_v45 = vld [vmem:[%s10355_s5 + $0x4e8] sm:$0xff]  ;;  %v5989_v41 = vpack.c.bf16 %v2622_v32, %v2621_v25  ;;  %v2607_v42 = vld [vmem:[%s10355_s5 + $0x550] sm:$0xff] }
 0x3d9   :  { %2295 = vrot.lane.b32.xlu1 %v2119_v10, %s6603_s4  ;;  %5946 = vmatprep.subr.bf16.mxu0 %v5945_v53  ;;  %v5981_v53 = vpack.c.bf16 %v2618_v46, %v2617_v16  ;;  %v1912_v10 = vcombine.high %v1908_v17, %v6600_v7  ;;  %v5985_v51 = vpack.c.bf16 %v2620_v0, %v2619_v58  ;;  %v2624_v16 = vld [vmem:[%s10355_s5 + $0x5d8] sm:$0xff]  ;;  %v2609_v34 = vld [vmem:[%s10355_s5 + $0x560] sm:$0xff]  ;;  %v2610_v59 = vld [vmem:[%s10355_s5 + $0x568] sm:$0xff] }
 0x3da   :  { %5940 = vmatpush3.bf16.msra.mxu1 %v5939_v12  ;;  %1738 = vrot.lane.b32.xlu0 %v7832_v44, %s6603_s4  ;;  %v6541_v12 = vpack.i.bf16 %v2117_v8, %v1908_v17  ;;  %v2593_v17 = vld [vmem:[%s10355_s5 + $0x4e0] sm:$0xff]  ;;  %v2596_v20 = vld [vmem:[%s10355_s5 + $0x4f8] sm:$0xff] }
 0x3db   :  { %5974 = vmatprep.subr.bf16.mxu1 %v5973_v40  ;;  %v2120_v40 = vcombine.high %v2110_v14, %v6600_v7  ;;  %v5987_v14 = vpack.c.bf16 %v2604_v27, %v2603_v30  ;;  %v5965_v46 = vpack.c.bf16 %v2594_v45, %v2593_v17  ;;  %v2608_v38 = vld [vmem:[%s10355_s5 + $0x558] sm:$0xff]  ;;  %v5969_v43 = vpack.c.bf16 %v2596_v20, %v2595_v52  ;;  %v2630_v30 = vld [vmem:[%s10355_s5 + $0x608] sm:$0xff]  ;;  %v2631_v45 = vld [vmem:[%s10355_s5 + $0x610] sm:$0xff] }
 0x3dc   :  { %5948 = vmatpush3.bf16.msra.mxu0 %v5947_v48  ;;  %v2121_v48 = vcombine.high %v2117_v8, %v6600_v7  ;;  %v2580_v58 = vld [vmem:[%s10355_s5 + $0x478] sm:$0xff]  ;;  %v5995_v0 = vpack.c.bf16 %v2608_v38, %v2607_v42  ;;  %v5999_v27 = vpack.c.bf16 %v2610_v59, %v2609_v34  ;;  %v6039_v20 = vpack.c.bf16 %v2662_v6, %v2661_v49  ;;  %v2663_v42 = vld [vmem:[%s10355_s5 + $0x710] sm:$0xff]  ;;  %v2666_v34 = vld [vmem:[%s10355_s5 + $0x728] sm:$0xff] }
 0x3dd   :  { %3397 = vmatmul.mubr.f32.vlgmr.msra.gmra.mrb[50].mxu1 %v2418_v2  ;;  %2313 = vrot.lane.b32.xlu1 %v1911_v50, %s6608_s0  ;;  %v2576_v50 = vld [vmem:[%s10355_s5 + $0x458] sm:$0xff]  ;;  %v2605_v2 = vld [vmem:[%s10355_s5 + $0x540] sm:$0xff]  ;;  %v2687_v6 = vld [vmem:[%s10355_s5 + $0x7d0] sm:$0xff] }
 0x3de   :  { %5976 = vmatpush3.bf16.msra.mxu1 %v5975_v28  ;;  %3536 = vmatprep.mubr.f32.mxu1 %v2421_v5  ;;  %v6546_v60 = vpack.i.bf16 %v2121_v48, %v1912_v10  ;;  %v5961_v28 = vpack.c.bf16 %v2592_v4, %v2591_v18  ;;  %v2577_v5 = vld [vmem:[%s10355_s5 + $0x460] sm:$0xff]  ;;  %v2627_v18 = vld [vmem:[%s10355_s5 + $0x5f0] sm:$0xff]  ;;  %v2628_v4 = vld [vmem:[%s10355_s5 + $0x5f8] sm:$0xff] }
 0x3df   :  { %5950 = vmatprep.subr.bf16.mxu0 %v5949_v31  ;;  %6537 = vrot.lane.b32.xlu0 %v6536_v23, %s6609_s18  ;;  %v2575_v31 = vld [vmem:[%s10355_s5 + $0x450] sm:$0xff]  ;;  %v2578_v23 = vld [vmem:[%s10355_s5 + $0x468] sm:$0xff]  ;;  %v2648_v25 = vld [vmem:[%s10355_s5 + $0x698] sm:$0xff]  ;;  %v6001_v32 = vpack.c.bf16 %v2628_v4, %v2627_v18 }
 0x3e0   :  { %5952 = vmatpush3.bf16.msra.mxu0 %v5951_v62  ;;  %5978 = vmatprep.subr.bf16.mxu1 %v5977_v3  ;;  %v2606_v62 = vld [vmem:[%s10355_s5 + $0x548] sm:$0xff]  ;;  %v5963_v3 = vpack.c.bf16 %v2576_v50, %v2575_v31  ;;  %v2677_v50 = vld [vmem:[%s10355_s5 + $0x780] sm:$0xff]  ;;  %v2652_v52 = vld [vmem:[%s10355_s5 + $0x6b8] sm:$0xff] }
 0x3e1   :  { %6542 = vrot.lane.b32.xlu1 %v6541_v12, %s6610_s19  ;;  %5954 = vmatprep.subr.bf16.mxu0 %v5953_v21  ;;  %v2623_v21 = vld [vmem:[%s10355_s5 + $0x5d0] sm:$0xff]  ;;  %v5991_v8 = vpack.c.bf16 %v2606_v62, %v2605_v2  ;;  %v5967_v12 = vpack.c.bf16 %v2578_v23, %v2577_v5  ;;  %v2419_v2 = vsel %vm2247_vm0, %v6520_v24, %v6524_v11  ;;  %v2633_v23 = vld [vmem:[%s10355_s5 + $0x620] sm:$0xff]  ;;  %v2664_v38 = vld [vmem:[%s10355_s5 + $0x718] sm:$0xff] }
 0x3e2   :  { %5980 = vmatpush3.bf16.msra.mxu1 %v5979_v39  ;;  %v5993_v39 = vpack.c.bf16 %v2624_v16, %v2623_v21  ;;  %v2650_v21 = vld [vmem:[%s10355_s5 + $0x6a8] sm:$0xff]  ;;  %v2679_v11 = vld [vmem:[%s10355_s5 + $0x790] sm:$0xff]  ;;  %v2684_v18 = vld [vmem:[%s10355_s5 + $0x7b8] sm:$0xff] }
 0x3e3   :  { %2315 = vrot.lane.b32.xlu0 %v2120_v40, %s6608_s0  ;;  %5982 = vmatprep.subr.bf16.mxu1 %v5981_v53  ;;  %v2625_v53 = vld [vmem:[%s10355_s5 + $0x5e0] sm:$0xff] }
 0x3e4   :  { %5956 = vmatpush3.bf16.msra.mxu0 %v5955_v37  ;;  %v2579_v37 = vld [vmem:[%s10355_s5 + $0x470] sm:$0xff]  ;;  %v2645_v40 = vld [vmem:[%s10355_s5 + $0x680] sm:$0xff]  ;;  %v5997_v10 = vpack.c.bf16 %v2626_v1, %v2625_v53 }
 0x3e5   :  { %5958 = vmatprep.subr.bf16.mxu0 %v5957_v35  ;;  %v2646_v35 = vld [vmem:[%s10355_s5 + $0x688] sm:$0xff]  ;;  %v2681_v1 = vld [vmem:[%s10355_s5 + $0x7a0] sm:$0xff] }
 0x3e6   :  { %5984 = vmatpush3.bf16.msra.mxu1 %v5983_v47  ;;  %v5971_v47 = vpack.c.bf16 %v2580_v58, %v2579_v37  ;;  %v6005_v48 = vpack.c.bf16 %v2646_v35, %v2645_v40  ;;  %v2635_v58 = vld [vmem:[%s10355_s5 + $0x630] sm:$0xff]  ;;  %v6043_v40 = vpack.c.bf16 %v2664_v38, %v2663_v42  ;;  %v2689_v38 = vld [vmem:[%s10355_s5 + $0x7e0] sm:$0xff] }
 0x3e7   :  { %6547 = vrot.lane.b32.xlu0 %v6546_v60, %s6611_s20  ;;  %5986 = vmatprep.subr.bf16.mxu1 %v5985_v51  ;;  %v2629_v51 = vld [vmem:[%s10355_s5 + $0x600] sm:$0xff]  ;;  %v2611_v60 = vld [vmem:[%s10355_s5 + $0x570] sm:$0xff] }
 0x3e8   :  { %5960 = vmatpush3.bf16.msra.mxu0 %v5959_v9  ;;  %v2647_v9 = vld [vmem:[%s10355_s5 + $0x690] sm:$0xff]  ;;  %v6007_v31 = vpack.c.bf16 %v2630_v30, %v2629_v51  ;;  %v2638_v51 = vld [vmem:[%s10355_s5 + $0x648] sm:$0xff] }
 0x3e9   :  { %5962 = vmatprep.subr.bf16.mxu0 %v5961_v28  ;;  %v2612_v28 = vld [vmem:[%s10355_s5 + $0x578] sm:$0xff]  ;;  %v6009_v17 = vpack.c.bf16 %v2648_v25, %v2647_v9  ;;  %v2655_v30 = vld [vmem:[%s10355_s5 + $0x6d0] sm:$0xff] }
 0x3ea   :  { %5988 = vmatpush3.bf16.msra.mxu1 %v5987_v14  ;;  %v2678_v14 = vld [vmem:[%s10355_s5 + $0x788] sm:$0xff]  ;;  %v6003_v62 = vpack.c.bf16 %v2612_v28, %v2611_v60  ;;  %v2668_v60 = vld [vmem:[%s10355_s5 + $0x738] sm:$0xff] }
 0x3eb   :  { %5990 = vmatprep.subr.bf16.mxu1 %v5989_v41  ;;  %v2632_v41 = vld [vmem:[%s10355_s5 + $0x618] sm:$0xff]  ;;  %v6037_v16 = vpack.c.bf16 %v2678_v14, %v2677_v50  ;;  %v2686_v50 = vld [vmem:[%s10355_s5 + $0x7c8] sm:$0xff] }
 0x3ec   :  { %5964 = vmatpush3.bf16.msra.mxu0 %v5963_v3  ;;  %v2649_v3 = vld [vmem:[%s10355_s5 + $0x6a0] sm:$0xff]  ;;  %v6011_v24 = vpack.c.bf16 %v2632_v41, %v2631_v45  ;;  %v2640_v45 = vld [vmem:[%s10355_s5 + $0x658] sm:$0xff] }
 0x3ed   :  { %5966 = vmatprep.subr.bf16.mxu0 %v5965_v46  ;;  %v2680_v46 = vld [vmem:[%s10355_s5 + $0x798] sm:$0xff]  ;;  %v6013_v5 = vpack.c.bf16 %v2650_v21, %v2649_v3  ;;  %v2657_v41 = vld [vmem:[%s10355_s5 + $0x6e0] sm:$0xff] }
 0x3ee   :  { %5992 = vmatpush3.bf16.msra.mxu1 %v5991_v8  ;;  %v2634_v8 = vld [vmem:[%s10355_s5 + $0x628] sm:$0xff]  ;;  %v2669_v21 = vld [vmem:[%s10355_s5 + $0x740] sm:$0xff] }
 0x3ef   :  { %5994 = vmatprep.subr.bf16.mxu1 %v5993_v39  ;;  %v6041_v39 = vpack.c.bf16 %v2680_v46, %v2679_v11  ;;  %v6015_v53 = vpack.c.bf16 %v2634_v8, %v2633_v23  ;;  %v2641_v46 = vld [vmem:[%s10355_s5 + $0x660] sm:$0xff]  ;;  %v2659_v23 = vld [vmem:[%s10355_s5 + $0x6f0] sm:$0xff]  ;;  %v2660_v8 = vld [vmem:[%s10355_s5 + $0x6f8] sm:$0xff] }
 0x3f0   :  { %5968 = vmatpush3.bf16.msra.mxu0 %v5967_v12  ;;  %v2258_v12 = vsel %vm2257_vm1, %v8380_v33, %v8468_v56  ;;  %v2636_v33 = vld [vmem:[%s10355_s5 + $0x638] sm:$0xff]  ;;  %v2653_v56 = vld [vmem:[%s10355_s5 + $0x6c0] sm:$0xff] }
 0x3f1   :  { %5970 = vmatprep.subr.bf16.mxu0 %v5969_v43  ;;  %v2682_v43 = vld [vmem:[%s10355_s5 + $0x7a8] sm:$0xff]  ;;  %v6019_v59 = vpack.c.bf16 %v2636_v33, %v2635_v58 }
 0x3f2   :  { %5996 = vmatpush3.bf16.msra.mxu1 %v5995_v0  ;;  %v2654_v0 = vld [vmem:[%s10355_s5 + $0x6c8] sm:$0xff]  ;;  %v6045_v35 = vpack.c.bf16 %v2682_v43, %v2681_v1  ;;  %v2643_v1 = vld [vmem:[%s10355_s5 + $0x670] sm:$0xff]  ;;  %v2644_v43 = vld [vmem:[%s10355_s5 + $0x678] sm:$0xff] }
 0x3f3   :  { %5998 = vmatprep.subr.bf16.mxu1 %v5997_v10  ;;  %v2665_v10 = vld [vmem:[%s10355_s5 + $0x720] sm:$0xff]  ;;  %v6021_v4 = vpack.c.bf16 %v2654_v0, %v2653_v56  ;;  %v2710_v58 = vld [vmem:[%s10355_s5 + $0x888] sm:$0xff] }
 0x3f4   :  { %5972 = vmatpush3.bf16.msra.mxu0 %v5971_v47  ;;  %v2683_v47 = vld [vmem:[%s10355_s5 + $0x7b0] sm:$0xff]  ;;  %v6047_v9 = vpack.c.bf16 %v2666_v34, %v2665_v10  ;;  %v2673_v0 = vld [vmem:[%s10355_s5 + $0x760] sm:$0xff]  ;;  %v2692_v34 = vld [vmem:[%s10355_s5 + $0x7f8] sm:$0xff] }
 0x3f5   :  { %6006 = vmatprep.subr.bf16.mxu0 %v6005_v48  ;;  %v2637_v48 = vld [vmem:[%s10355_s5 + $0x640] sm:$0xff]  ;;  %v6049_v25 = vpack.c.bf16 %v2684_v18, %v2683_v47  ;;  %v2691_v10 = vld [vmem:[%s10355_s5 + $0x7f0] sm:$0xff]  ;;  %v2694_v18 = vld [vmem:[%s10355_s5 + $0x808] sm:$0xff] }
 0x3f6   :  { %6000 = vmatpush3.bf16.msra.mxu1 %v5999_v27  ;;  %v2656_v27 = vld [vmem:[%s10355_s5 + $0x6d8] sm:$0xff]  ;;  %v6023_v28 = vpack.c.bf16 %v2638_v51, %v2637_v48  ;;  %v2693_v47 = vld [vmem:[%s10355_s5 + $0x800] sm:$0xff] }
 0x3f7   :  { %3467 = vmatmul.mubr.f32.vlgmr.msra.gmra.mrb[52].mxu0 %v2419_v2  ;;  %6002 = vmatprep.subr.bf16.mxu1 %v6001_v32  ;;  %v2667_v32 = vld [vmem:[%s10355_s5 + $0x730] sm:$0xff]  ;;  %v6025_v14 = vpack.c.bf16 %v2656_v27, %v2655_v30  ;;  %v2658_v2 = vld [vmem:[%s10355_s5 + $0x6e8] sm:$0xff]  ;;  %v2712_v48 = vld [vmem:[%s10355_s5 + $0x898] sm:$0xff]  ;;  %v2267_v30 = vpop.permute.xlu1 %2266  ;;  %v6065_v27 = vpack.c.bf16 %v2692_v34, %v2691_v10 }
 0x3f8   :  { %6008 = vmatpush3.bf16.msra.mxu0 %v6007_v31  ;;  %3606 = vmatprep.mubr.f32.mxu0 %v8281_v19  ;;  %v2651_v19 = vld [vmem:[%s10355_s5 + $0x6b0] sm:$0xff]  ;;  %v2685_v31 = vld [vmem:[%s10355_s5 + $0x7c0] sm:$0xff]  ;;  %v6029_v11 = vpack.c.bf16 %v2658_v2, %v2657_v41  ;;  %v2714_v41 = vld [vmem:[%s10355_s5 + $0x8a8] sm:$0xff] }
 0x3f9   :  { %6010 = vmatprep.subr.bf16.mxu0 %v6009_v17  ;;  %v6017_v37 = vpack.c.bf16 %v2652_v52, %v2651_v19  ;;  %v2639_v17 = vld [vmem:[%s10355_s5 + $0x650] sm:$0xff]  ;;  %v6053_v3 = vpack.c.bf16 %v2686_v50, %v2685_v31  ;;  %v2724_v10 = vld [vmem:[%s10355_s5 + $0x8f8] sm:$0xff] }
 0x3fa   :  { %6004 = vmatpush3.bf16.msra.mxu1 %v6003_v62  ;;  %v6051_v62 = vpack.c.bf16 %v2668_v60, %v2667_v32  ;;  %v6027_v49 = vpack.c.bf16 %v2640_v45, %v2639_v17  ;;  %v6071_v32 = vpack.c.bf16 %v2694_v18, %v2693_v47  ;;  %v2741_v60 = vld [vmem:[%s10355_s5 + $0x980] sm:$0xff]  ;;  %v2695_v50 = vld [vmem:[%s10355_s5 + $0x810] sm:$0xff]  ;;  %v2269_v17 = vsel %vm2268_vm2, %v8455_v26, %v2267_v30  ;;  %v2708_v18 = vld [vmem:[%s10355_s5 + $0x878] sm:$0xff] }
 0x3fb   :  { %6038 = vmatprep.subr.bf16.mxu1 %v6037_v16  ;;  %v2670_v16 = vld [vmem:[%s10355_s5 + $0x748] sm:$0xff]  ;;  %v2713_v45 = vld [vmem:[%s10355_s5 + $0x8a0] sm:$0xff]  ;;  %v2707_v47 = vld [vmem:[%s10355_s5 + $0x870] sm:$0xff] }
 0x3fc   :  { %6012 = vmatpush3.bf16.msra.mxu0 %v6011_v24  ;;  %v2688_v24 = vld [vmem:[%s10355_s5 + $0x7d8] sm:$0xff]  ;;  %v6055_v19 = vpack.c.bf16 %v2670_v16, %v2669_v21  ;;  %v6077_v21 = vpack.c.bf16 %v2714_v41, %v2713_v45  ;;  %v2697_v26 = vld [vmem:[%s10355_s5 + $0x820] sm:$0xff]  ;;  %v2698_v16 = vld [vmem:[%s10355_s5 + $0x828] sm:$0xff] }
 0x3fd   :  { %3537 = vmatmul.mubr.f32.vlgmr.msra.gmra.mrb[52].mxu1 %v2258_v12  ;;  %6014 = vmatprep.subr.bf16.mxu0 %v6013_v5  ;;  %v2642_v5 = vld [vmem:[%s10355_s5 + $0x668] sm:$0xff]  ;;  %v6057_v52 = vpack.c.bf16 %v2688_v24, %v2687_v6  ;;  %v2716_v6 = vld [vmem:[%s10355_s5 + $0x8b8] sm:$0xff]  ;;  %v6079_v24 = vpack.c.bf16 %v2698_v16, %v2697_v26  ;;  %v2757_v45 = vld [vmem:[%s10355_s5 + $0xa00] sm:$0xff] }
 0x3fe   :  { %6040 = vmatpush3.bf16.msra.mxu1 %v6039_v20  ;;  %v2671_v20 = vld [vmem:[%s10355_s5 + $0x750] sm:$0xff]  ;;  %v6031_v42 = vpack.c.bf16 %v2642_v5, %v2641_v46  ;;  %v2690_v12 = vld [vmem:[%s10355_s5 + $0x7e8] sm:$0xff]  ;;  %v2700_v5 = vld [vmem:[%s10355_s5 + $0x838] sm:$0xff] }
 0x3ff   :  { %6042 = vmatprep.subr.bf16.mxu1 %v6041_v39  ;;  %v2672_v39 = vld [vmem:[%s10355_s5 + $0x758] sm:$0xff]  ;;  %v6061_v56 = vpack.c.bf16 %v2690_v12, %v2689_v38  ;;  %v2699_v46 = vld [vmem:[%s10355_s5 + $0x830] sm:$0xff]  ;;  %v2758_v41 = vld [vmem:[%s10355_s5 + $0xa08] sm:$0xff] }
 0x400   :  { %6016 = vmatpush3.bf16.msra.mxu0 %v6015_v53  ;;  %v6033_v53 = vpack.c.bf16 %v2660_v8, %v2659_v23  ;;  %v6059_v33 = vpack.c.bf16 %v2672_v39, %v2671_v20  ;;  %v2717_v23 = vld [vmem:[%s10355_s5 + $0x8c0] sm:$0xff]  ;;  %v2718_v8 = vld [vmem:[%s10355_s5 + $0x8c8] sm:$0xff]  ;;  %v2720_v38 = vld [vmem:[%s10355_s5 + $0x8d8] sm:$0xff] }
 0x401   :  { %6018 = vmatprep.subr.bf16.mxu0 %v6017_v37  ;;  %v2709_v37 = vld [vmem:[%s10355_s5 + $0x880] sm:$0xff]  ;;  %v2702_v39 = vld [vmem:[%s10355_s5 + $0x848] sm:$0xff] }
 0x402   :  { %6044 = vmatpush3.bf16.msra.mxu1 %v6043_v40  ;;  %v2674_v40 = vld [vmem:[%s10355_s5 + $0x768] sm:$0xff]  ;;  %v2701_v20 = vld [vmem:[%s10355_s5 + $0x840] sm:$0xff] }
 0x403   :  { %6046 = vmatprep.subr.bf16.mxu1 %v6045_v35  ;;  %v6035_v35 = vpack.c.bf16 %v2644_v43, %v2643_v1  ;;  %v6063_v51 = vpack.c.bf16 %v2674_v40, %v2673_v0  ;;  %v6087_v12 = vpack.c.bf16 %v2702_v39, %v2701_v20  ;;  %v2703_v1 = vld [vmem:[%s10355_s5 + $0x850] sm:$0xff]  ;;  %v2704_v43 = vld [vmem:[%s10355_s5 + $0x858] sm:$0xff]  ;;  %v2705_v0 = vld [vmem:[%s10355_s5 + $0x860] sm:$0xff] }
 0x404   :  { %6020 = vmatpush3.bf16.msra.mxu0 %v6019_v59  ;;  %v6069_v59 = vpack.c.bf16 %v2710_v58, %v2709_v37  ;;  %v2721_v37 = vld [vmem:[%s10355_s5 + $0x8e0] sm:$0xff]  ;;  %v2722_v58 = vld [vmem:[%s10355_s5 + $0x8e8] sm:$0xff]  ;;  %v2760_v20 = vld [vmem:[%s10355_s5 + $0xa18] sm:$0xff] }
 0x405   :  { %6022 = vmatprep.subr.bf16.mxu0 %v6021_v4  ;;  %v2711_v4 = vld [vmem:[%s10355_s5 + $0x890] sm:$0xff]  ;;  %v2706_v40 = vld [vmem:[%s10355_s5 + $0x868] sm:$0xff] }
 0x406   :  { %6048 = vmatpush3.bf16.msra.mxu1 %v6047_v9  ;;  %v2675_v9 = vld [vmem:[%s10355_s5 + $0x770] sm:$0xff]  ;;  %v6073_v31 = vpack.c.bf16 %v2712_v48, %v2711_v4  ;;  %v6095_v34 = vpack.c.bf16 %v2706_v40, %v2705_v0  ;;  %v2773_v4 = vld [vmem:[%s10355_s5 + $0xa80] sm:$0xff]  ;;  %v2774_v48 = vld [vmem:[%s10355_s5 + $0xa88] sm:$0xff] }
 0x407   :  { %6050 = vmatprep.subr.bf16.mxu1 %v6049_v25  ;;  %v2676_v25 = vld [vmem:[%s10355_s5 + $0x778] sm:$0xff]  ;;  %v6133_v30 = vpack.c.bf16 %v2774_v48, %v2773_v4 }
 0x408   :  { %6024 = vmatpush3.bf16.msra.mxu0 %v6023_v28  ;;  %v2742_v28 = vld [vmem:[%s10355_s5 + $0x988] sm:$0xff]  ;;  %v6067_v2 = vpack.c.bf16 %v2676_v25, %v2675_v9  ;;  %v2725_v9 = vld [vmem:[%s10355_s5 + $0x900] sm:$0xff]  ;;  %v2748_v0 = vld [vmem:[%s10355_s5 + $0x9b8] sm:$0xff] }
 0x409   :  { %6026 = vmatprep.subr.bf16.mxu0 %v6025_v14  ;;  %v2696_v14 = vld [vmem:[%s10355_s5 + $0x818] sm:$0xff]  ;;  %v2726_v25 = vld [vmem:[%s10355_s5 + $0x908] sm:$0xff] }
 0x40a   :  { %6052 = vmatpush3.bf16.msra.mxu1 %v6051_v62  ;;  %v6101_v62 = vpack.c.bf16 %v2742_v28, %v2741_v60 }
 0x40b   :  { %6054 = vmatprep.subr.bf16.mxu1 %v6053_v3  ;;  %v6075_v3 = vpack.c.bf16 %v2696_v14, %v2695_v50  ;;  %v2744_v50 = vld [vmem:[%s10355_s5 + $0x998] sm:$0xff] }
 0x40c   :  { %6028 = vmatpush3.bf16.msra.mxu0 %v6027_v49  ;;  %v2715_v49 = vld [vmem:[%s10355_s5 + $0x8b0] sm:$0xff] }
 0x40d   :  { %6030 = vmatprep.subr.bf16.mxu0 %v6029_v11  ;;  %v6081_v11 = vpack.c.bf16 %v2716_v6, %v2715_v49  ;;  %v2727_v6 = vld [vmem:[%s10355_s5 + $0x910] sm:$0xff] }
 0x40e   :  { %6056 = vmatpush3.bf16.msra.mxu1 %v6055_v19  ;;  %v6083_v19 = vpack.c.bf16 %v2700_v5, %v2699_v46  ;;  %v6135_v5 = vpack.c.bf16 %v2758_v41, %v2757_v45 }
 0x40f   :  { %6058 = vmatprep.subr.bf16.mxu1 %v6057_v52  ;;  %v6085_v52 = vpack.c.bf16 %v2718_v8, %v2717_v23  ;;  %v2745_v23 = vld [vmem:[%s10355_s5 + $0x9a0] sm:$0xff] }
 0x410   :  { %6032 = vmatpush3.bf16.msra.mxu0 %v6031_v42  ;;  %v2719_v42 = vld [vmem:[%s10355_s5 + $0x8d0] sm:$0xff] }
 0x411   :  { %6034 = vmatprep.subr.bf16.mxu0 %v6033_v53  ;;  %v6089_v53 = vpack.c.bf16 %v2720_v38, %v2719_v42  ;;  %v2777_v38 = vld [vmem:[%s10355_s5 + $0xaa0] sm:$0xff] }
 0x412   :  { %6060 = vmatpush3.bf16.msra.mxu1 %v6059_v33  ;;  %v6091_v33 = vpack.c.bf16 %v2704_v43, %v2703_v1  ;;  %v2729_v1 = vld [vmem:[%s10355_s5 + $0x920] sm:$0xff]  ;;  %v2730_v43 = vld [vmem:[%s10355_s5 + $0x928] sm:$0xff] }
 0x413   :  { %6062 = vmatprep.subr.bf16.mxu1 %v6061_v56  ;;  %v6093_v56 = vpack.c.bf16 %v2722_v58, %v2721_v37 }
 0x414   :  { %6036 = vmatpush3.bf16.msra.mxu0 %v6035_v35  ;;  %v2723_v35 = vld [vmem:[%s10355_s5 + $0x8f0] sm:$0xff] }
 0x415   :  { %6070 = vmatprep.subr.bf16.mxu0 %v6069_v59  ;;  %v6097_v59 = vpack.c.bf16 %v2724_v10, %v2723_v35  ;;  %v2761_v10 = vld [vmem:[%s10355_s5 + $0xa20] sm:$0xff] }
 0x416   :  { %6064 = vmatpush3.bf16.msra.mxu1 %v6063_v51  ;;  %v6099_v51 = vpack.c.bf16 %v2708_v18, %v2707_v47  ;;  %v2779_v47 = vld [vmem:[%s10355_s5 + $0xab0] sm:$0xff]  ;;  %v2780_v18 = vld [vmem:[%s10355_s5 + $0xab8] sm:$0xff] }
 0x417   :  { %3607 = vmatmul.mubr.f32.vlgmr.msra.gmra.mrb[54].mxu0 %v2269_v17  ;;  %6066 = vmatprep.subr.bf16.mxu1 %v6065_v27 }
 0x418   :  { %6072 = vmatpush3.bf16.msra.mxu0 %v6071_v32 }
 0x419   :  { %6074 = vmatprep.subr.bf16.mxu0 %v6073_v31  ;;  %v2743_v31 = vld [vmem:[%s10355_s5 + $0x990] sm:$0xff] }
 0x41a   :  { %6068 = vmatpush3.bf16.msra.mxu1 %v6067_v2  ;;  %v6105_v49 = vpack.c.bf16 %v2744_v50, %v2743_v31 }
 0x41b   :  { %6102 = vmatprep.subr.bf16.mxu1 %v6101_v62  ;;  %v6103_v62 = vpack.c.bf16 %v2726_v25, %v2725_v9 }
 0x41c   :  { %6076 = vmatpush3.bf16.msra.mxu0 %v6075_v3  ;;  %v2775_v3 = vld [vmem:[%s10355_s5 + $0xa90] sm:$0xff] }
 0x41d   :  { %6078 = vmatprep.subr.bf16.mxu0 %v6077_v21  ;;  %v2776_v21 = vld [vmem:[%s10355_s5 + $0xa98] sm:$0xff] }
 0x420   :  { %6080 = vmatpush3.bf16.msra.mxu0 %v6079_v24  ;;  %v2728_v24 = vld [vmem:[%s10355_s5 + $0x918] sm:$0xff] }
 0x421   :  { %6082 = vmatprep.subr.bf16.mxu0 %v6081_v11  ;;  %v6107_v42 = vpack.c.bf16 %v2728_v24, %v2727_v6 }
 0x424   :  { %6084 = vmatpush3.bf16.msra.mxu0 %v6083_v19  ;;  %v6137_v19 = vpack.c.bf16 %v2776_v21, %v2775_v3 }
 0x425   :  { %6086 = vmatprep.subr.bf16.mxu0 %v6085_v52  ;;  %v2759_v52 = vld [vmem:[%s10355_s5 + $0xa10] sm:$0xff] }
 0x428   :  { %6088 = vmatpush3.bf16.msra.mxu0 %v6087_v12  ;;  %v2778_v12 = vld [vmem:[%s10355_s5 + $0xaa8] sm:$0xff] }
 0x429   :  { %6090 = vmatprep.subr.bf16.mxu0 %v6089_v53  ;;  %v6141_v35 = vpack.c.bf16 %v2778_v12, %v2777_v38  ;;  %v2784_v38 = vld [vmem:[%s10355_s5 + $0xad8] sm:$0xff] }
 0x42c   :  { %6092 = vmatpush3.bf16.msra.mxu0 %v6091_v33  ;;  %v6139_v33 = vpack.c.bf16 %v2760_v20, %v2759_v52 }
 0x42d   :  { %6094 = vmatprep.subr.bf16.mxu0 %v6093_v56  ;;  %v2747_v56 = vld [vmem:[%s10355_s5 + $0x9b0] sm:$0xff] }
 0x42e   :  { %v6113_v48 = vpack.c.bf16 %v2748_v0, %v2747_v56  ;;  %v2735_v0 = vld [vmem:[%s10355_s5 + $0x950] sm:$0xff] }
 0x430   :  { %6096 = vmatpush3.bf16.msra.mxu0 %v6095_v34  ;;  %v2762_v34 = vld [vmem:[%s10355_s5 + $0xa28] sm:$0xff] }
 0x431   :  { %6098 = vmatprep.subr.bf16.mxu0 %v6097_v59  ;;  %v6111_v59 = vpack.c.bf16 %v2730_v43, %v2729_v1 }
 0x434   :  { %6100 = vmatpush3.bf16.msra.mxu0 %v6099_v51  ;;  %v2731_v51 = vld [vmem:[%s10355_s5 + $0x930] sm:$0xff] }
 0x435   :  { %6134 = vmatprep.subr.bf16.mxu0 %v6133_v30  ;;  %v2732_v30 = vld [vmem:[%s10355_s5 + $0x938] sm:$0xff] }
 0x43e   :  { %v6528_v27 = vpop.permute.xlu1 %6527 }
 0x43f   :  { %v6530_v32 = vunpack.i.h.bf16 %v6528_v27  ;;  %v6529_v60 = vunpack.i.l.bf16 %v6528_v27  ;;  %v2763_v27 = vld [vmem:[%s10355_s5 + $0xa30] sm:$0xff] }
 0x440   :  { %v6533_v28 = vpop.permute.xlu0 %6532 }
 0x441   :  { %v6535_v14 = vunpack.i.h.bf16 %v6533_v28  ;;  %v6534_v17 = vunpack.i.l.bf16 %v6533_v28  ;;  %v2288_v46 = vsel %vm2216_vm14, %v6529_v60, %v6530_v32  ;;  %v6143_v32 = vpack.c.bf16 %v2762_v34, %v2761_v10  ;;  %v2750_v28 = vld [vmem:[%s10355_s5 + $0x9c8] sm:$0xff] }
 0x442   :  { %v1721_v2 = vpop.permute.xlu1 %1720 }
 0x443   :  { %v2278_v26 = vsel %vm2205_vm13, %v6534_v17, %v6535_v14  ;;  %v2422_v16 = vsel %vm2205_vm13, %v8259_v63, %v6534_v17  ;;  %v2746_v63 = vld [vmem:[%s10355_s5 + $0x9a8] sm:$0xff]  ;;  %v2423_v39 = vsel %vm2216_vm14, %v6535_v14, %v6529_v60  ;;  %v2749_v60 = vld [vmem:[%s10355_s5 + $0x9c0] sm:$0xff] }
 0x444   :  { %v8957_v11 = vpop.permute.xlu0 %2293  ;;  %3676 = vmatprep.mubr.f32.mxu1 %v2278_v26  ;;  %v6109_v53 = vpack.c.bf16 %v2746_v63, %v2745_v23  ;;  %v2733_v14 = vld [vmem:[%s10355_s5 + $0x940] sm:$0xff]  ;;  %v2734_v17 = vld [vmem:[%s10355_s5 + $0x948] sm:$0xff]  ;;  %v2751_v63 = vld [vmem:[%s10355_s5 + $0x9d0] sm:$0xff] }
 0x445   :  { %3677 = vmatmul.mubr.f32.vlgmr.msra.gmra.mrb[54].mxu1 %v2422_v16  ;;  %v2424_v8 = vsel %vm1744_vm12, %v2288_v46, %v8957_v11  ;;  %v6117_v16 = vpack.c.bf16 %v2750_v28, %v2749_v60  ;;  %v6119_v23 = vpack.c.bf16 %v2734_v17, %v2733_v14  ;;  %v2785_v60 = vld [vmem:[%s10355_s5 + $0xae0] sm:$0xff]  ;;  %v2786_v28 = vld [vmem:[%s10355_s5 + $0xae8] sm:$0xff] }
 0x446   :  { %6104 = vmatpush3.bf16.msra.mxu1 %v6103_v62  ;;  %3746 = vmatprep.mubr.f32.mxu0 %v2424_v8  ;;  %v1737_v37 = vpop.permute.xlu1 %1736  ;;  %v2782_v62 = vld [vmem:[%s10355_s5 + $0xac8] sm:$0xff]  ;;  %v2752_v8 = vld [vmem:[%s10355_s5 + $0x9d8] sm:$0xff]  ;;  %v2737_v14 = vld [vmem:[%s10355_s5 + $0x960] sm:$0xff] }
 0x447   :  { %3747 = vmatmul.mubr.f32.vlgmr.msra.gmra.mrb[56].mxu0 %v2423_v39  ;;  %6106 = vmatprep.subr.bf16.mxu1 %v6105_v49  ;;  %v2766_v49 = vld [vmem:[%s10355_s5 + $0xa48] sm:$0xff]  ;;  %v6121_v56 = vpack.c.bf16 %v2752_v8, %v2751_v63  ;;  %v2739_v8 = vld [vmem:[%s10355_s5 + $0x970] sm:$0xff] }
 0x448   :  { %6136 = vmatpush3.bf16.msra.mxu0 %v6135_v5  ;;  %v1723_v58 = vpop.permute.xlu0 %1722  ;;  %v2738_v17 = vld [vmem:[%s10355_s5 + $0x968] sm:$0xff] }
 0x449   :  { %v1747_v40 = vsel %vm1744_vm12, %v1721_v2, %v1723_v58  ;;  %6138 = vmatprep.subr.bf16.mxu0 %v6137_v19  ;;  %v1774_v4 = vmax.f32 %v7793_v61, %v1723_v58  ;;  %v2764_v61 = vld [vmem:[%s10355_s5 + $0xa38] sm:$0xff]  ;;  %v6115_v2 = vpack.c.bf16 %v2732_v30, %v2731_v51 }
 0x44a   :  { %6108 = vmatpush3.bf16.msra.mxu1 %v6107_v42  ;;  %v1773_v9 = vmax.f32 %v7784_v54, %v1747_v40  ;;  %v6145_v54 = vpack.c.bf16 %v2780_v18, %v2779_v47  ;;  %v6147_v26 = vpack.c.bf16 %v2764_v61, %v2763_v27  ;;  %v2783_v42 = vld [vmem:[%s10355_s5 + $0xad0] sm:$0xff]  ;;  %v2736_v40 = vld [vmem:[%s10355_s5 + $0x958] sm:$0xff]  ;;  %v2753_v18 = vld [vmem:[%s10355_s5 + $0x9e0] sm:$0xff] }
 0x44b   :  { %6110 = vmatprep.subr.bf16.mxu1 %v6109_v53  ;;  %v9034_v45 = vpop.permute.xlu1 %2295  ;;  %v9044_v3 = vrot.slane %v1774_v4, %v8016_v57  ;;  %v2122_v58 = vcombine.high %v1774_v4, %v6600_v7  ;;  %v6153_v47 = vpack.c.bf16 %v2784_v38, %v2783_v42  ;;  %v2754_v4 = vld [vmem:[%s10355_s5 + $0x9e8] sm:$0xff]  ;;  %v2767_v27 = vld [vmem:[%s10355_s5 + $0xa50] sm:$0xff]  ;;  %v2805_v38 = vld [vmem:[%s10355_s5 + $0xb80] sm:$0xff] }
 0x44c   :  { %6140 = vmatpush3.bf16.msra.mxu0 %v6139_v33  ;;  %v1739_v25 = vpop.permute.xlu0 %1738  ;;  %v1920_v6 = vrot.slane %v1773_v9, %v8016_v57  ;;  %v2771_v42 = vld [vmem:[%s10355_s5 + $0xa70] sm:$0xff] }
 0x44d   :  { %v1751_v31 = vsel %vm1744_vm12, %v1737_v37, %v1739_v25  ;;  %v1780_v50 = vmax.f32 %v7832_v44, %v1739_v25  ;;  %6142 = vmatprep.subr.bf16.mxu0 %v6141_v35  ;;  %v2781_v44 = vld [vmem:[%s10355_s5 + $0xac0] sm:$0xff]  ;;  %v1913_v37 = vcombine.high %v1773_v9, %v6600_v7  ;;  %v2768_v9 = vld [vmem:[%s10355_s5 + $0xa58] sm:$0xff]  ;;  %v6123_v25 = vpack.c.bf16 %v2736_v40, %v2735_v0 }
 0x44e   :  { %v1779_v41 = vmax.f32 %v7827_v15, %v1751_v31  ;;  %6112 = vmatpush3.bf16.msra.mxu1 %v6111_v59  ;;  %v2765_v15 = vld [vmem:[%s10355_s5 + $0xa40] sm:$0xff]  ;;  %v6149_v39 = vpack.c.bf16 %v2782_v62, %v2781_v44  ;;  %v2755_v44 = vld [vmem:[%s10355_s5 + $0x9f0] sm:$0xff]  ;;  %v2756_v62 = vld [vmem:[%s10355_s5 + $0x9f8] sm:$0xff] }
 0x44f   :  { %v9047_v21 = vrot.slane %v1780_v50, %v8016_v57  ;;  %6114 = vmatprep.subr.bf16.mxu1 %v6113_v48  ;;  %v2137_v46 = vcombine.high %v1780_v50, %v6600_v7  ;;  %v6151_v43 = vpack.c.bf16 %v2766_v49, %v2765_v15  ;;  %v9093_v34 = vpop.permute.xlu1 %2313  ;;  %v9131_v31 = vrot.slane %v1913_v37, %v8016_v57  ;;  %v2770_v15 = vld [vmem:[%s10355_s5 + $0xa68] sm:$0xff]  ;;  %v2787_v49 = vld [vmem:[%s10355_s5 + $0xaf0] sm:$0xff]  ;;  %v2837_v40 = vld [vmem:[%s10355_s5 + $0xc80] sm:$0xff] }
 0x450   :  { %v1935_v24 = vrot.slane %v1779_v41, %v8016_v57  ;;  %6144 = vmatpush3.bf16.msra.mxu0 %v6143_v32  ;;  %v1928_v19 = vcombine.high %v1779_v41, %v6600_v7  ;;  %v9134_v50 = vrot.slane %v2122_v58, %v8016_v57  ;;  %v6129_v63 = vpack.c.bf16 %v2756_v62, %v2755_v44  ;;  %v2772_v58 = vld [vmem:[%s10355_s5 + $0xa78] sm:$0xff] }
 0x451   :  { %v9058_v5 = vpop.permute.xlu0 %6537  ;;  %v2152_v52 = vcombine.low %v9044_v3, %v9047_v21  ;;  %6146 = vmatprep.subr.bf16.mxu0 %v6145_v54  ;;  %v9089_v35 = vrot.slane %v2137_v46, %v8016_v57  ;;  %v2153_v10 = vcombine.high %v9044_v3, %v9047_v21  ;;  %v6125_v54 = vpack.c.bf16 %v2754_v4, %v2753_v18  ;;  %v2789_v18 = vld [vmem:[%s10355_s5 + $0xb00] sm:$0xff]  ;;  %v2790_v4 = vld [vmem:[%s10355_s5 + $0xb08] sm:$0xff] }
 0x452   :  { %v6540_v20 = vunpack.i.h.bf16 %v9058_v5  ;;  %v1943_v12 = vcombine.low %v1920_v6, %v1935_v24  ;;  %v6539_v53 = vunpack.i.l.bf16 %v9058_v5  ;;  %6116 = vmatpush3.bf16.msra.mxu1 %v6115_v2  ;;  %v1944_v1 = vcombine.high %v1920_v6, %v1935_v24  ;;  %v2788_v6 = vld [vmem:[%s10355_s5 + $0xaf8] sm:$0xff]  ;;  %v2794_v5 = vld [vmem:[%s10355_s5 + $0xb28] sm:$0xff] }
 0x453   :  { %v9080_v33 = vrot.slane %v2152_v52, %v8042_v22  ;;  %6118 = vmatprep.subr.bf16.mxu1 %v6117_v16  ;;  %v9106_v48 = vrot.slane %v1928_v19, %v8016_v57  ;;  %v6155_v2 = vpack.c.bf16 %v2768_v9, %v2767_v27  ;;  %v2769_v57 = vld [vmem:[%s10355_s5 + $0xa60] sm:$0xff]  ;;  %v9157_v21 = vrot.slane %v2153_v10, %v8042_v22  ;;  %v2740_v19 = vld [vmem:[%s10355_s5 + $0x978] sm:$0xff]  ;;  %v2838_v10 = vld [vmem:[%s10355_s5 + $0xc88] sm:$0xff] }
 0x454   :  { %6148 = vmatpush3.bf16.msra.mxu0 %v6147_v26  ;;  %v2425_v59 = vsel %vm2236_vm15, %v9034_v45, %v6539_v53  ;;  %v2426_v51 = vsel %vm2247_vm0, %v6540_v20, %v9093_v34  ;;  %v1958_v30 = vrot.slane %v1944_v1, %v8042_v22  ;;  %v9120_v32 = vrot.slane %v1943_v12, %v8042_v22  ;;  %v2806_v12 = vld [vmem:[%s10355_s5 + $0xb88] sm:$0xff]  ;;  %v9190_v1 = vpop.permute.xlu1 %6542 }
 0x455   :  { %3816 = vmatprep.mubr.f32.mxu1 %v2425_v59  ;;  %6150 = vmatprep.subr.bf16.mxu0 %v6149_v39  ;;  %v2184_v61 = vcombine.high %v9080_v33, %v6600_v7  ;;  %v1959_v3 = vcombine.low %v9131_v31, %v9106_v48  ;;  %v2168_v26 = vcombine.low %v9134_v50, %v9089_v35  ;;  %v6544_v27 = vunpack.i.l.bf16 %v9190_v1 }
 0x456   :  { %3886 = vmatprep.mubr.f32.mxu0 %v2426_v51  ;;  %6120 = vmatpush3.bf16.msra.mxu1 %v6119_v23  ;;  %v1975_v41 = vcombine.high %v9120_v32, %v6600_v7  ;;  %v6157_v16 = vpack.c.bf16 %v2786_v28, %v2785_v60  ;;  %v6127_v46 = vpack.c.bf16 %v2738_v17, %v2737_v14  ;;  %v9170_v23 = vpop.permute.xlu0 %2315  ;;  %v2821_v51 = vld [vmem:[%s10355_s5 + $0xc00] sm:$0xff]  ;;  %v2807_v60 = vld [vmem:[%s10355_s5 + $0xb90] sm:$0xff]  ;;  %v2808_v28 = vld [vmem:[%s10355_s5 + $0xb98] sm:$0xff] }
 0x457   :  { %2351 = vrot.lane.b32.xlu0 %v1958_v30, %s6607_s17  ;;  %6122 = vmatprep.subr.bf16.mxu1 %v6121_v56  ;;  %v6159_v52 = vpack.c.bf16 %v2770_v15, %v2769_v57  ;;  %v6161_v39 = vpack.c.bf16 %v2788_v6, %v2787_v49  ;;  %v2185_v37 = vcombine.high %v9157_v21, %v6600_v7  ;;  %v2792_v57 = vld [vmem:[%s10355_s5 + $0xb18] sm:$0xff] }
 0x458   :  { %6152 = vmatpush3.bf16.msra.mxu0 %v6151_v43  ;;  %v6551_v24 = vpack.i.bf16 %v2184_v61, %v1975_v41  ;;  %v1976_v43 = vcombine.high %v1958_v30, %v6600_v7  ;;  %v9199_v56 = vrot.slane %v1959_v3, %v8042_v22  ;;  %v9202_v0 = vrot.slane %v2168_v26, %v8042_v22  ;;  %v2822_v61 = vld [vmem:[%s10355_s5 + $0xc08] sm:$0xff]  ;;  %v2840_v15 = vld [vmem:[%s10355_s5 + $0xc98] sm:$0xff] }
 0x459   :  { %6154 = vmatprep.subr.bf16.mxu0 %v6153_v47  ;;  %v6131_v59 = vpack.c.bf16 %v2740_v19, %v2739_v8  ;;  %v6165_v47 = vpack.c.bf16 %v2806_v12, %v2805_v38  ;;  %v6545_v30 = vunpack.i.h.bf16 %v9190_v1  ;;  %v6163_v9 = vpack.c.bf16 %v2772_v58, %v2771_v42  ;;  %v2823_v8 = vld [vmem:[%s10355_s5 + $0xc10] sm:$0xff]  ;;  %v2824_v19 = vld [vmem:[%s10355_s5 + $0xc18] sm:$0xff]  ;;  %v2841_v38 = vld [vmem:[%s10355_s5 + $0xca0] sm:$0xff] }
 0x45a   :  { %6124 = vmatpush3.bf16.msra.mxu1 %v6123_v25  ;;  %6552 = vrot.lane.b32.xlu1 %v6551_v24, %s6606_s16  ;;  %v6197_v25 = vpack.c.bf16 %v2838_v10, %v2837_v40  ;;  %v6556_v14 = vpack.i.bf16 %v2185_v37, %v1976_v43  ;;  %v1977_v17 = vcombine.high %v9199_v56, %v6600_v7  ;;  %v2809_v24 = vld [vmem:[%s10355_s5 + $0xba0] sm:$0xff]  ;;  %v2842_v12 = vld [vmem:[%s10355_s5 + $0xca8] sm:$0xff]  ;;  %v2811_v43 = vld [vmem:[%s10355_s5 + $0xbb0] sm:$0xff] }
 0x45b   :  { %1726 = vrot.lane.b32.xlu0 %v7789_v29, %s6603_s4  ;;  %6126 = vmatprep.subr.bf16.mxu1 %v6125_v54  ;;  %v9234_v54 = vpop.permute.xlu0 %6547  ;;  %v2186_v41 = vcombine.high %v9202_v0, %v6600_v7  ;;  %v1960_v44 = vcombine.high %v9131_v31, %v9106_v48  ;;  %v6167_v62 = vpack.c.bf16 %v2790_v4, %v2789_v18  ;;  %v2812_v37 = vld [vmem:[%s10355_s5 + $0xbb8] sm:$0xff]  ;;  %v2826_v10 = vld [vmem:[%s10355_s5 + $0xc28] sm:$0xff]  ;;  %v2843_v4 = vld [vmem:[%s10355_s5 + $0xcb0] sm:$0xff] }
 0x45c   :  { %6156 = vmatpush3.bf16.msra.mxu0 %v6155_v2  ;;  %v2791_v2 = vld [vmem:[%s10355_s5 + $0xb10] sm:$0xff]  ;;  %v6199_v3 = vpack.c.bf16 %v2822_v61, %v2821_v51  ;;  %v6169_v26 = vpack.c.bf16 %v2808_v28, %v2807_v60  ;;  %v2297_v49 = vsel %vm1744_vm12, %v8957_v11, %v9034_v45  ;;  %v6550_v48 = vunpack.i.h.bf16 %v9234_v54  ;;  %v2844_v51 = vld [vmem:[%s10355_s5 + $0xcb8] sm:$0xff]  ;;  %v2813_v61 = vld [vmem:[%s10355_s5 + $0xbc0] sm:$0xff] }
 0x45d   :  { %6158 = vmatprep.subr.bf16.mxu0 %v6157_v16  ;;  %v2839_v16 = vld [vmem:[%s10355_s5 + $0xc90] sm:$0xff]  ;;  %v6549_v31 = vunpack.i.l.bf16 %v9234_v54  ;;  %v6171_v6 = vpack.c.bf16 %v2792_v57, %v2791_v2  ;;  %v2326_v11 = vsel %vm2257_vm1, %v6544_v27, %v6545_v30  ;;  %v6571_v45 = vpack.i.bf16 %v2186_v41, %v1977_v17  ;;  %v2814_v60 = vld [vmem:[%s10355_s5 + $0xbc8] sm:$0xff]  ;;  %v2828_v17 = vld [vmem:[%s10355_s5 + $0xc38] sm:$0xff] }
 0x45e   :  { %6128 = vmatpush3.bf16.msra.mxu1 %v6127_v46  ;;  %1724 = vrot.lane.b32.xlu1 %v7769_v13, %s6603_s4  ;;  %v2810_v46 = vld [vmem:[%s10355_s5 + $0xba8] sm:$0xff]  ;;  %v6201_v42 = vpack.c.bf16 %v2840_v15, %v2839_v16  ;;  %v6205_v40 = vpack.c.bf16 %v2842_v12, %v2841_v38  ;;  %v6209_v28 = vpack.c.bf16 %v2844_v51, %v2843_v4  ;;  %v2845_v57 = vld [vmem:[%s10355_s5 + $0xcc0] sm:$0xff]  ;;  %v2815_v15 = vld [vmem:[%s10355_s5 + $0xbd0] sm:$0xff] }
 0x45f   :  { %1742 = vrot.lane.b32.xlu0 %v7822_v36, %s6603_s4  ;;  %6130 = vmatprep.subr.bf16.mxu1 %v6129_v63  ;;  %v1974_v63 = vrot.slane %v1960_v44, %v8042_v22  ;;  %v2846_v44 = vld [vmem:[%s10355_s5 + $0xcc8] sm:$0xff]  ;;  %v2851_v51 = vld [vmem:[%s10355_s5 + $0xcf0] sm:$0xff]  ;;  %v2857_v54 = vld [vmem:[%s10355_s5 + $0xd20] sm:$0xff] }
 0x460   :  { %6160 = vmatpush3.bf16.msra.mxu0 %v6159_v52  ;;  %v2169_v52 = vcombine.high %v9134_v50, %v9089_v35  ;;  %v6173_v35 = vpack.c.bf16 %v2810_v46, %v2809_v24  ;;  %v2793_v50 = vld [vmem:[%s10355_s5 + $0xb20] sm:$0xff]  ;;  %v2830_v24 = vld [vmem:[%s10355_s5 + $0xc48] sm:$0xff] }
 0x461   :  { %6162 = vmatprep.subr.bf16.mxu0 %v6161_v39  ;;  %v2307_v39 = vsel %vm2236_vm15, %v6539_v53, %v6540_v20  ;;  %v2336_v20 = vsel %vm2268_vm2, %v6549_v31, %v6550_v48  ;;  %v6203_v53 = vpack.c.bf16 %v2824_v19, %v2823_v8  ;;  %v1978_v58 = vcombine.high %v1974_v63, %v6600_v7  ;;  %v2799_v19 = vld [vmem:[%s10355_s5 + $0xb50] sm:$0xff]  ;;  %v2818_v38 = vld [vmem:[%s10355_s5 + $0xbe8] sm:$0xff] }
 0x462   :  { %6132 = vmatpush3.bf16.msra.mxu1 %v6131_v59  ;;  %1740 = vrot.lane.b32.xlu1 %v7816_v55, %s6603_s4  ;;  %v6561_v59 = vpack.i.bf16 %v9202_v0, %v9199_v56  ;;  %v2183_v18 = vrot.slane %v2169_v52, %v8042_v22  ;;  %v2795_v56 = vld [vmem:[%s10355_s5 + $0xb30] sm:$0xff]  ;;  %v2796_v0 = vld [vmem:[%s10355_s5 + $0xb38] sm:$0xff]  ;;  %v6213_v48 = vpack.c.bf16 %v2846_v44, %v2845_v57  ;;  %v2901_v57 = vld [vmem:[%s10355_s5 + $0xe80] sm:$0xff] }
 0x463   :  { %6557 = vrot.lane.b32.xlu0 %v6556_v14, %s6603_s4  ;;  %6166 = vmatprep.subr.bf16.mxu1 %v6165_v47  ;;  %v6175_v47 = vpack.c.bf16 %v2794_v5, %v2793_v50  ;;  %v2827_v14 = vld [vmem:[%s10355_s5 + $0xc30] sm:$0xff]  ;;  %v6179_v2 = vpack.c.bf16 %v2796_v0, %v2795_v56  ;;  %v2800_v52 = vld [vmem:[%s10355_s5 + $0xb58] sm:$0xff]  ;;  %v2902_v44 = vld [vmem:[%s10355_s5 + $0xe88] sm:$0xff] }
 0x464   :  { %6164 = vmatpush3.bf16.msra.mxu0 %v6163_v9  ;;  %v6177_v9 = vpack.c.bf16 %v2812_v37, %v2811_v43  ;;  %v6566_v41 = vpack.i.bf16 %v2183_v18, %v1974_v63  ;;  %v6211_v16 = vpack.c.bf16 %v2828_v17, %v2827_v14  ;;  %v2187_v46 = vcombine.high %v2183_v18, %v6600_v7  ;;  %v2848_v63 = vld [vmem:[%s10355_s5 + $0xcd8] sm:$0xff]  ;;  %v2801_v37 = vld [vmem:[%s10355_s5 + $0xb60] sm:$0xff]  ;;  %v2834_v18 = vld [vmem:[%s10355_s5 + $0xc68] sm:$0xff] }
 0x465   :  { %3817 = vmatmul.mubr.f32.vlgmr.msra.gmra.mrb[56].mxu1 %v2297_v49  ;;  %6198 = vmatprep.subr.bf16.mxu0 %v6197_v25  ;;  %v2816_v49 = vld [vmem:[%s10355_s5 + $0xbd8] sm:$0xff]  ;;  %v6187_v5 = vpack.c.bf16 %v2800_v52, %v2799_v19  ;;  %v2803_v0 = vld [vmem:[%s10355_s5 + $0xb70] sm:$0xff]  ;;  %v2858_v1 = vld [vmem:[%s10355_s5 + $0xd28] sm:$0xff] }
 0x466   :  { %6168 = vmatpush3.bf16.msra.mxu1 %v6167_v62  ;;  %3956 = vmatprep.mubr.f32.mxu1 %v2326_v11  ;;  %v6181_v62 = vpack.c.bf16 %v2814_v60, %v2813_v61  ;;  %v6185_v8 = vpack.c.bf16 %v2816_v49, %v2815_v15  ;;  %v2832_v50 = vld [vmem:[%s10355_s5 + $0xc58] sm:$0xff]  ;;  %v2869_v60 = vld [vmem:[%s10355_s5 + $0xd80] sm:$0xff]  ;;  %v2835_v17 = vld [vmem:[%s10355_s5 + $0xc70] sm:$0xff] }
 0x467   :  { %6572 = vrot.lane.b32.xlu0 %v6571_v45, %s6608_s0  ;;  %3887 = vmatmul.mubr.f32.vlgmr.msra.gmra.mrb[58].mxu0 %v2307_v39  ;;  %v2847_v45 = vld [vmem:[%s10355_s5 + $0xcd0] sm:$0xff]  ;;  %v2872_v49 = vld [vmem:[%s10355_s5 + $0xd98] sm:$0xff] }
 0x468   :  { %2353 = vrot.lane.b32.xlu1 %v9157_v21, %s6607_s17  ;;  %6200 = vmatpush3.bf16.msra.mxu0 %v6199_v3  ;;  %v2825_v21 = vld [vmem:[%s10355_s5 + $0xc20] sm:$0xff]  ;;  %v6217_v12 = vpack.c.bf16 %v2848_v63, %v2847_v45  ;;  %v2871_v15 = vld [vmem:[%s10355_s5 + $0xd90] sm:$0xff] }
 0x469   :  { %4026 = vmatprep.mubr.f32.mxu0 %v2336_v20  ;;  %6170 = vmatprep.subr.bf16.mxu1 %v6169_v26  ;;  %v6207_v25 = vpack.c.bf16 %v2826_v10, %v2825_v21  ;;  %v2797_v3 = vld [vmem:[%s10355_s5 + $0xb40] sm:$0xff]  ;;  %v2798_v26 = vld [vmem:[%s10355_s5 + $0xb48] sm:$0xff]  ;;  %v2819_v21 = vld [vmem:[%s10355_s5 + $0xbf0] sm:$0xff] }
 0x46a   :  { %6172 = vmatpush3.bf16.msra.mxu1 %v6171_v6  ;;  %6202 = vmatprep.subr.bf16.mxu0 %v6201_v42  ;;  %v2829_v6 = vld [vmem:[%s10355_s5 + $0xc40] sm:$0xff]  ;;  %v6183_v11 = vpack.c.bf16 %v2798_v26, %v2797_v3  ;;  %v2820_v10 = vld [vmem:[%s10355_s5 + $0xbf8] sm:$0xff]  ;;  %v2854_v26 = vld [vmem:[%s10355_s5 + $0xd08] sm:$0xff] }
 0x46b   :  { %2399 = vrot.lane.b32.xlu0 %v1978_v58, %s6611_s20  ;;  %6174 = vmatprep.subr.bf16.mxu1 %v6173_v35  ;;  %v6215_v39 = vpack.c.bf16 %v2830_v24, %v2829_v6  ;;  %v2817_v42 = vld [vmem:[%s10355_s5 + $0xbe0] sm:$0xff]  ;;  %v2831_v35 = vld [vmem:[%s10355_s5 + $0xc50] sm:$0xff]  ;;  %v2802_v58 = vld [vmem:[%s10355_s5 + $0xb68] sm:$0xff]  ;;  %v6193_v56 = vpack.c.bf16 %v2820_v10, %v2819_v21  ;;  %v6261_v6 = vpack.c.bf16 %v2902_v44, %v2901_v57 }
 0x46c   :  { %6562 = vrot.lane.b32.xlu1 %v6561_v59, %s6609_s18  ;;  %6204 = vmatpush3.bf16.msra.mxu0 %v6203_v53  ;;  %v2849_v20 = vld [vmem:[%s10355_s5 + $0xce0] sm:$0xff]  ;;  %v2850_v53 = vld [vmem:[%s10355_s5 + $0xce8] sm:$0xff]  ;;  %v6189_v43 = vpack.c.bf16 %v2818_v38, %v2817_v42  ;;  %v6191_v4 = vpack.c.bf16 %v2802_v58, %v2801_v37  ;;  %v2903_v45 = vld [vmem:[%s10355_s5 + $0xe90] sm:$0xff] }
 0x46d   :  { %6206 = vmatprep.subr.bf16.mxu0 %v6205_v40  ;;  %v6219_v40 = vpack.c.bf16 %v2832_v50, %v2831_v35  ;;  %v6221_v59 = vpack.c.bf16 %v2850_v53, %v2849_v20  ;;  %v2853_v3 = vld [vmem:[%s10355_s5 + $0xd00] sm:$0xff]  ;;  %v2855_v63 = vld [vmem:[%s10355_s5 + $0xd10] sm:$0xff]  ;;  %v2874_v42 = vld [vmem:[%s10355_s5 + $0xda8] sm:$0xff]  ;;  %v2428_v35 = vsel %vm2268_vm2, %v6545_v30, %v6549_v31 }
 0x46e   :  { %6176 = vmatpush3.bf16.msra.mxu1 %v6175_v47  ;;  %v2833_v47 = vld [vmem:[%s10355_s5 + $0xc60] sm:$0xff]  ;;  %v2906_v20 = vld [vmem:[%s10355_s5 + $0xea8] sm:$0xff]  ;;  %v2875_v31 = vld [vmem:[%s10355_s5 + $0xdb0] sm:$0xff] }
 0x46f   :  { %6178 = vmatprep.subr.bf16.mxu1 %v6177_v9  ;;  %v2852_v9 = vld [vmem:[%s10355_s5 + $0xcf8] sm:$0xff]  ;;  %v6223_v61 = vpack.c.bf16 %v2834_v18, %v2833_v47  ;;  %v2885_v24 = vld [vmem:[%s10355_s5 + $0xe00] sm:$0xff]  ;;  %v2890_v21 = vld [vmem:[%s10355_s5 + $0xe28] sm:$0xff] }
 0x470   :  { %6567 = vrot.lane.b32.xlu1 %v6566_v41, %s6610_s19  ;;  %6208 = vmatpush3.bf16.msra.mxu0 %v6207_v25  ;;  %v2804_v25 = vld [vmem:[%s10355_s5 + $0xb78] sm:$0xff]  ;;  %v6225_v14 = vpack.c.bf16 %v2852_v9, %v2851_v51  ;;  %v2907_v47 = vld [vmem:[%s10355_s5 + $0xeb0] sm:$0xff]  ;;  %v2910_v57 = vld [vmem:[%s10355_s5 + $0xec8] sm:$0xff] }
 0x471   :  { %6210 = vmatprep.subr.bf16.mxu0 %v6209_v28  ;;  %v2870_v28 = vld [vmem:[%s10355_s5 + $0xd88] sm:$0xff]  ;;  %v2836_v41 = vld [vmem:[%s10355_s5 + $0xc78] sm:$0xff]  ;;  %v2859_v9 = vld [vmem:[%s10355_s5 + $0xd30] sm:$0xff] }
 0x472   :  { %6180 = vmatpush3.bf16.msra.mxu1 %v6179_v2  ;;  %v6195_v2 = vpack.c.bf16 %v2804_v25, %v2803_v0  ;;  %v2908_v18 = vld [vmem:[%s10355_s5 + $0xeb8] sm:$0xff]  ;;  %v2877_v25 = vld [vmem:[%s10355_s5 + $0xdc0] sm:$0xff] }
 0x473   :  { %6182 = vmatprep.subr.bf16.mxu1 %v6181_v62  ;;  %v6229_v62 = vpack.c.bf16 %v2870_v28, %v2869_v60  ;;  %v6273_v60 = vpack.c.bf16 %v2908_v18, %v2907_v47  ;;  %v2891_v28 = vld [vmem:[%s10355_s5 + $0xe30] sm:$0xff]  ;;  %v2916_v47 = vld [vmem:[%s10355_s5 + $0xef8] sm:$0xff] }
 0x474   :  { %2401 = vrot.lane.b32.xlu1 %v2187_v46, %s6611_s20  ;;  %6212 = vmatpush3.bf16.msra.mxu0 %v6211_v16  ;;  %v6227_v16 = vpack.c.bf16 %v2836_v41, %v2835_v17  ;;  %v2886_v46 = vld [vmem:[%s10355_s5 + $0xe08] sm:$0xff]  ;;  %v4874_v17 = vld [vmem:[%s10356_s6] ss:$0 sm:$0xff] }
 0x475   :  { %6214 = vmatprep.subr.bf16.mxu0 %v6213_v48  ;;  %v2317_v48 = vsel %vm2247_vm0, %v9093_v34, %v9170_v23  ;;  %v2904_v34 = vld [vmem:[%s10355_s5 + $0xe98] sm:$0xff]  ;;  %v6233_v23 = vpack.c.bf16 %v2872_v49, %v2871_v15  ;;  %v6263_v52 = vpack.c.bf16 %v2886_v46, %v2885_v24  ;;  %v2879_v49 = vld [vmem:[%s10355_s5 + $0xdd0] sm:$0xff] }
 0x476   :  { %6184 = vmatpush3.bf16.msra.mxu1 %v6183_v11  ;;  %v6231_v11 = vpack.c.bf16 %v2854_v26, %v2853_v3  ;;  %v2427_v19 = vsel %vm2257_vm1, %v2317_v48, %v6544_v27  ;;  %v6265_v38 = vpack.c.bf16 %v2904_v34, %v2903_v45  ;;  %v2888_v27 = vld [vmem:[%s10355_s5 + $0xe18] sm:$0xff]  ;;  %v2861_v3 = vld [vmem:[%s10355_s5 + $0xd40] sm:$0xff]  ;;  %v2862_v26 = vld [vmem:[%s10355_s5 + $0xd48] sm:$0xff] }
 0x477   :  { %6186 = vmatprep.subr.bf16.mxu1 %v6185_v8  ;;  %v2856_v8 = vld [vmem:[%s10355_s5 + $0xd18] sm:$0xff]  ;;  %v2894_v45 = vld [vmem:[%s10355_s5 + $0xe48] sm:$0xff]  ;;  %v6247_v34 = vpack.c.bf16 %v2862_v26, %v2861_v3 }
 0x478   :  { %6216 = vmatpush3.bf16.msra.mxu0 %v6215_v39  ;;  %v2873_v39 = vld [vmem:[%s10355_s5 + $0xda0] sm:$0xff]  ;;  %v6235_v50 = vpack.c.bf16 %v2856_v8, %v2855_v63  ;;  %v2880_v48 = vld [vmem:[%s10355_s5 + $0xdd8] sm:$0xff] }
 0x479   :  { %6218 = vmatprep.subr.bf16.mxu0 %v6217_v12  ;;  %v2887_v12 = vld [vmem:[%s10355_s5 + $0xe10] sm:$0xff]  ;;  %v6237_v53 = vpack.c.bf16 %v2874_v42, %v2873_v39  ;;  %v2912_v63 = vld [vmem:[%s10355_s5 + $0xed8] sm:$0xff] }
 0x47a   :  { %6188 = vmatpush3.bf16.msra.mxu1 %v6187_v5  ;;  %v2905_v5 = vld [vmem:[%s10355_s5 + $0xea0] sm:$0xff]  ;;  %v6267_v30 = vpack.c.bf16 %v2888_v27, %v2887_v12  ;;  %v2864_v39 = vld [vmem:[%s10355_s5 + $0xd58] sm:$0xff]  ;;  %v2882_v12 = vld [vmem:[%s10355_s5 + $0xde8] sm:$0xff] }
 0x47b   :  { %6190 = vmatprep.subr.bf16.mxu1 %v6189_v43  ;;  %v2876_v43 = vld [vmem:[%s10355_s5 + $0xdb8] sm:$0xff]  ;;  %v6269_v58 = vpack.c.bf16 %v2906_v20, %v2905_v5  ;;  %v2913_v20 = vld [vmem:[%s10355_s5 + $0xee0] sm:$0xff] }
 0x47c   :  { %6220 = vmatpush3.bf16.msra.mxu0 %v6219_v40  ;;  %v2889_v40 = vld [vmem:[%s10355_s5 + $0xe20] sm:$0xff]  ;;  %v6241_v51 = vpack.c.bf16 %v2876_v43, %v2875_v31  ;;  %v2883_v43 = vld [vmem:[%s10355_s5 + $0xdf0] sm:$0xff] }
 0x47d   :  { %6222 = vmatprep.subr.bf16.mxu0 %v6221_v59  ;;  %v6239_v59 = vpack.c.bf16 %v2858_v1, %v2857_v54  ;;  %v6271_v0 = vpack.c.bf16 %v2890_v21, %v2889_v40  ;;  %v2865_v1 = vld [vmem:[%s10355_s5 + $0xd60] sm:$0xff]  ;;  %v2898_v21 = vld [vmem:[%s10355_s5 + $0xe68] sm:$0xff] }
 0x47e   :  { %6192 = vmatpush3.bf16.msra.mxu1 %v6191_v4  ;;  %v2897_v40 = vld [vmem:[%s10355_s5 + $0xe60] sm:$0xff] }
 0x47f   :  { %6194 = vmatprep.subr.bf16.mxu1 %v6193_v56  ;;  %v2860_v56 = vld [vmem:[%s10355_s5 + $0xd38] sm:$0xff] }
 0x480   :  { %6224 = vmatpush3.bf16.msra.mxu0 %v6223_v61  ;;  %v2878_v61 = vld [vmem:[%s10355_s5 + $0xdc8] sm:$0xff]  ;;  %v6243_v41 = vpack.c.bf16 %v2860_v56, %v2859_v9  ;;  %v6287_v9 = vpack.c.bf16 %v2898_v21, %v2897_v40  ;;  %v2933_v56 = vld [vmem:[%s10355_s5 + $0xf80] sm:$0xff] }
 0x481   :  { %6226 = vmatprep.subr.bf16.mxu0 %v6225_v14  ;;  %v2892_v14 = vld [vmem:[%s10355_s5 + $0xe38] sm:$0xff] }
 0x482   :  { %6196 = vmatpush3.bf16.msra.mxu1 %v6195_v2  ;;  %v2909_v2 = vld [vmem:[%s10355_s5 + $0xec0] sm:$0xff]  ;;  %v6275_v15 = vpack.c.bf16 %v2892_v14, %v2891_v28 }
 0x483   :  { %6230 = vmatprep.subr.bf16.mxu1 %v6229_v62  ;;  %v6245_v62 = vpack.c.bf16 %v2878_v61, %v2877_v25  ;;  %v6277_v46 = vpack.c.bf16 %v2910_v57, %v2909_v2  ;;  %v2899_v61 = vld [vmem:[%s10355_s5 + $0xe70] sm:$0xff]  ;;  %v2965_v14 = vld [vmem:[%s10355_s5 + $0x1080] sm:$0xff] }
 0x484   :  { %6228 = vmatpush3.bf16.msra.mxu0 %v6227_v16 }
 0x485   :  { %3957 = vmatmul.mubr.f32.vlgmr.msra.gmra.mrb[58].mxu1 %v2427_v19  ;;  %6262 = vmatprep.subr.bf16.mxu0 %v6261_v6  ;;  %v6249_v19 = vpack.c.bf16 %v2880_v48, %v2879_v49 }
 0x486   :  { %6232 = vmatpush3.bf16.msra.mxu1 %v6231_v11  ;;  %v2893_v11 = vld [vmem:[%s10355_s5 + $0xe40] sm:$0xff] }
 0x487   :  { %4027 = vmatmul.mubr.f32.vlgmr.msra.gmra.mrb[60].mxu0 %v2428_v35  ;;  %6234 = vmatprep.subr.bf16.mxu1 %v6233_v23  ;;  %v2911_v23 = vld [vmem:[%s10355_s5 + $0xed0] sm:$0xff]  ;;  %v6279_v42 = vpack.c.bf16 %v2894_v45, %v2893_v11  ;;  %v2917_v45 = vld [vmem:[%s10355_s5 + $0xf00] sm:$0xff] }
 0x488   :  { %6264 = vmatpush3.bf16.msra.mxu0 %v6263_v52  ;;  %v2863_v52 = vld [vmem:[%s10355_s5 + $0xd50] sm:$0xff]  ;;  %v6281_v27 = vpack.c.bf16 %v2912_v63, %v2911_v23  ;;  %v2949_v23 = vld [vmem:[%s10355_s5 + $0x1000] sm:$0xff]  ;;  %v2950_v63 = vld [vmem:[%s10355_s5 + $0x1008] sm:$0xff] }
 0x489   :  { %6266 = vmatprep.subr.bf16.mxu0 %v6265_v38  ;;  %v2881_v38 = vld [vmem:[%s10355_s5 + $0xde0] sm:$0xff]  ;;  %v2895_v35 = vld [vmem:[%s10355_s5 + $0xe50] sm:$0xff]  ;;  %v6251_v5 = vpack.c.bf16 %v2864_v39, %v2863_v52  ;;  %v2936_v39 = vld [vmem:[%s10355_s5 + $0xf98] sm:$0xff] }
 0x48a   :  { %v4908_v37 = vpop.f32.mrb[48].mxu0  ;;  %6236 = vmatpush3.bf16.msra.mxu1 %v6235_v50  ;;  %v2896_v50 = vld [vmem:[%s10355_s5 + $0xe58] sm:$0xff]  ;;  %v6253_v54 = vpack.c.bf16 %v2882_v12, %v2881_v38 }
 0x48b   :  { %v4909_v10 = vpop.f32.mrb[49].mxu0  ;;  %6238 = vmatprep.subr.bf16.mxu1 %v6237_v53  ;;  %v2914_v53 = vld [vmem:[%s10355_s5 + $0xee8] sm:$0xff]  ;;  %v6283_v31 = vpack.c.bf16 %v2896_v50, %v2895_v35  ;;  %v2968_v38 = vld [vmem:[%s10355_s5 + $0x1098] sm:$0xff] }
 0x48c   :  { %v4910_v4 = vadd.f32 %v4909_v10, %v4908_v37  ;;  %6268 = vmatpush3.bf16.msra.mxu0 %v6267_v30  ;;  %v2866_v30 = vld [vmem:[%s10355_s5 + $0xd68] sm:$0xff]  ;;  %v2884_v37 = vld [vmem:[%s10355_s5 + $0xdf8] sm:$0xff] }
 0x48d   :  { %6270 = vmatprep.subr.bf16.mxu0 %v6269_v58  ;;  %v6285_v58 = vpack.c.bf16 %v2914_v53, %v2913_v20  ;;  %v6255_v10 = vpack.c.bf16 %v2866_v30, %v2865_v1  ;;  %v6257_v18 = vpack.c.bf16 %v2884_v37, %v2883_v43  ;;  %v6327_v53 = vpack.c.bf16 %v2950_v63, %v2949_v23  ;;  %v2919_v30 = vld [vmem:[%s10355_s5 + $0xf10] sm:$0xff] }
 0x48e   :  { %6240 = vmatpush3.bf16.msra.mxu1 %v6239_v59  ;;  %v3189_v6 = vadd.f32 %v4910_v4, %v4874_v17  ;;  %v2915_v59 = vld [vmem:[%s10355_s5 + $0xef0] sm:$0xff]  ;;  %v2966_v17 = vld [vmem:[%s10355_s5 + $0x1088] sm:$0xff] }
 0x48f   :  { %6242 = vmatprep.subr.bf16.mxu1 %v6241_v51  ;;  %v2867_v4 = vld [vmem:[%s10355_s5 + $0xd70] sm:$0xff]  ;;  %v2868_v51 = vld [vmem:[%s10355_s5 + $0xd78] sm:$0xff]  ;;  %v6289_v25 = vpack.c.bf16 %v2916_v47, %v2915_v59  ;;  %v6325_v57 = vpack.c.bf16 %v2966_v17, %v2965_v14  ;;  %v2954_v14 = vld [vmem:[%s10355_s5 + $0x1028] sm:$0xff] }
 0x490   :  { %v4943_v44 = vpop.f32.mrb[48].mxu1  ;;  %6272 = vmatpush3.bf16.msra.mxu0 %v6271_v0  ;;  %v2934_v0 = vld [vmem:[%s10355_s5 + $0xf88] sm:$0xff]  ;;  %v6259_v28 = vpack.c.bf16 %v2868_v51, %v2867_v4  ;;  %v2952_v59 = vld [vmem:[%s10355_s5 + $0x1018] sm:$0xff] }
 0x491   :  { %v4944_v16 = vpop.f32.mrb[49].mxu1  ;;  %6274 = vmatprep.subr.bf16.mxu0 %v6273_v60  ;;  %v2900_v60 = vld [vmem:[%s10355_s5 + $0xe78] sm:$0xff]  ;;  %v2938_v51 = vld [vmem:[%s10355_s5 + $0xfa8] sm:$0xff] }
 0x492   :  { %v4945_v24 = vadd.f32 %v4944_v16, %v4943_v44  ;;  %6244 = vmatpush3.bf16.msra.mxu1 %v6243_v41  ;;  %v6293_v41 = vpack.c.bf16 %v2934_v0, %v2933_v56  ;;  %v6291_v2 = vpack.c.bf16 %v2900_v60, %v2899_v61  ;;  %v2921_v0 = vld [vmem:[%s10355_s5 + $0xf20] sm:$0xff]  ;;  %v2922_v60 = vld [vmem:[%s10355_s5 + $0xf28] sm:$0xff] }
 0x493   :  { %6246 = vmatprep.subr.bf16.mxu1 %v6245_v62 }
 0x494   :  { %v3259_v8 = vadd.f32 %v4945_v24, %v3189_v6  ;;  %6276 = vmatpush3.bf16.msra.mxu0 %v6275_v15 }
 0x495   :  { %6278 = vmatprep.subr.bf16.mxu0 %v6277_v46 }
 0x496   :  { %6248 = vmatpush3.bf16.msra.mxu1 %v6247_v34  ;;  %v2918_v34 = vld [vmem:[%s10355_s5 + $0xf08] sm:$0xff] }
 0x497   :  { %6250 = vmatprep.subr.bf16.mxu1 %v6249_v19  ;;  %v6295_v20 = vpack.c.bf16 %v2918_v34, %v2917_v45 }
 0x498   :  { %6280 = vmatpush3.bf16.msra.mxu0 %v6279_v42  ;;  %v2967_v42 = vld [vmem:[%s10355_s5 + $0x1090] sm:$0xff] }
 0x499   :  { %6282 = vmatprep.subr.bf16.mxu0 %v6281_v27  ;;  %v6329_v1 = vpack.c.bf16 %v2968_v38, %v2967_v42  ;;  %v2941_v38 = vld [vmem:[%s10355_s5 + $0xfc0] sm:$0xff] }
 0x49a   :  { %6252 = vmatpush3.bf16.msra.mxu1 %v6251_v5 }
 0x49b   :  { %6254 = vmatprep.subr.bf16.mxu1 %v6253_v54 }
 0x49c   :  { %6284 = vmatpush3.bf16.msra.mxu0 %v6283_v31  ;;  %v2920_v31 = vld [vmem:[%s10355_s5 + $0xf18] sm:$0xff] }
 0x49d   :  { %6286 = vmatprep.subr.bf16.mxu0 %v6285_v58  ;;  %v6299_v56 = vpack.c.bf16 %v2920_v31, %v2919_v30  ;;  %v2957_v30 = vld [vmem:[%s10355_s5 + $0x1040] sm:$0xff]  ;;  %v2943_v31 = vld [vmem:[%s10355_s5 + $0xfd0] sm:$0xff] }
 0x49e   :  { %6256 = vmatpush3.bf16.msra.mxu1 %v6255_v10  ;;  %v2951_v10 = vld [vmem:[%s10355_s5 + $0x1010] sm:$0xff] }
 0x49f   :  { %6258 = vmatprep.subr.bf16.mxu1 %v6257_v18 }
 0x4a0   :  { %6288 = vmatpush3.bf16.msra.mxu0 %v6287_v9 }
 0x4a1   :  { %6290 = vmatprep.subr.bf16.mxu0 %v6289_v25 }
 0x4a2   :  { %6260 = vmatpush3.bf16.msra.mxu1 %v6259_v28  ;;  %v2953_v28 = vld [vmem:[%s10355_s5 + $0x1020] sm:$0xff] }
 0x4a3   :  { %6294 = vmatprep.subr.bf16.mxu1 %v6293_v41 }
 0x4a4   :  { %6292 = vmatpush3.bf16.msra.mxu0 %v6291_v2  ;;  %v2939_v2 = vld [vmem:[%s10355_s5 + $0xfb0] sm:$0xff] }
 0x4a5   :  { %6326 = vmatprep.subr.bf16.mxu0 %v6325_v57 }
 0x4aa   :  { %v4978_v44 = vpop.f32.mrb[50].mxu0 }
 0x4ab   :  { %v4979_v62 = vpop.f32.mrb[51].mxu0 }
 0x4ac   :  { %v4980_v3 = vadd.f32 %v4979_v62, %v4978_v44 }
 0x4ae   :  { %v3329_v26 = vadd.f32 %v4980_v3, %v3259_v8  ;;  %v2935_v8 = vld [vmem:[%s10355_s5 + $0xf90] sm:$0xff] }
 0x4af   :  { %v6297_v54 = vpack.c.bf16 %v2936_v39, %v2935_v8 }
 0x4b0   :  { %v5013_v16 = vpop.f32.mrb[50].mxu1 }
 0x4b1   :  { %v5014_v15 = vpop.f32.mrb[51].mxu1 }
 0x4b2   :  { %v5015_v49 = vadd.f32 %v5014_v15, %v5013_v16  ;;  %v2940_v16 = vld [vmem:[%s10355_s5 + $0xfb8] sm:$0xff]  ;;  %v2971_v15 = vld [vmem:[%s10355_s5 + $0x10b0] sm:$0xff] }
 0x4b3   :  { %v6305_v63 = vpack.c.bf16 %v2940_v16, %v2939_v2  ;;  %v2929_v2 = vld [vmem:[%s10355_s5 + $0xf60] sm:$0xff] }
 0x4b4   :  { %v3399_v48 = vadd.f32 %v5015_v49, %v3329_v26  ;;  %v2972_v49 = vld [vmem:[%s10355_s5 + $0x10b8] sm:$0xff] }
 0x4b5   :  { %v6337_v8 = vpack.c.bf16 %v2972_v49, %v2971_v15  ;;  %v2961_v15 = vld [vmem:[%s10355_s5 + $0x1060] sm:$0xff]  ;;  %v2962_v49 = vld [vmem:[%s10355_s5 + $0x1068] sm:$0xff] }
 0x4c9   :  { %v9658_v6 = vpop.permute.xlu0 %2351 }
 0x4ca   :  { %v5048_v24 = vpop.f32.mrb[52].mxu0 }
 0x4cb   :  { %v5049_v46 = vpop.f32.mrb[53].mxu0 }
 0x4cc   :  { %v5050_v11 = vadd.f32 %v5049_v46, %v5048_v24  ;;  %v6553_v12 = vpop.permute.xlu1 %6552  ;;  %v6303_v46 = vpack.c.bf16 %v2922_v60, %v2921_v0  ;;  %v2959_v0 = vld [vmem:[%s10355_s5 + $0x1050] sm:$0xff]  ;;  %v2977_v60 = vld [vmem:[%s10355_s5 + $0x10e0] sm:$0xff] }
 0x4cd   :  { %v1727_v52 = vpop.permute.xlu0 %1726  ;;  %v6555_v27 = vunpack.i.h.bf16 %v6553_v12  ;;  %v6554_v35 = vunpack.i.l.bf16 %v6553_v12  ;;  %v2942_v12 = vld [vmem:[%s10355_s5 + $0xfc8] sm:$0xff] }
 0x4ce   :  { %v3469_v19 = vadd.f32 %v5050_v11, %v3399_v48  ;;  %v2188_v47 = vmax.f32 %v7789_v29, %v1727_v52  ;;  %v2969_v29 = vld [vmem:[%s10355_s5 + $0x10a0] sm:$0xff]  ;;  %v6335_v11 = vpack.c.bf16 %v2954_v14, %v2953_v28  ;;  %v2978_v28 = vld [vmem:[%s10355_s5 + $0x10e8] sm:$0xff] }
 0x4cf   :  { %v2429_v58 = vsel %vm2205_vm13, %v9080_v33, %v6554_v35  ;;  %v2430_v40 = vsel %vm2216_vm14, %v6555_v27, %v9658_v6  ;;  %v2345_v21 = vsel %vm2205_vm13, %v6554_v35, %v6555_v27  ;;  %v2937_v33 = vld [vmem:[%s10355_s5 + $0xfa0] sm:$0xff]  ;;  %v2974_v35 = vld [vmem:[%s10355_s5 + $0x10c8] sm:$0xff]  ;;  %v6349_v16 = vpack.c.bf16 %v2978_v28, %v2977_v60 }
 0x4d0   :  { %v5083_v50 = vpop.f32.mrb[52].mxu1  ;;  %v1725_v4 = vpop.permute.xlu1 %1724  ;;  %4096 = vmatprep.mubr.f32.mxu1 %v2429_v58  ;;  %4166 = vmatprep.mubr.f32.mxu0 %v2430_v40  ;;  %v6301_v41 = vpack.c.bf16 %v2938_v51, %v2937_v33  ;;  %v2973_v27 = vld [vmem:[%s10355_s5 + $0x10c0] sm:$0xff]  ;;  %v2944_v40 = vld [vmem:[%s10355_s5 + $0xfd8] sm:$0xff]  ;;  %v2927_v33 = vld [vmem:[%s10355_s5 + $0xf50] sm:$0xff] }
 0x4d1   :  { %v5084_v5 = vpop.f32.mrb[53].mxu1  ;;  %v1743_v37 = vpop.permute.xlu0 %1742  ;;  %4097 = vmatmul.mubr.f32.vlgmr.msra.gmra.mrb[60].mxu1 %v9120_v32  ;;  %4167 = vmatmul.mubr.f32.vlgmr.msra.gmra.mrb[62].mxu0 %v2345_v21  ;;  %v1748_v61 = vsel %vm1744_vm12, %v1725_v4, %v1727_v52  ;;  %v6331_v32 = vpack.c.bf16 %v2952_v59, %v2951_v10  ;;  %v2956_v52 = vld [vmem:[%s10355_s5 + $0x1038] sm:$0xff]  ;;  %v6341_v58 = vpack.c.bf16 %v2974_v35, %v2973_v27  ;;  %v2975_v21 = vld [vmem:[%s10355_s5 + $0x10d0] sm:$0xff]  ;;  %v3029_v27 = vld [vmem:[%s10355_s5 + $0x1280] sm:$0xff] }
 0x4d2   :  { %v5085_v43 = vadd.f32 %v5084_v5, %v5083_v50  ;;  %v2189_v18 = vmax.f32 %v7822_v36, %v1743_v37  ;;  %v2970_v36 = vld [vmem:[%s10355_s5 + $0x10a8] sm:$0xff]  ;;  %6296 = vmatpush3.bf16.msra.mxu1 %v6295_v20  ;;  %6328 = vmatpush3.bf16.msra.mxu0 %v6327_v53  ;;  %v1979_v48 = vmax.f32 %v7769_v13, %v1748_v61  ;;  %v2923_v13 = vld [vmem:[%s10355_s5 + $0xf30] sm:$0xff]  ;;  %v2925_v53 = vld [vmem:[%s10355_s5 + $0xf40] sm:$0xff] }
 0x4d3   :  { %6298 = vmatprep.subr.bf16.mxu1 %v6297_v54  ;;  %6330 = vmatprep.subr.bf16.mxu0 %v6329_v1  ;;  %v6333_v26 = vpack.c.bf16 %v2970_v36, %v2969_v29  ;;  %v2926_v54 = vld [vmem:[%s10355_s5 + $0xf48] sm:$0xff]  ;;  %v6309_v1 = vpack.c.bf16 %v2942_v12, %v2941_v38  ;;  %v2976_v10 = vld [vmem:[%s10355_s5 + $0x10d8] sm:$0xff]  ;;  %v6313_v29 = vpack.c.bf16 %v2944_v40, %v2943_v31  ;;  %v2945_v61 = vld [vmem:[%s10355_s5 + $0xfe0] sm:$0xff] }
 0x4d4   :  { %v9709_v9 = vadd.f32 %v5085_v43, %v3469_v19  ;;  %v2190_v25 = vcombine.low %v2188_v47, %v2189_v18  ;;  %v1741_v3 = vpop.permute.xlu1 %1740  ;;  %v2955_v19 = vld [vmem:[%s10355_s5 + $0x1030] sm:$0xff]  ;;  %v6311_v18 = vpack.c.bf16 %v2926_v54, %v2925_v53  ;;  %v2928_v51 = vld [vmem:[%s10355_s5 + $0xf58] sm:$0xff]  ;;  %v6345_v36 = vpack.c.bf16 %v2976_v10, %v2975_v21  ;;  %v2998_v12 = vld [vmem:[%s10355_s5 + $0x1188] sm:$0xff] }
 0x4d5   :  { %v9731_v17 = vpop.permute.xlu0 %6557  ;;  %v1752_v24 = vsel %vm1744_vm12, %v1741_v3, %v1743_v37  ;;  %v6339_v5 = vpack.c.bf16 %v2956_v52, %v2955_v19  ;;  %v6315_v14 = vpack.c.bf16 %v2928_v51, %v2927_v33  ;;  %v2930_v3 = vld [vmem:[%s10355_s5 + $0xf68] sm:$0xff]  ;;  %v2963_v19 = vld [vmem:[%s10355_s5 + $0x1070] sm:$0xff]  ;;  %v2964_v52 = vld [vmem:[%s10355_s5 + $0x1078] sm:$0xff] }
 0x4d6   :  { %v9737_v57 = vrot.slane %v2190_v25, %v8042_v22  ;;  %v6560_v44 = vunpack.i.h.bf16 %v9731_v17  ;;  %v6559_v62 = vunpack.i.l.bf16 %v9731_v17  ;;  %v1980_v45 = vmax.f32 %v7816_v55, %v1752_v24  ;;  %6300 = vmatpush3.bf16.msra.mxu1 %v6299_v56  ;;  %6332 = vmatpush3.bf16.msra.mxu0 %v6331_v32  ;;  %v2924_v55 = vld [vmem:[%s10355_s5 + $0xf38] sm:$0xff]  ;;  %v2946_v32 = vld [vmem:[%s10355_s5 + $0xfe8] sm:$0xff]  ;;  %v3013_v40 = vld [vmem:[%s10355_s5 + $0x1200] sm:$0xff] }
 0x4d7   :  { %6302 = vmatprep.subr.bf16.mxu1 %v6301_v41  ;;  %6334 = vmatprep.subr.bf16.mxu0 %v6333_v26  ;;  %v6307_v50 = vpack.c.bf16 %v2924_v55, %v2923_v13  ;;  %v2960_v25 = vld [vmem:[%s10355_s5 + $0x1058] sm:$0xff]  ;;  %v6317_v26 = vpack.c.bf16 %v2946_v32, %v2945_v61  ;;  %v3030_v35 = vld [vmem:[%s10355_s5 + $0x1288] sm:$0xff]  ;;  %v3015_v32 = vld [vmem:[%s10355_s5 + $0x1210] sm:$0xff] }
 0x4d8   :  { %v2364_v34 = vsel %vm1744_vm12, %v6559_v62, %v6560_v44  ;;  %v2198_v23 = vcombine.high %v9737_v57, %v6600_v7  ;;  %v1981_v39 = vcombine.low %v1979_v48, %v1980_v45  ;;  %v6347_v41 = vpack.c.bf16 %v2960_v25, %v2959_v0  ;;  %v2947_v48 = vld [vmem:[%s10355_s5 + $0xff0] sm:$0xff]  ;;  %v2948_v24 = vld [vmem:[%s10355_s5 + $0xff8] sm:$0xff]  ;;  %v3014_v10 = vld [vmem:[%s10355_s5 + $0x1208] sm:$0xff] }
 0x4d9   :  { %4236 = vmatprep.mubr.f32.mxu1 %v2364_v34  ;;  %v6319_v45 = vpack.c.bf16 %v2930_v3, %v2929_v2  ;;  %v6351_v34 = vpack.c.bf16 %v2962_v49, %v2961_v15  ;;  %v2932_v13 = vld [vmem:[%s10355_s5 + $0xf78] sm:$0xff]  ;;  %v6389_v31 = vpack.c.bf16 %v3030_v35, %v3029_v27  ;;  %v6391_v25 = vpack.c.bf16 %v3014_v10, %v3013_v40  ;;  %v3001_v3 = vld [vmem:[%s10355_s5 + $0x11a0] sm:$0xff] }
 0x4da   :  { %v9772_v42 = vpop.permute.xlu1 %2353  ;;  %2410 = vrot.lane.b32.xlu1 %v2198_v23, %s6606_s16  ;;  %6304 = vmatpush3.bf16.msra.mxu1 %v6303_v46  ;;  %v9788_v20 = vrot.slane %v1981_v39, %v8042_v22  ;;  %v2958_v22 = vld [vmem:[%s10355_s5 + $0x1048] sm:$0xff]  ;;  %v2979_v46 = vld [vmem:[%s10355_s5 + $0x10f0] sm:$0xff]  ;;  %v2997_v39 = vld [vmem:[%s10355_s5 + $0x1180] sm:$0xff] }
 0x4db   :  { %6336 = vmatpush3.bf16.msra.mxu0 %v6335_v11  ;;  %6306 = vmatprep.subr.bf16.mxu1 %v6305_v63  ;;  %v6343_v4 = vpack.c.bf16 %v2958_v22, %v2957_v30  ;;  %v2980_v11 = vld [vmem:[%s10355_s5 + $0x10f8] sm:$0xff]  ;;  %v2931_v23 = vld [vmem:[%s10355_s5 + $0xf70] sm:$0xff]  ;;  %v6357_v22 = vpack.c.bf16 %v2998_v12, %v2997_v39  ;;  %v2355_v33 = vsel %vm2216_vm14, %v9658_v6, %v9772_v42  ;;  %v2989_v40 = vld [vmem:[%s10355_s5 + $0x1140] sm:$0xff] }
 0x4dc   :  { %6338 = vmatprep.subr.bf16.mxu0 %v6337_v8  ;;  %v1989_v37 = vcombine.high %v9788_v20, %v6600_v7  ;;  %v6321_v8 = vpack.c.bf16 %v2948_v24, %v2947_v48  ;;  %v6353_v55 = vpack.c.bf16 %v2980_v11, %v2979_v46  ;;  %v6323_v54 = vpack.c.bf16 %v2932_v13, %v2931_v23  ;;  %v2983_v6 = vld [vmem:[%s10355_s5 + $0x1110] sm:$0xff]  ;;  %v2984_v42 = vld [vmem:[%s10355_s5 + $0x1118] sm:$0xff]  ;;  %v2985_v24 = vld [vmem:[%s10355_s5 + $0x1120] sm:$0xff] }
 0x4dd   :  { %v2431_v60 = vsel %vm1744_vm12, %v2355_v33, %v6559_v62  ;;  %v3016_v2 = vld [vmem:[%s10355_s5 + $0x1218] sm:$0xff]  ;;  %v3002_v62 = vld [vmem:[%s10355_s5 + $0x11a8] sm:$0xff]  ;;  %v6363_v15 = vpack.c.bf16 %v2984_v42, %v2983_v6  ;;  %v3017_v11 = vld [vmem:[%s10355_s5 + $0x1220] sm:$0xff] }
 0x4de   :  { %v9805_v43 = vpop.permute.xlu1 %6562  ;;  %6308 = vmatpush3.bf16.msra.mxu1 %v6307_v50  ;;  %2408 = vrot.lane.b32.xlu0 %v1989_v37, %s6606_s16  ;;  %v9898_v50 = vpop.permute.xlu0 %6572  ;;  %v2981_v37 = vld [vmem:[%s10355_s5 + $0x1100] sm:$0xff]  ;;  %v6395_v49 = vpack.c.bf16 %v3016_v2, %v3015_v32  ;;  %v6365_v48 = vpack.c.bf16 %v3002_v62, %v3001_v3  ;;  %v2986_v46 = vld [vmem:[%s10355_s5 + $0x1128] sm:$0xff]  ;;  %v3003_v23 = vld [vmem:[%s10355_s5 + $0x11b0] sm:$0xff] }
 0x4df   :  { %v6565_v59 = vunpack.i.h.bf16 %v9805_v43  ;;  %v6564_v47 = vunpack.i.l.bf16 %v9805_v43  ;;  %6340 = vmatpush3.bf16.msra.mxu0 %v6339_v5  ;;  %6310 = vmatprep.subr.bf16.mxu1 %v6309_v1  ;;  %v6355_v1 = vpack.c.bf16 %v2964_v52, %v2963_v19  ;;  %v6575_v21 = vunpack.i.h.bf16 %v9898_v50  ;;  %v3004_v13 = vld [vmem:[%s10355_s5 + $0x11b8] sm:$0xff]  ;;  %v2987_v39 = vld [vmem:[%s10355_s5 + $0x1130] sm:$0xff]  ;;  %v3021_v10 = vld [vmem:[%s10355_s5 + $0x1240] sm:$0xff] }
 0x4e0   :  { %6342 = vmatprep.subr.bf16.mxu0 %v6341_v58  ;;  %v2982_v58 = vld [vmem:[%s10355_s5 + $0x1108] sm:$0xff]  ;;  %v6369_v52 = vpack.c.bf16 %v3004_v13, %v3003_v23  ;;  %v3019_v12 = vld [vmem:[%s10355_s5 + $0x1230] sm:$0xff]  ;;  %v3020_v35 = vld [vmem:[%s10355_s5 + $0x1238] sm:$0xff] }
 0x4e1   :  { %v2374_v56 = vsel %vm2236_vm15, %v6564_v47, %v6565_v59  ;;  %v6359_v0 = vpack.c.bf16 %v2982_v58, %v2981_v37  ;;  %v2432_v28 = vsel %vm2236_vm15, %v6560_v44, %v6564_v47  ;;  %v3033_v47 = vld [vmem:[%s10355_s5 + $0x12a0] sm:$0xff]  ;;  %v6403_v37 = vpack.c.bf16 %v3020_v35, %v3019_v12  ;;  %v3007_v33 = vld [vmem:[%s10355_s5 + $0x11d0] sm:$0xff]  ;;  %v2992_v32 = vld [vmem:[%s10355_s5 + $0x1158] sm:$0xff] }
 0x4e2   :  { %4306 = vmatprep.mubr.f32.mxu0 %v2374_v56  ;;  %6312 = vmatpush3.bf16.msra.mxu1 %v6311_v18  ;;  %v9900_v53 = vpop.permute.xlu1 %6567  ;;  %v2999_v18 = vld [vmem:[%s10355_s5 + $0x1190] sm:$0xff]  ;;  %v9965_v17 = vpop.permute.xlu0 %2399  ;;  %v3010_v2 = vld [vmem:[%s10355_s5 + $0x11e8] sm:$0xff]  ;;  %v3041_v3 = vld [vmem:[%s10355_s5 + $0x12e0] sm:$0xff] }
 0x4e3   :  { %6344 = vmatpush3.bf16.msra.mxu0 %v6343_v4  ;;  %6314 = vmatprep.subr.bf16.mxu1 %v6313_v29  ;;  %v3000_v4 = vld [vmem:[%s10355_s5 + $0x1198] sm:$0xff]  ;;  %v6569_v51 = vunpack.i.l.bf16 %v9900_v53  ;;  %v3031_v56 = vld [vmem:[%s10355_s5 + $0x1290] sm:$0xff]  ;;  %v3042_v62 = vld [vmem:[%s10355_s5 + $0x12e8] sm:$0xff] }
 0x4e4   :  { %6346 = vmatprep.subr.bf16.mxu0 %v6345_v36  ;;  %v3032_v29 = vld [vmem:[%s10355_s5 + $0x1298] sm:$0xff]  ;;  %v6570_v36 = vunpack.i.h.bf16 %v9900_v53  ;;  %v6361_v61 = vpack.c.bf16 %v3000_v4, %v2999_v18  ;;  %v3022_v4 = vld [vmem:[%s10355_s5 + $0x1248] sm:$0xff]  ;;  %v2991_v42 = vld [vmem:[%s10355_s5 + $0x1150] sm:$0xff] }
 0x4e5   :  { %v3062_v12 = vld [vmem:[%s10355_s5 + $0x1388] sm:$0xff] }
 0x4e6   :  { %6316 = vmatpush3.bf16.msra.mxu1 %v6315_v14  ;;  %v3094_v35 = vld [vmem:[%s10355_s5 + $0x1488] sm:$0xff] }
 0x4e7   :  { %6348 = vmatpush3.bf16.msra.mxu0 %v6347_v41  ;;  %6318 = vmatprep.subr.bf16.mxu1 %v6317_v26  ;;  %v6393_v41 = vpack.c.bf16 %v3032_v29, %v3031_v56  ;;  %v3034_v26 = vld [vmem:[%s10355_s5 + $0x12a8] sm:$0xff]  ;;  %v3008_v56 = vld [vmem:[%s10355_s5 + $0x11d8] sm:$0xff]  ;;  %v3039_v29 = vld [vmem:[%s10355_s5 + $0x12d0] sm:$0xff] }
 0x4e8   :  { %6350 = vmatprep.subr.bf16.mxu0 %v6349_v16  ;;  %v2435_v16 = vsel %vm2268_vm2, %v6570_v36, %v9965_v17  ;;  %v6377_v6 = vpack.c.bf16 %v3008_v56, %v3007_v33  ;;  %v3096_v33 = vld [vmem:[%s10355_s5 + $0x1498] sm:$0xff]  ;;  %v3098_v53 = vld [vmem:[%s10355_s5 + $0x14a8] sm:$0xff] }
 0x4ea   :  { %v5118_v63 = vpop.f32.mrb[54].mxu0  ;;  %6320 = vmatpush3.bf16.msra.mxu1 %v6319_v45  ;;  %v6397_v45 = vpack.c.bf16 %v3034_v26, %v3033_v47 }
 0x4eb   :  { %v5119_v38 = vpop.f32.mrb[55].mxu0  ;;  %6352 = vmatpush3.bf16.msra.mxu0 %v6351_v34  ;;  %6322 = vmatprep.subr.bf16.mxu1 %v6321_v8  ;;  %v3018_v34 = vld [vmem:[%s10355_s5 + $0x1228] sm:$0xff]  ;;  %v3036_v8 = vld [vmem:[%s10355_s5 + $0x12b8] sm:$0xff] }
 0x4ec   :  { %v5120_v5 = vadd.f32 %v5119_v38, %v5118_v63  ;;  %6354 = vmatprep.subr.bf16.mxu0 %v6353_v55  ;;  %v3035_v63 = vld [vmem:[%s10355_s5 + $0x12b0] sm:$0xff]  ;;  %v6367_v55 = vpack.c.bf16 %v2986_v46, %v2985_v24  ;;  %v6399_v19 = vpack.c.bf16 %v3018_v34, %v3017_v11  ;;  %v2988_v38 = vld [vmem:[%s10355_s5 + $0x1138] sm:$0xff]  ;;  %v3026_v24 = vld [vmem:[%s10355_s5 + $0x1268] sm:$0xff] }
 0x4ed   :  { %v6401_v27 = vpack.c.bf16 %v3036_v8, %v3035_v63  ;;  %v3011_v46 = vld [vmem:[%s10355_s5 + $0x11f0] sm:$0xff]  ;;  %v3012_v11 = vld [vmem:[%s10355_s5 + $0x11f8] sm:$0xff] }
 0x4ee   :  { %v9903_v30 = vadd.f32 %v5120_v5, %v9709_v9  ;;  %v6574_v9 = vunpack.i.l.bf16 %v9898_v50  ;;  %6324 = vmatpush3.bf16.msra.mxu1 %v6323_v54  ;;  %v3005_v5 = vld [vmem:[%s10355_s5 + $0x11c0] sm:$0xff]  ;;  %v3006_v54 = vld [vmem:[%s10355_s5 + $0x11c8] sm:$0xff]  ;;  %v3044_v34 = vld [vmem:[%s10355_s5 + $0x12f8] sm:$0xff]  ;;  %v6385_v63 = vpack.c.bf16 %v3012_v11, %v3011_v46  ;;  %v2393_v50 = vsel %vm2257_vm1, %v6569_v51, %v6570_v36 }
 0x4ef   :  { %6356 = vmatpush3.bf16.msra.mxu0 %v6355_v1  ;;  %6358 = vmatprep.subr.bf16.mxu1 %v6357_v22  ;;  %v3037_v1 = vld [vmem:[%s10355_s5 + $0x12c0] sm:$0xff]  ;;  %v3038_v22 = vld [vmem:[%s10355_s5 + $0x12c8] sm:$0xff]  ;;  %v6373_v58 = vpack.c.bf16 %v3006_v54, %v3005_v5  ;;  %v2995_v8 = vld [vmem:[%s10355_s5 + $0x1170] sm:$0xff] }
 0x4f0   :  { %6390 = vmatprep.subr.bf16.mxu0 %v6389_v31  ;;  %v2384_v14 = vsel %vm2247_vm0, %v6574_v9, %v6575_v21  ;;  %v6371_v31 = vpack.c.bf16 %v2988_v38, %v2987_v39  ;;  %v2990_v21 = vld [vmem:[%s10355_s5 + $0x1148] sm:$0xff]  ;;  %v6405_v18 = vpack.c.bf16 %v3038_v22, %v3037_v1  ;;  %v3028_v39 = vld [vmem:[%s10355_s5 + $0x1278] sm:$0xff]  ;;  %v3061_v38 = vld [vmem:[%s10355_s5 + $0x1380] sm:$0xff] }
 0x4f1   :  { %4237 = vmatmul.mubr.f32.vlgmr.msra.gmra.mrb[62].mxu1 %v2431_v60  ;;  %v2434_v44 = vsel %vm2257_vm1, %v2384_v14, %v6569_v51  ;;  %v3023_v60 = vld [vmem:[%s10355_s5 + $0x1250] sm:$0xff]  ;;  %v3024_v14 = vld [vmem:[%s10355_s5 + $0x1258] sm:$0xff]  ;;  %v6421_v1 = vpack.c.bf16 %v3062_v12, %v3061_v38  ;;  %v3045_v22 = vld [vmem:[%s10355_s5 + $0x1300] sm:$0xff] }
 0x4f2   :  { %4307 = vmatmul.mubr.f32.vlgmr.msra.gmra.mrb[64].mxu0 %v2432_v28  ;;  %6360 = vmatpush3.bf16.msra.mxu1 %v6359_v0  ;;  %v3040_v0 = vld [vmem:[%s10355_s5 + $0x12d8] sm:$0xff]  ;;  %v6411_v47 = vpack.c.bf16 %v3024_v14, %v3023_v60  ;;  %v3097_v60 = vld [vmem:[%s10355_s5 + $0x14a0] sm:$0xff]  ;;  %v3067_v14 = vld [vmem:[%s10355_s5 + $0x13b0] sm:$0xff] }
 0x4f3   :  { %4376 = vmatprep.mubr.f32.mxu1 %v2434_v44  ;;  %6392 = vmatpush3.bf16.msra.mxu0 %v6391_v25  ;;  %v6375_v25 = vpack.c.bf16 %v2990_v21, %v2989_v40  ;;  %v6409_v28 = vpack.c.bf16 %v3040_v0, %v3039_v29  ;;  %v6379_v44 = vpack.c.bf16 %v2992_v32, %v2991_v42  ;;  %v3077_v21 = vld [vmem:[%s10355_s5 + $0x1400] sm:$0xff]  ;;  %v3047_v29 = vld [vmem:[%s10355_s5 + $0x1310] sm:$0xff]  ;;  %v3048_v0 = vld [vmem:[%s10355_s5 + $0x1318] sm:$0xff] }
 0x4f4   :  { %4446 = vmatprep.mubr.f32.mxu0 %v2435_v16  ;;  %6362 = vmatprep.subr.bf16.mxu1 %v6361_v61  ;;  %v6407_v61 = vpack.c.bf16 %v3022_v4, %v3021_v10  ;;  %v2993_v16 = vld [vmem:[%s10355_s5 + $0x1160] sm:$0xff]  ;;  %v3078_v10 = vld [vmem:[%s10355_s5 + $0x1408] sm:$0xff]  ;;  %v3095_v4 = vld [vmem:[%s10355_s5 + $0x1490] sm:$0xff]  ;;  %v6427_v32 = vpack.c.bf16 %v3048_v0, %v3047_v29 }
 0x4f5   :  { %6394 = vmatprep.subr.bf16.mxu0 %v6393_v41  ;;  %v3009_v41 = vld [vmem:[%s10355_s5 + $0x11e0] sm:$0xff]  ;;  %v6455_v42 = vpack.c.bf16 %v3078_v10, %v3077_v21  ;;  %v6457_v43 = vpack.c.bf16 %v3096_v33, %v3095_v4  ;;  %v3102_v12 = vld [vmem:[%s10355_s5 + $0x14c8] sm:$0xff]  ;;  %v3103_v21 = vld [vmem:[%s10355_s5 + $0x14d0] sm:$0xff] }
 0x4f6   :  { %6364 = vmatpush3.bf16.msra.mxu1 %v6363_v15  ;;  %v6381_v26 = vpack.c.bf16 %v3010_v2, %v3009_v41  ;;  %v2994_v15 = vld [vmem:[%s10355_s5 + $0x1168] sm:$0xff]  ;;  %v3049_v36 = vld [vmem:[%s10355_s5 + $0x1320] sm:$0xff]  ;;  %v3068_v41 = vld [vmem:[%s10355_s5 + $0x13b8] sm:$0xff]  ;;  %v6461_v2 = vpack.c.bf16 %v3098_v53, %v3097_v60 }
 0x4f7   :  { %6396 = vmatpush3.bf16.msra.mxu0 %v6395_v49  ;;  %6366 = vmatprep.subr.bf16.mxu1 %v6365_v48  ;;  %v3025_v49 = vld [vmem:[%s10355_s5 + $0x1260] sm:$0xff]  ;;  %v6413_v48 = vpack.c.bf16 %v3042_v62, %v3041_v3  ;;  %v6383_v23 = vpack.c.bf16 %v2994_v15, %v2993_v16  ;;  %v3082_v62 = vld [vmem:[%s10355_s5 + $0x1428] sm:$0xff]  ;;  %v3100_v16 = vld [vmem:[%s10355_s5 + $0x14b8] sm:$0xff] }
 0x4f8   :  { %6398 = vmatprep.subr.bf16.mxu0 %v6397_v45  ;;  %v3043_v45 = vld [vmem:[%s10355_s5 + $0x12f0] sm:$0xff]  ;;  %v6415_v13 = vpack.c.bf16 %v3026_v24, %v3025_v49  ;;  %v3081_v3 = vld [vmem:[%s10355_s5 + $0x1420] sm:$0xff]  ;;  %v6433_v49 = vpack.c.bf16 %v3068_v41, %v3067_v14  ;;  %v3052_v24 = vld [vmem:[%s10355_s5 + $0x1338] sm:$0xff] }
 0x4f9   :  { %v3101_v38 = vld [vmem:[%s10355_s5 + $0x14c0] sm:$0xff]  ;;  %v3104_v10 = vld [vmem:[%s10355_s5 + $0x14d8] sm:$0xff]  ;;  %v3055_v4 = vld [vmem:[%s10355_s5 + $0x1350] sm:$0xff] }
 0x4fa   :  { %6368 = vmatpush3.bf16.msra.mxu1 %v6367_v55  ;;  %v2996_v55 = vld [vmem:[%s10355_s5 + $0x1178] sm:$0xff]  ;;  %v3074_v29 = vld [vmem:[%s10355_s5 + $0x13e8] sm:$0xff]  ;;  %v3075_v60 = vld [vmem:[%s10355_s5 + $0x13f0] sm:$0xff] }
 0x4fb   :  { %6400 = vmatpush3.bf16.msra.mxu0 %v6399_v19  ;;  %6370 = vmatprep.subr.bf16.mxu1 %v6369_v52  ;;  %v3027_v19 = vld [vmem:[%s10355_s5 + $0x1270] sm:$0xff]  ;;  %v6417_v52 = vpack.c.bf16 %v3044_v34, %v3043_v45  ;;  %v6387_v5 = vpack.c.bf16 %v2996_v55, %v2995_v8  ;;  %v3069_v45 = vld [vmem:[%s10355_s5 + $0x13c0] sm:$0xff]  ;;  %v3070_v34 = vld [vmem:[%s10355_s5 + $0x13c8] sm:$0xff] }
 0x4fc   :  { %6402 = vmatprep.subr.bf16.mxu0 %v6401_v27  ;;  %v3093_v27 = vld [vmem:[%s10355_s5 + $0x1480] sm:$0xff]  ;;  %v6419_v54 = vpack.c.bf16 %v3028_v39, %v3027_v19  ;;  %v3083_v8 = vld [vmem:[%s10355_s5 + $0x1430] sm:$0xff]  ;;  %v3084_v55 = vld [vmem:[%s10355_s5 + $0x1438] sm:$0xff] }
 0x4fd   :  { %v6453_v40 = vpack.c.bf16 %v3094_v35, %v3093_v27  ;;  %v6437_v27 = vpack.c.bf16 %v3070_v34, %v3069_v45  ;;  %v3053_v35 = vld [vmem:[%s10355_s5 + $0x1340] sm:$0xff]  ;;  %v3056_v33 = vld [vmem:[%s10355_s5 + $0x1358] sm:$0xff]  ;;  %v3090_v14 = vld [vmem:[%s10355_s5 + $0x1468] sm:$0xff]  ;;  %v6612_v34 = vmov 0.0|0.0  }
 0x4fe   :  { %6372 = vmatpush3.bf16.msra.mxu1 %v6371_v31  ;;  %v3046_v31 = vld [vmem:[%s10355_s5 + $0x1308] sm:$0xff]  ;;  %v3076_v53 = vld [vmem:[%s10355_s5 + $0x13f8] sm:$0xff] }
 0x4ff   :  { %6404 = vmatpush3.bf16.msra.mxu0 %v6403_v37  ;;  %6374 = vmatprep.subr.bf16.mxu1 %v6373_v58  ;;  %v3063_v37 = vld [vmem:[%s10355_s5 + $0x1390] sm:$0xff]  ;;  %v3064_v58 = vld [vmem:[%s10355_s5 + $0x1398] sm:$0xff] }
 0x500   :  { %6406 = vmatprep.subr.bf16.mxu0 %v6405_v18  ;;  %v6423_v18 = vpack.c.bf16 %v3046_v31, %v3045_v22  ;;  %v6425_v56 = vpack.c.bf16 %v3064_v58, %v3063_v37  ;;  %v6467_v22 = vpack.c.bf16 %v3084_v55, %v3083_v8  ;;  %v6469_v31 = vpack.c.bf16 %v3102_v12, %v3101_v38  ;;  %v3085_v37 = vld [vmem:[%s10355_s5 + $0x1440] sm:$0xff]  ;;  %v3086_v58 = vld [vmem:[%s10355_s5 + $0x1448] sm:$0xff] }
 0x501   :  { %v6471_v0 = vpack.c.bf16 %v3086_v58, %v3085_v37 }
 0x502   :  { %6376 = vmatpush3.bf16.msra.mxu1 %v6375_v25  ;;  %v2433_v25 = vsel %vm2247_vm0, %v6565_v59, %v6574_v9  ;;  %v3079_v59 = vld [vmem:[%s10355_s5 + $0x1410] sm:$0xff]  ;;  %v3080_v9 = vld [vmem:[%s10355_s5 + $0x1418] sm:$0xff] }
 0x503   :  { %6408 = vmatpush3.bf16.msra.mxu0 %v6407_v61  ;;  %6378 = vmatprep.subr.bf16.mxu1 %v6377_v6  ;;  %v3065_v61 = vld [vmem:[%s10355_s5 + $0x13a0] sm:$0xff]  ;;  %v3066_v6 = vld [vmem:[%s10355_s5 + $0x13a8] sm:$0xff] }
 0x504   :  { %6410 = vmatprep.subr.bf16.mxu0 %v6409_v28  ;;  %v6429_v51 = vpack.c.bf16 %v3066_v6, %v3065_v61  ;;  %v3050_v28 = vld [vmem:[%s10355_s5 + $0x1328] sm:$0xff]  ;;  %v3087_v61 = vld [vmem:[%s10355_s5 + $0x1450] sm:$0xff]  ;;  %v3088_v6 = vld [vmem:[%s10355_s5 + $0x1458] sm:$0xff] }
 0x506   :  { %6380 = vmatpush3.bf16.msra.mxu1 %v6379_v44 }
 0x507   :  { %6412 = vmatpush3.bf16.msra.mxu0 %v6411_v47  ;;  %6382 = vmatprep.subr.bf16.mxu1 %v6381_v26  ;;  %v6431_v47 = vpack.c.bf16 %v3050_v28, %v3049_v36  ;;  %v3099_v26 = vld [vmem:[%s10355_s5 + $0x14b0] sm:$0xff]  ;;  %v3089_v28 = vld [vmem:[%s10355_s5 + $0x1460] sm:$0xff] }
 0x508   :  { %6414 = vmatprep.subr.bf16.mxu0 %v6413_v48  ;;  %v3051_v48 = vld [vmem:[%s10355_s5 + $0x1330] sm:$0xff] }
 0x509   :  { %v6435_v39 = vpack.c.bf16 %v3052_v24, %v3051_v48  ;;  %v3109_v48 = vld [vmem:[%s10355_s5 + $0x1500] sm:$0xff]  ;;  %v3110_v24 = vld [vmem:[%s10355_s5 + $0x1508] sm:$0xff] }
 0x50a   :  { %6384 = vmatpush3.bf16.msra.mxu1 %v6383_v23  ;;  %v6463_v23 = vpack.c.bf16 %v3082_v62, %v3081_v3  ;;  %v6449_v3 = vpack.c.bf16 %v3076_v53, %v3075_v60  ;;  %v3059_v62 = vld [vmem:[%s10355_s5 + $0x1370] sm:$0xff]  ;;  %v6486_v45 = vpack.c.bf16 %v3110_v24, %v3109_v48 }
 0x50b   :  { %6416 = vmatpush3.bf16.msra.mxu0 %v6415_v13  ;;  %6386 = vmatprep.subr.bf16.mxu1 %v6385_v63  ;;  %v6465_v63 = vpack.c.bf16 %v3100_v16, %v3099_v26  ;;  %v3091_v16 = vld [vmem:[%s10355_s5 + $0x1470] sm:$0xff] }
 0x50c   :  { %6418 = vmatprep.subr.bf16.mxu0 %v6417_v52 }
 0x50e   :  { %6388 = vmatpush3.bf16.msra.mxu1 %v6387_v5 }
 0x50f   :  { %6420 = vmatpush3.bf16.msra.mxu0 %v6419_v54  ;;  %6422 = vmatprep.subr.bf16.mxu1 %v6421_v1  ;;  %v3071_v54 = vld [vmem:[%s10355_s5 + $0x13d0] sm:$0xff]  ;;  %v3072_v1 = vld [vmem:[%s10355_s5 + $0x13d8] sm:$0xff] }
 0x510   :  { %6454 = vmatprep.subr.bf16.mxu0 %v6453_v40 }
 0x511   :  { %4377 = vmatmul.mubr.f32.vlgmr.msra.gmra.mrb[64].mxu1 %v2433_v25  ;;  %v6473_v25 = vpack.c.bf16 %v3104_v10, %v3103_v21 }
 0x512   :  { %4447 = vmatmul.mubr.f32.vlgmr.msra.gmra.mrb[66].mxu0 %v2393_v50  ;;  %6424 = vmatpush3.bf16.msra.mxu1 %v6423_v18  ;;  %v6441_v18 = vpack.c.bf16 %v3072_v1, %v3071_v54  ;;  %v3105_v50 = vld [vmem:[%s10355_s5 + $0x14e0] sm:$0xff] }
 0x513   :  { %4516 = vmatprep.mubr.f32.mxu1 %v9788_v20  ;;  %6426 = vmatprep.subr.bf16.mxu1 %v6425_v56  ;;  %v6459_v20 = vpack.c.bf16 %v3080_v9, %v3079_v59  ;;  %v3073_v56 = vld [vmem:[%s10355_s5 + $0x13e0] sm:$0xff] }
 0x514   :  { %6456 = vmatpush3.bf16.msra.mxu0 %v6455_v42  ;;  %v6443_v42 = vpack.c.bf16 %v3056_v33, %v3055_v4  ;;  %v6445_v59 = vpack.c.bf16 %v3074_v29, %v3073_v56  ;;  %v3057_v9 = vld [vmem:[%s10355_s5 + $0x1360] sm:$0xff] }
 0x515   :  { %6458 = vmatprep.subr.bf16.mxu0 %v6457_v43  ;;  %v3106_v43 = vld [vmem:[%s10355_s5 + $0x14e8] sm:$0xff] }
 0x516   :  { %6428 = vmatpush3.bf16.msra.mxu1 %v6427_v32  ;;  %v3058_v32 = vld [vmem:[%s10355_s5 + $0x1368] sm:$0xff]  ;;  %v6477_v36 = vpack.c.bf16 %v3106_v43, %v3105_v50 }
 0x517   :  { %6430 = vmatprep.subr.bf16.mxu1 %v6429_v51  ;;  %v6475_v51 = vpack.c.bf16 %v3088_v6, %v3087_v61  ;;  %v6447_v41 = vpack.c.bf16 %v3058_v32, %v3057_v9 }
 0x518   :  { %v5153_v44 = vpop.f32.mrb[54].mxu1  ;;  %6460 = vmatpush3.bf16.msra.mxu0 %v6459_v20  ;;  %v3107_v20 = vld [vmem:[%s10355_s5 + $0x14f0] sm:$0xff] }
 0x519   :  { %v5154_v15 = vpop.f32.mrb[55].mxu1  ;;  %6462 = vmatprep.subr.bf16.mxu0 %v6461_v2  ;;  %v3108_v2 = vld [vmem:[%s10355_s5 + $0x14f8] sm:$0xff] }
 0x51a   :  { %v5155_v46 = vadd.f32 %v5154_v15, %v5153_v44  ;;  %v5188_v11 = vpop.f32.mrb[56].mxu0  ;;  %6432 = vmatpush3.bf16.msra.mxu1 %v6431_v47  ;;  %v3060_v44 = vld [vmem:[%s10355_s5 + $0x1378] sm:$0xff]  ;;  %v6479_v47 = vpack.c.bf16 %v3090_v14, %v3089_v28  ;;  %v6481_v26 = vpack.c.bf16 %v3108_v2, %v3107_v20 }
 0x51b   :  { %v5189_v13 = vpop.f32.mrb[57].mxu0  ;;  %6434 = vmatprep.subr.bf16.mxu1 %v6433_v49  ;;  %v3092_v15 = vld [vmem:[%s10355_s5 + $0x1478] sm:$0xff]  ;;  %v6451_v49 = vpack.c.bf16 %v3060_v44, %v3059_v62 }
 0x51c   :  { %v3679_v19 = vadd.f32 %v5155_v46, %v9903_v30  ;;  %v5190_v52 = vadd.f32 %v5189_v13, %v5188_v11  ;;  %v3054_v30 = vld [vmem:[%s10355_s5 + $0x1348] sm:$0xff]  ;;  %6464 = vmatpush3.bf16.msra.mxu0 %v6463_v23  ;;  %v6483_v46 = vpack.c.bf16 %v3092_v15, %v3091_v16  ;;  %v2402_v11 = vpop.permute.xlu1 %2401  ;;  %v3111_v23 = vld [vmem:[%s10355_s5 + $0x1510] sm:$0xff]  ;;  %v3112_v13 = vld [vmem:[%s10355_s5 + $0x1518] sm:$0xff]  ;;  %s6614_s5 = smov [#allocation2]  }
 0x51d   :  { %6466 = vmatprep.subr.bf16.mxu0 %v6465_v63  ;;  %v6439_v40 = vpack.c.bf16 %v3054_v30, %v3053_v35  ;;  %v2403_v63 = vsel %vm2268_vm2, %v9965_v17, %v2402_v11  ;;  %v6489_v8 = vpack.c.bf16 %v3112_v13, %v3111_v23  ;;  %s4670_s10 = sshll.u32 %s6614_s5, 4  ;;  %s4671_s10 = int_to_ptr.vmem [resolvable:$true] %s4670_s10 }
 0x51e   :  { %v10238_v5 = vadd.f32 %v5190_v52, %v3679_v19  ;;  %6436 = vmatpush3.bf16.msra.mxu1 %v6435_v39  ;;  %s6576_s19 = scalar_lea.vmem %s4671_s10, 32  ;;  %p6581_p1 = scmp.lt.s32.totalorder %s4671_s10, %s4671_s10 }
 0x51f   :  { %6438 = vmatprep.subr.bf16.mxu1 %v6437_v27  ;;  %p6577_p0 = scmp.ne.s32.totalorder %s4671_s10, %s6576_s19  ;;  %p6582_p2 = scmp.lt.s32.totalorder %s6576_s19, %s6576_s19 }
 0x520   :  { %6468 = vmatpush3.bf16.msra.mxu0 %v6467_v22 }
 0x521   :  { %6470 = vmatprep.subr.bf16.mxu0 %v6469_v31  ;;  %p6583_p3 = por %p6582_p2, %p6581_p1 }
 0x522   :  { %6440 = vmatpush3.bf16.msra.mxu1 %v6439_v40 }
 0x523   :  { %6442 = vmatprep.subr.bf16.mxu1 %v6441_v18  ;;  %p6584_p4 = pnand %p6583_p3, %p6577_p0 }
 0x524   :  { %6472 = vmatpush3.bf16.msra.mxu0 %v6471_v0 }
 0x525   :  { %6474 = vmatprep.subr.bf16.mxu0 %v6473_v25 }
 0x526   :  { %6444 = vmatpush3.bf16.msra.mxu1 %v6443_v42 }
 0x527   :  { %6446 = vmatprep.subr.bf16.mxu1 %v6445_v59 }
 0x528   :  { %6476 = vmatpush3.bf16.msra.mxu0 %v6475_v51 }
 0x529   :  { %6478 = vmatprep.subr.bf16.mxu0 %v6477_v36 }
 0x52a   :  { %6448 = vmatpush3.bf16.msra.mxu1 %v6447_v41 }
 0x52b   :  { %6450 = vmatprep.subr.bf16.mxu1 %v6449_v3 }
 0x52c   :  { %6480 = vmatpush3.bf16.msra.mxu0 %v6479_v47 }
 0x52d   :  { %6482 = vmatprep.subr.bf16.mxu0 %v6481_v26 }
 0x52e   :  { %6452 = vmatpush3.bf16.msra.mxu1 %v6451_v49 }
 0x52f   :  { %6485 = vmatprep.subr.bf16.mxu1 %v6612_v34 }
 0x530   :  { %6484 = vmatpush3.bf16.msra.mxu0 %v6483_v46 }
 0x531   :  { %4517 = vmatmul.mubr.f32.vlgmr.msra.gmra.mrb[66].mxu1 %v2403_v63 }
 0x532   :  { %6487 = vmatpush3.bf16.msra.mxu1 %v6486_v45  ;;  %5624 = vmatprep.mubr.msk.f32.mxu1 %vm6613_vm3, %v6600_v7 }
 0x533   :  { %6488 = vmatprep.subr.bf16.mxu1 %v6612_v34 }
 0x536   :  { %6490 = vmatpush3.bf16.msra.mxu1 %v6489_v8 }
 0x538   :  { %v5223_v55 = vpop.f32.mrb[56].mxu1 }
 0x539   :  { %v5224_v19 = vpop.f32.mrb[57].mxu1 }
 0x53a   :  { %v5225_v52 = vadd.f32 %v5224_v19, %v5223_v55  ;;  %v5258_v39 = vpop.f32.mrb[58].mxu0 }
 0x53b   :  { %v5259_v38 = vpop.f32.mrb[59].mxu0 }
 0x53c   :  { %v3819_v12 = vadd.f32 %v5225_v52, %v10238_v5  ;;  %v5260_v27 = vadd.f32 %v5259_v38, %v5258_v39 }
 0x53e   :  { %v3889_v35 = vadd.f32 %v5260_v27, %v3819_v12 }
 0x54c   :  { %v2411_v30 = vpop.permute.xlu1 %2410 }
 0x54d   :  { %5625 = vmatmul.mubr.msk.f32.vlgmr.msra.gmra.mrb[68].mxu1 %vm2216_vm14, %v2411_v30 }
 0x550   :  { %v2409_v17 = vpop.permute.xlu0 %2408 }
 0x551   :  { %v2436_v54 = vsel %vm2205_vm13, %v9737_v57, %v2409_v17  ;;  %v2412_v7 = vsel %vm2205_vm13, %v2409_v17, %v2411_v30 }
 0x552   :  { %4586 = vmatprep.mubr.f32.mxu0 %v2412_v7 }
 0x553   :  { %4587 = vmatmul.mubr.f32.vlgmr.msra.gmra.mrb[68].mxu0 %v2436_v54 }
 0x558   :  { %v5293_v1 = vpop.f32.mrb[58].mxu1 }
 0x559   :  { %v5294_v22 = vpop.f32.mrb[59].mxu1 }
 0x55a   :  { %v5295_v31 = vadd.f32 %v5294_v22, %v5293_v1  ;;  %v5328_v37 = vpop.f32.mrb[60].mxu0 }
 0x55b   :  { %v5329_v58 = vpop.f32.mrb[61].mxu0 }
 0x55c   :  { %v3959_v40 = vadd.f32 %v5295_v31, %v3889_v35  ;;  %v5330_v5 = vadd.f32 %v5329_v58, %v5328_v37 }
 0x55e   :  { %v4029_v21 = vadd.f32 %v5330_v5, %v3959_v40 }
 0x5a4   :  { %v5363_v10 = vpop.f32.mrb[60].mxu1  ;;  %v5398_v18 = vpop.f32.mrb[62].mxu0 }
 0x5a5   :  { %v5364_v4 = vpop.f32.mrb[61].mxu1  ;;  %v5399_v33 = vpop.f32.mrb[63].mxu0 }
 0x5a6   :  { %v5365_v56 = vadd.f32 %v5364_v4, %v5363_v10  ;;  %v5400_v29 = vadd.f32 %v5399_v33, %v5398_v18 }
 0x5a8   :  { %v4099_v0 = vadd.f32 %v5365_v56, %v4029_v21 }
 0x5aa   :  { %v4169_v57 = vadd.f32 %v5400_v29, %v4099_v0 }
 0x5c4   :  { %v5433_v25 = vpop.f32.mrb[62].mxu1 }
 0x5c5   :  { %v5468_v61 = vpop.f32.mrb[64].mxu0  ;;  %v5434_v6 = vpop.f32.mrb[63].mxu1 }
 0x5c6   :  { %v5469_v42 = vpop.f32.mrb[65].mxu0  ;;  %v5435_v50 = vadd.f32 %v5434_v6, %v5433_v25 }
 0x5c7   :  { %v5470_v43 = vadd.f32 %v5469_v42, %v5468_v61 }
 0x5c8   :  { %v4239_v59 = vadd.f32 %v5435_v50, %v4169_v57 }
 0x5ca   :  { %v4309_v9 = vadd.f32 %v5470_v43, %v4239_v59 }
 0x5e4   :  { %v5503_v32 = vpop.f32.mrb[64].mxu1 }
 0x5e5   :  { %v5538_v60 = vpop.f32.mrb[66].mxu0  ;;  %v5504_v53 = vpop.f32.mrb[65].mxu1 }
 0x5e6   :  { %v5505_v51 = vadd.f32 %v5504_v53, %v5503_v32  ;;  %v5539_v36 = vpop.f32.mrb[67].mxu0 }
 0x5e7   :  { %v5540_v28 = vadd.f32 %v5539_v36, %v5538_v60 }
 0x5e8   :  { %v4379_v14 = vadd.f32 %v5505_v51, %v4309_v9 }
 0x5ea   :  { %v4449_v41 = vadd.f32 %v5540_v28, %v4379_v14 }
 0x604   :  { %v5573_v20 = vpop.f32.mrb[66].mxu1 }
 0x605   :  { %v5574_v2 = vpop.f32.mrb[67].mxu1 }
 0x606   :  { %v5575_v3 = vadd.f32 %v5574_v2, %v5573_v20 }
 0x608   :  { %v4519_v62 = vadd.f32 %v5575_v3, %v4449_v41 }
 0x620   :  { %v4658_v44 = vpop.f32.mrb[68].mxu1 }
 0x621   :  { %v5626_v47 = vpop.f32.mrb[69].mxu1 }
 0x626   :  { %v5608_v26 = vpop.f32.mrb[68].mxu0 }
 0x627   :  { %v5609_v16 = vpop.f32.mrb[69].mxu0 }
 0x628   :  { %v5610_v15 = vadd.f32 %v5609_v16, %v5608_v26 }
 0x62a   :  { %v4589_v49 = vadd.f32 %v5610_v15, %v4519_v62 }
 0x62c   :  { %v4659_v48 = vadd.f32 %v4658_v44, %v4589_v49 }
 0x62e   :  { %4663 = vst.msk [vmem:[#allocation2] sm:$0x3] %vm4662_vm4, %v4659_v48 }
 0x62f   :  { %6587 = shalt.err (!%p6584_p4)
}
 0x630   :  { %s6588_s12 = scalar_lea.hbm %s10357_s7, 32 }
 0x631   :  { %p6589_p5 = scmp.ne.s32.totalorder %s10357_s7, %s6588_s12  ;;  %p6592_p6 = scmp.lt.u32.totalorder %s6588_s12, %s10357_s7 }
 0x633   :  { %p6594_p7 = pnand %p6592_p6, %p6589_p5 }
 0x635   :  { %6597 = shalt.err (!%p6594_p7)
}
 0x636   :  { %4673 = dma.vmem_to_hbm [thread:$0]  %s4671_s10, 32, %s10357_s7, [#allocation3]  }
 0x637   :  { %6598 = dma.done.wait [#allocation3], 32  }
 0x638   :  { %6599 = vsyncadd [#allocation3], 4294967264 }
 0x639   :  { %4677 = vsyncpa [#allocation3], 1 }

</bundles_post_ra>
